<compile_context>
chip_gen: v7x
topology: tpu7x:2x2x1
jax: 0.10.0
libtpu: 0.0.40
codegen_flags: <defaults>
</compile_context>

<pallas_src>
import functools
import math

import jax
import jax.numpy as jnp
from jax.experimental import pallas as pl
from jax.experimental.pallas import tpu as pltpu

_BN_EPS = 1e-5
_GEMM_DTYPE = jnp.bfloat16        # GEMM / activation storage dtype
_MAX_TILE_ROWS = 1024             # bigger tiles amortize per-step overhead
_VMEM_LIMIT = 32 * 1024 * 1024    # per-tile buffers are <8 MiB; safe on v7x (64 MiB)


# ----------------------------------------------------------------------------
# tiling helpers
# ----------------------------------------------------------------------------
def _ceil_to(x, m):
    return ((x + m - 1) // m) * m


def _choose_tile(m):
    """Row tile tm (multiple of 16 when tiled) and padded row count Mp = nt*tm.
    Guarantees nt >= 2 whenever m > 16 (so v7x megacore gets both TCs) and
    minimizes ragged padding for large m."""
    m8 = _ceil_to(m, 8)
    if m8 <= 16:
        return m8, m8                              # single tiny full-dim tile
    if m8 <= 2 * _MAX_TILE_ROWS:
        tm = _ceil_to((m8 + 1) // 2, 16)           # exactly 2 parallel tiles
        return tm, 2 * tm
    best = None
    for tm in (_MAX_TILE_ROWS, _MAX_TILE_ROWS // 2, _MAX_TILE_ROWS // 4):
        mp = _ceil_to(m8, tm)
        waste = mp - m8
        if best is None or waste < best[0]:        # prefer larger tile on ties
            best = (waste, tm, mp)
    return best[1], best[2]


def _pad_k(k):
    """Pad the contraction dim to a multiple of 128 when the relative cost is
    small (unmasked loads + full MXU K utilization); else keep 16-aligned."""
    k128 = _ceil_to(k, 128)
    if 3 * k128 <= 4 * k:                          # <= 33% extra patch columns
        return k128
    return _ceil_to(k, 16)


def _affine_group(tm, c, nt):
    """Smallest row-group g so the affine pass streams (rows/g, g*C) lane-dense
    rows (g*C % 128 == 0), keeping blocks tile-aligned."""
    if c % 128 == 0:
        return 1
    g = 128 // math.gcd(c, 128)
    if tm % g != 0:
        return 1
    if nt > 1 and (tm // g) % 16 != 0:             # keep bf16 sublane alignment
        return 1
    return g


# ----------------------------------------------------------------------------
# Pallas kernels
# ----------------------------------------------------------------------------
def _gemm_stats_kernel(p_ref, w_ref, y_ref, st_ref):
    # y = patches @ W (bf16 in, f32 accumulate); per-tile [sum; sumsq] in f32,
    # reduced in-register before the bf16 store of y.
    y = jnp.dot(p_ref[...], w_ref[...], preferred_element_type=jnp.float32)
    s = jnp.sum(y, axis=0, keepdims=True)               # (1, C)
    sq = jnp.sum(y * y, axis=0, keepdims=True)          # (1, C)
    st_ref[...] = jnp.concatenate([s, sq], axis=0)      # (2, C) f32
    y_ref[...] = y.astype(y_ref.dtype)                  # bf16 store


def _gemm_bias_act_kernel(p_ref, w_ref, b_ref, o_ref, *, act):
    # o = act(patches @ W + bias)   (no-BN final layer: single fused pass)
    y = jnp.dot(p_ref[...], w_ref[...], preferred_element_type=jnp.float32)
    y = y + b_ref[...]
    if act == "relu":
        y = jnp.maximum(y, 0.0)
    elif act == "tanh":
        y = jnp.tanh(y)
    o_ref[...] = y.astype(o_ref.dtype)


def _affine_act_kernel(y_ref, s_ref, t_ref, o_ref, *, act):
    # o = act(y * scale + shift)  — fused BatchNorm affine + nonlinearity.
    # bf16 in/out, all math in f32 (v5e has no bf16 VPU/EUP path).
    y = y_ref[...].astype(jnp.float32) * s_ref[...] + t_ref[...]
    if act == "relu":
        y = jnp.maximum(y, 0.0)
    elif act == "tanh":
        y = jnp.tanh(y)
    o_ref[...] = y.astype(o_ref.dtype)


# ----------------------------------------------------------------------------
# pallas_call wrappers
# ----------------------------------------------------------------------------
def gemm_stats(patches, wmat, tm):
    """patches: (Mp, K) bf16, wmat: (K, C) bf16 ->
       y: (Mp, C) bf16, stats: (nt, 2, C) f32 (per-tile partial sums)."""
    Mp, K = patches.shape
    C = wmat.shape[1]
    nt = Mp // tm
    return pl.pallas_call(
        _gemm_stats_kernel,
        out_shape=(jax.ShapeDtypeStruct((Mp, C), _GEMM_DTYPE),
                   jax.ShapeDtypeStruct((nt, 2, C), jnp.float32)),
        grid_spec=pltpu.PrefetchScalarGridSpec(
            num_scalar_prefetch=0,
            grid=(nt,),
            in_specs=[
                pl.BlockSpec((tm, K), lambda i: (i, 0)),
                pl.BlockSpec((K, C), lambda i: (0, 0)),
            ],
            out_specs=[
                pl.BlockSpec((tm, C), lambda i: (i, 0)),
                pl.BlockSpec((None, 2, C), lambda i: (i, 0, 0)),
            ],
        ),
        compiler_params=pltpu.CompilerParams(
            dimension_semantics=("parallel",),
            vmem_limit_bytes=_VMEM_LIMIT),
    )(patches, wmat)


def gemm_bias_act(patches, wmat, bias, act, tm):
    """Fused GEMM + bias + activation (final no-BN layer). Output (Mp, C) bf16."""
    Mp, K = patches.shape
    C = wmat.shape[1]
    nt = Mp // tm
    return pl.pallas_call(
        functools.partial(_gemm_bias_act_kernel, act=act),
        out_shape=jax.ShapeDtypeStruct((Mp, C), _GEMM_DTYPE),
        grid_spec=pltpu.PrefetchScalarGridSpec(
            num_scalar_prefetch=0,
            grid=(nt,),
            in_specs=[
                pl.BlockSpec((tm, K), lambda i: (i, 0)),
                pl.BlockSpec((K, C), lambda i: (0, 0)),
                pl.BlockSpec((1, C), lambda i: (0, 0)),
            ],
            out_specs=pl.BlockSpec((tm, C), lambda i: (i, 0)),
        ),
        compiler_params=pltpu.CompilerParams(
            dimension_semantics=("parallel",),
            vmem_limit_bytes=_VMEM_LIMIT),
    )(patches, wmat, bias.reshape(1, C).astype(jnp.float32))


def affine_act(y, scale, shift, act, tm):
    """y: (Mp, C) bf16 -> act(y*scale + shift) bf16, streamed through a
       lane-dense (Mp/g, g*C) view; output aliased onto the input buffer."""
    Mp, C = y.shape
    nt = Mp // tm
    g = _affine_group(tm, C, nt)
    R, tr, L = Mp // g, tm // g, g * C
    yg = y.reshape(R, L)                           # free row-major regroup
    sg = jnp.tile(scale.astype(jnp.float32), g).reshape(1, L)
    tg = jnp.tile(shift.astype(jnp.float32), g).reshape(1, L)
    out = pl.pallas_call(
        functools.partial(_affine_act_kernel, act=act),
        out_shape=jax.ShapeDtypeStruct((R, L), _GEMM_DTYPE),
        grid_spec=pltpu.PrefetchScalarGridSpec(
            num_scalar_prefetch=0,
            grid=(nt,),
            in_specs=[
                pl.BlockSpec((tr, L), lambda i: (i, 0)),
                pl.BlockSpec((1, L), lambda i: (0, 0)),
                pl.BlockSpec((1, L), lambda i: (0, 0)),
            ],
            out_specs=pl.BlockSpec((tr, L), lambda i: (i, 0)),
        ),
        input_output_aliases={0: 0},
        compiler_params=pltpu.CompilerParams(
            dimension_semantics=("parallel",),
            vmem_limit_bytes=_VMEM_LIMIT),
    )(yg, sg, tg)
    return out.reshape(Mp, C)


def _bn_scale_shift(stats, gamma, beta, count, phases=1):
    """stats: (nt, 2, phases*C) per-tile [sum; sumsq] -> BN scale/shift (C,)."""
    s = jnp.sum(stats, axis=0)                       # (2, phases*C)
    C = s.shape[-1] // phases
    s = s.reshape(2, phases, C).sum(axis=1)          # combine sub-pixel phases
    mean = s[0] / count
    var = jnp.maximum(s[1] / count - mean * mean, 0.0)   # biased (training) var
    # TODO(synk): E[x^2]-E[x]^2 in f32 can cancel catastrophically for very
    # large batch*HW with tiny per-channel variance; switch to a shifted /
    # Welford reduction if that regime matters.
    scale = gamma * jax.lax.rsqrt(var + _BN_EPS)
    shift = beta - mean * scale
    return scale, shift


# ----------------------------------------------------------------------------
# Layers (im2col / interleave glue in plain JAX, all compute in Pallas)
# ----------------------------------------------------------------------------
def conv_bn_relu(x_nhwc, w, gamma, beta, stride=2, pad=1):
    """Conv2d(k=4,s=2,p=1) + BatchNorm(train) + ReLU.
       w: PyTorch Conv2d layout (Cout, Cin, kh, kw).  Conv bias omitted: BN's
       mean subtraction cancels a per-channel bias exactly."""
    N, H, W_, Cin = x_nhwc.shape
    Cout, _, kh, kw = w.shape
    Ho = (H + 2 * pad - kh) // stride + 1
    Wo = (W_ + 2 * pad - kw) // stride + 1
    M = N * Ho * Wo
    tm, Mp = _choose_tile(M)
    K = kh * kw * Cin
    Kp = _pad_k(K)

    xb = x_nhwc.astype(_GEMM_DTYPE)                # cast BEFORE pad/concat
    xp = jnp.pad(xb, ((0, 0), (pad, pad), (pad, pad), (0, 0)))
    cols = [xp[:, dh:dh + stride * Ho:stride, dw:dw + stride * Wo:stride, :]
            for dh in range(kh) for dw in range(kw)]
    patches = jnp.concatenate(cols, axis=-1).reshape(M, K)
    patches = jnp.pad(patches, ((0, Mp - M), (0, Kp - K)))
    wmat = jnp.transpose(w, (2, 3, 1, 0)).reshape(K, Cout).astype(_GEMM_DTYPE)
    wmat = jnp.pad(wmat, ((0, Kp - K), (0, 0)))

    y, stats = gemm_stats(patches, wmat, tm)       # fused GEMM + BN statistics
    scale, shift = _bn_scale_shift(stats, gamma, beta, count=M)
    y = affine_act(y, scale, shift, "relu", tm)
    return y[:M].reshape(N, Ho, Wo, Cout)


# output parity p (0=even row/col, 1=odd) and 3x3-window offset d -> kernel tap
_TAP = {(0, 0): 3, (0, 1): 1, (1, 1): 2, (1, 2): 0}


def convt_block(x_nhwc, w_t, b, bn, act):
    """ConvTranspose2d(k=4,s=2,p=1) [+ BatchNorm + ReLU | + bias + Tanh] via the
       4-phase sub-pixel decomposition packed into ONE GEMM:
       shared 3x3-window patches (M, 9*Cin) @ block weight (9*Cin, 4*Cout).
       w_t: PyTorch ConvTranspose2d layout (Cin, Cout, kh, kw)."""
    N, H, W_, Cin = x_nhwc.shape
    _, Cout, _, _ = w_t.shape
    M = N * H * W_
    tm, Mp = _choose_tile(M)
    K = 9 * Cin
    Kp = _pad_k(K)
    Cpk = 4 * Cout                                  # phases packed into lanes

    xb = x_nhwc.astype(_GEMM_DTYPE)                 # cast BEFORE pad/concat
    xp = jnp.pad(xb, ((0, 0), (1, 1), (1, 1), (0, 0)))
    cols = [xp[:, dh:dh + H, dw:dw + W_, :] for dh in range(3) for dw in range(3)]
    patches = jnp.concatenate(cols, axis=-1).reshape(M, K)
    patches = jnp.pad(patches, ((0, Mp - M), (0, Kp - K)))

    # block weight: (3,3,Cin,4,Cout) -> (9*Cin, 4*Cout), zero where a phase
    # does not touch that window position.
    wbig = jnp.zeros((3, 3, Cin, 4, Cout), jnp.float32)
    for ph in (0, 1):
        for pw in (0, 1):
            p = 2 * ph + pw
            for dh in (0, 1, 2):
                if (ph, dh) not in _TAP:
                    continue
                for dw in (0, 1, 2):
                    if (pw, dw) not in _TAP:
                        continue
                    wbig = wbig.at[dh, dw, :, p, :].set(
                        w_t[:, :, _TAP[(ph, dh)], _TAP[(pw, dw)]])
    wbig = wbig.reshape(K, Cpk).astype(_GEMM_DTYPE)
    wbig = jnp.pad(wbig, ((0, Kp - K), (0, 0)))

    if bn is not None:
        gamma, beta = bn
        y, stats = gemm_stats(patches, wbig, tm)    # bias dropped: cancels in BN
        scale, shift = _bn_scale_shift(stats, gamma, beta, count=4 * M, phases=4)
        y = affine_act(y, jnp.tile(scale, 4), jnp.tile(shift, 4), act, tm)
    else:
        y = gemm_bias_act(patches, wbig, jnp.tile(b, 4), act, tm)

    # interleave phases: out[n, 2h+ph, 2w+pw, :] = y[m, (2ph+pw)*Cout : ...]
    y = y[:M].reshape(N, H, W_, 2, 2, Cout)
    y = jnp.transpose(y, (0, 1, 3, 2, 4, 5)).reshape(N, 2 * H, 2 * W_, Cout)
    return y


# ----------------------------------------------------------------------------
# Model
# ----------------------------------------------------------------------------
def init_params(key):
    enc_ch = [(3, 16), (16, 32), (32, 64), (64, 128)]
    dec_ch = [(128, 64), (64, 32), (32, 16), (16, 3)]
    keys = iter(jax.random.split(key, 16))

    enc = []
    for cin, cout in enc_ch:
        w = 0.05 * jax.random.normal(next(keys), (cout, cin, 4, 4), jnp.float32)
        b = 0.01 * jax.random.normal(next(keys), (cout,), jnp.float32)
        gamma = jnp.ones((cout,), jnp.float32)
        beta = jnp.zeros((cout,), jnp.float32)
        enc.append((w, b, gamma, beta))

    dec = []
    for i, (cin, cout) in enumerate(dec_ch):
        w = 0.05 * jax.random.normal(next(keys), (cin, cout, 4, 4), jnp.float32)
        b = 0.01 * jax.random.normal(next(keys), (cout,), jnp.float32)
        if i < len(dec_ch) - 1:
            gamma = jnp.ones((cout,), jnp.float32)
            beta = jnp.zeros((cout,), jnp.float32)
            dec.append((w, b, gamma, beta))
        else:
            dec.append((w, b))          # final layer: no BatchNorm, Tanh
    return {"enc": enc, "dec": dec}


def autoencoder_forward(params, x_nchw):
    # NCHW (PyTorch) -> NHWC for the kernels, back to NCHW at the end.
    x = jnp.transpose(x_nchw, (0, 2, 3, 1)).astype(jnp.float32)

    for (w, b, gamma, beta) in params["enc"]:
        # conv bias b intentionally unused: cancels exactly under BatchNorm.
        x = conv_bn_relu(x, w, gamma, beta)

    for (w, b, gamma, beta) in params["dec"][:-1]:
        x = convt_block(x, w, b, bn=(gamma, beta), act="relu")

    w, b = params["dec"][-1]
    x = convt_block(x, w, b, bn=None, act="tanh")

    return jnp.transpose(x, (0, 3, 1, 2)).astype(jnp.float32)   # back to NCHW


if __name__ == "__main__":
    key = jax.random.PRNGKey(0)
    pkey, xkey = jax.random.split(key)
    params = init_params(pkey)

    # small shape consistent with the module (NCHW, 3 input channels, spatial
    # divisible by 16 so the four stride-2 encoder stages are exact)
    x = jax.random.normal(xkey, (2, 3, 16, 16), jnp.float32)

    fwd = jax.jit(autoencoder_forward)
    out = jax.block_until_ready(fwd(params, x))

    assert out.shape == (2, 3, 16, 16), out.shape
    assert bool(jnp.all(jnp.isfinite(out)))
    assert bool(jnp.all(jnp.abs(out) <= 1.0))      # final Tanh bound
    print("KERNEL_OK")
</pallas_src>

<mosaic_0001>
module attributes {stable_mosaic.version = 11 : i64} {
  func.func @_gemm_stats_kernel(%arg0: i32, %arg1: memref<64x48xbf16, #tpu.memory_space<vmem>>, %arg2: memref<48x16xbf16, #tpu.memory_space<vmem>>, %arg3: memref<64x16xbf16, #tpu.memory_space<vmem>>, %arg4: memref<1x2x16xf32, #tpu.memory_space<vmem>>) attributes {dimension_semantics = [#tpu.dimension_semantics<parallel>], iteration_bounds = array<i64: 2>, scalar_prefetch = 0 : i64, scratch_operands = 0 : i64, tpu.core_type = #tpu.core_type<tc>, window_params = [{transform_indices = @transform_0, window_bounds = array<i64: 64, 48>}, {pipeline_mode = #tpu.pipeline_mode<synchronous>, transform_indices = @transform_1, window_bounds = array<i64: 48, 16>}, {transform_indices = @transform_2, window_bounds = array<i64: 64, 16>}, {transform_indices = @transform_3, window_bounds = array<i64: 1, 2, 16>}]} {
    %c0 = arith.constant 0 : index
    %c0_0 = arith.constant 0 : index
    %0 = vector.load %arg1[%c0, %c0_0] : memref<64x48xbf16, #tpu.memory_space<vmem>>, vector<64x48xbf16>
    %c0_1 = arith.constant 0 : index
    %c0_2 = arith.constant 0 : index
    %1 = vector.load %arg2[%c0_1, %c0_2] : memref<48x16xbf16, #tpu.memory_space<vmem>>, vector<48x16xbf16>
    %cst = arith.constant dense<0.000000e+00> : vector<64x16xf32>
    %2 = tpu.matmul %0, %1, %cst {dimension_numbers = #tpu.dot_dimension_numbers<[1], [0], [0], [1], [0, 0, 1, 1], [], []>} : vector<64x48xbf16>, vector<48x16xbf16>, vector<64x16xf32> -> vector<64x16xf32>
    %cst_3 = arith.constant dense<0.000000e+00> : vector<16xf32>
    %3 = vector.multi_reduction <add>, %2, %cst_3 [0] : vector<64x16xf32> to vector<16xf32>
    %4 = vector.shape_cast %3 : vector<16xf32> to vector<1x16xf32>
    %5 = arith.mulf %2, %2 : vector<64x16xf32>
    %cst_4 = arith.constant dense<0.000000e+00> : vector<16xf32>
    %6 = vector.multi_reduction <add>, %5, %cst_4 [0] : vector<64x16xf32> to vector<16xf32>
    %7 = vector.shape_cast %6 : vector<16xf32> to vector<1x16xf32>
    %8 = tpu.concatenate %4, %7 in 0 : vector<1x16xf32>, vector<1x16xf32> -> vector<2x16xf32>
    %c0_5 = arith.constant 0 : index
    %c0_6 = arith.constant 0 : index
    %c0_7 = arith.constant 0 : index
    %9 = vector.load %arg4[%c0_5, %c0_6, %c0_7] : memref<1x2x16xf32, #tpu.memory_space<vmem>>, vector<1x2x16xf32>
    %10 = vector.shape_cast %9 : vector<1x2x16xf32> to vector<2x16xf32>
    %11 = vector.shape_cast %8 : vector<2x16xf32> to vector<1x2x16xf32>
    tpu.vector_store %arg4[%c0_5, %c0_6, %c0_7], %11 {strides = array<i32>} : memref<1x2x16xf32, #tpu.memory_space<vmem>>, vector<1x2x16xf32>,
    %12 = arith.truncf %2 : vector<64x16xf32> to vector<64x16xbf16>
    %c0_8 = arith.constant 0 : index
    %c0_9 = arith.constant 0 : index
    %13 = vector.load %arg3[%c0_8, %c0_9] : memref<64x16xbf16, #tpu.memory_space<vmem>>, vector<64x16xbf16>
    tpu.vector_store %arg3[%c0_8, %c0_9], %12 {strides = array<i32>} : memref<64x16xbf16, #tpu.memory_space<vmem>>, vector<64x16xbf16>,
    return
  }
  func.func @transform_0(%arg0: i32) -> (i32, i32) {
    %c0_i32 = arith.constant 0 : i32
    %c0_i32_0 = arith.constant 0 : i32
    return %arg0, %c0_i32 : i32, i32
  }
  func.func @transform_1(%arg0: i32) -> (i32, i32) {
    %c0_i32 = arith.constant 0 : i32
    %c0_i32_0 = arith.constant 0 : i32
    %c0_i32_1 = arith.constant 0 : i32
    return %c0_i32, %c0_i32_0 : i32, i32
  }
  func.func @transform_2(%arg0: i32) -> (i32, i32) {
    %c0_i32 = arith.constant 0 : i32
    %c0_i32_0 = arith.constant 0 : i32
    return %arg0, %c0_i32 : i32, i32
  }
  func.func @transform_3(%arg0: i32) -> (i32, i32, i32) {
    %c0_i32 = arith.constant 0 : i32
    %c0_i32_0 = arith.constant 0 : i32
    %c0_i32_1 = arith.constant 0 : i32
    return %arg0, %c0_i32, %c0_i32_0 : i32, i32, i32
  }
}

module attributes {stable_mosaic.version = 11 : i64} {
  func.func @_affine_act_kernel(%arg0: i32, %arg1: memref<64x16xbf16, #tpu.memory_space<vmem>>, %arg2: memref<1x16xf32, #tpu.memory_space<vmem>>, %arg3: memref<1x16xf32, #tpu.memory_space<vmem>>, %arg4: memref<64x16xbf16, #tpu.memory_space<vmem>>) attributes {dimension_semantics = [#tpu.dimension_semantics<parallel>], iteration_bounds = array<i64: 2>, scalar_prefetch = 0 : i64, scratch_operands = 0 : i64, tpu.core_type = #tpu.core_type<tc>, window_params = [{transform_indices = @transform_0, window_bounds = array<i64: 64, 16>}, {pipeline_mode = #tpu.pipeline_mode<synchronous>, transform_indices = @transform_1, window_bounds = array<i64: 1, 16>}, {pipeline_mode = #tpu.pipeline_mode<synchronous>, transform_indices = @transform_2, window_bounds = array<i64: 1, 16>}, {transform_indices = @transform_3, window_bounds = array<i64: 64, 16>}]} {
    %c0 = arith.constant 0 : index
    %c0_0 = arith.constant 0 : index
    %0 = vector.load %arg1[%c0, %c0_0] : memref<64x16xbf16, #tpu.memory_space<vmem>>, vector<64x16xbf16>
    %1 = arith.extf %0 : vector<64x16xbf16> to vector<64x16xf32>
    %c0_1 = arith.constant 0 : index
    %c0_2 = arith.constant 0 : index
    %2 = vector.load %arg2[%c0_1, %c0_2] : memref<1x16xf32, #tpu.memory_space<vmem>>, vector<1x16xf32>
    %3 = vector.broadcast %2 : vector<1x16xf32> to vector<64x16xf32>
    %4 = arith.mulf %1, %3 : vector<64x16xf32>
    %c0_3 = arith.constant 0 : index
    %c0_4 = arith.constant 0 : index
    %5 = vector.load %arg3[%c0_3, %c0_4] : memref<1x16xf32, #tpu.memory_space<vmem>>, vector<1x16xf32>
    %6 = vector.broadcast %5 : vector<1x16xf32> to vector<64x16xf32>
    %7 = arith.addf %4, %6 : vector<64x16xf32>
    %cst = arith.constant 0.000000e+00 : f32
    %8 = vector.broadcast %cst : f32 to vector<64x16xf32>
    %9 = arith.maximumf %7, %8 : vector<64x16xf32>
    %10 = arith.truncf %9 : vector<64x16xf32> to vector<64x16xbf16>
    %c0_5 = arith.constant 0 : index
    %c0_6 = arith.constant 0 : index
    %11 = vector.load %arg4[%c0_5, %c0_6] : memref<64x16xbf16, #tpu.memory_space<vmem>>, vector<64x16xbf16>
    tpu.vector_store %arg4[%c0_5, %c0_6], %10 {strides = array<i32>} : memref<64x16xbf16, #tpu.memory_space<vmem>>, vector<64x16xbf16>,
    return
  }
  func.func @transform_0(%arg0: i32) -> (i32, i32) {
    %c0_i32 = arith.constant 0 : i32
    %c0_i32_0 = arith.constant 0 : i32
    return %arg0, %c0_i32 : i32, i32
  }
  func.func @transform_1(%arg0: i32) -> (i32, i32) {
    %c0_i32 = arith.constant 0 : i32
    %c0_i32_0 = arith.constant 0 : i32
    %c0_i32_1 = arith.constant 0 : i32
    return %c0_i32, %c0_i32_0 : i32, i32
  }
  func.func @transform_2(%arg0: i32) -> (i32, i32) {
    %c0_i32 = arith.constant 0 : i32
    %c0_i32_0 = arith.constant 0 : i32
    %c0_i32_1 = arith.constant 0 : i32
    return %c0_i32, %c0_i32_0 : i32, i32
  }
  func.func @transform_3(%arg0: i32) -> (i32, i32) {
    %c0_i32 = arith.constant 0 : i32
    %c0_i32_0 = arith.constant 0 : i32
    return %arg0, %c0_i32 : i32, i32
  }
}

module attributes {stable_mosaic.version = 11 : i64} {
  func.func @_gemm_stats_kernel(%arg0: i32, %arg1: memref<16x256xbf16, #tpu.memory_space<vmem>>, %arg2: memref<256x32xbf16, #tpu.memory_space<vmem>>, %arg3: memref<16x32xbf16, #tpu.memory_space<vmem>>, %arg4: memref<1x2x32xf32, #tpu.memory_space<vmem>>) attributes {dimension_semantics = [#tpu.dimension_semantics<parallel>], iteration_bounds = array<i64: 2>, scalar_prefetch = 0 : i64, scratch_operands = 0 : i64, tpu.core_type = #tpu.core_type<tc>, window_params = [{transform_indices = @transform_0, window_bounds = array<i64: 16, 256>}, {pipeline_mode = #tpu.pipeline_mode<synchronous>, transform_indices = @transform_1, window_bounds = array<i64: 256, 32>}, {transform_indices = @transform_2, window_bounds = array<i64: 16, 32>}, {transform_indices = @transform_3, window_bounds = array<i64: 1, 2, 32>}]} {
    %c0 = arith.constant 0 : index
    %c0_0 = arith.constant 0 : index
    %0 = vector.load %arg1[%c0, %c0_0] : memref<16x256xbf16, #tpu.memory_space<vmem>>, vector<16x256xbf16>
    %c0_1 = arith.constant 0 : index
    %c0_2 = arith.constant 0 : index
    %1 = vector.load %arg2[%c0_1, %c0_2] : memref<256x32xbf16, #tpu.memory_space<vmem>>, vector<256x32xbf16>
    %cst = arith.constant dense<0.000000e+00> : vector<16x32xf32>
    %2 = tpu.matmul %0, %1, %cst {dimension_numbers = #tpu.dot_dimension_numbers<[1], [0], [0], [1], [0, 0, 1, 1], [], []>} : vector<16x256xbf16>, vector<256x32xbf16>, vector<16x32xf32> -> vector<16x32xf32>
    %cst_3 = arith.constant dense<0.000000e+00> : vector<32xf32>
    %3 = vector.multi_reduction <add>, %2, %cst_3 [0] : vector<16x32xf32> to vector<32xf32>
    %4 = vector.shape_cast %3 : vector<32xf32> to vector<1x32xf32>
    %5 = arith.mulf %2, %2 : vector<16x32xf32>
    %cst_4 = arith.constant dense<0.000000e+00> : vector<32xf32>
    %6 = vector.multi_reduction <add>, %5, %cst_4 [0] : vector<16x32xf32> to vector<32xf32>
    %7 = vector.shape_cast %6 : vector<32xf32> to vector<1x32xf32>
    %8 = tpu.concatenate %4, %7 in 0 : vector<1x32xf32>, vector<1x32xf32> -> vector<2x32xf32>
    %c0_5 = arith.constant 0 : index
    %c0_6 = arith.constant 0 : index
    %c0_7 = arith.constant 0 : index
    %9 = vector.load %arg4[%c0_5, %c0_6, %c0_7] : memref<1x2x32xf32, #tpu.memory_space<vmem>>, vector<1x2x32xf32>
    %10 = vector.shape_cast %9 : vector<1x2x32xf32> to vector<2x32xf32>
    %11 = vector.shape_cast %8 : vector<2x32xf32> to vector<1x2x32xf32>
    tpu.vector_store %arg4[%c0_5, %c0_6, %c0_7], %11 {strides = array<i32>} : memref<1x2x32xf32, #tpu.memory_space<vmem>>, vector<1x2x32xf32>,
    %12 = arith.truncf %2 : vector<16x32xf32> to vector<16x32xbf16>
    %c0_8 = arith.constant 0 : index
    %c0_9 = arith.constant 0 : index
    %13 = vector.load %arg3[%c0_8, %c0_9] : memref<16x32xbf16, #tpu.memory_space<vmem>>, vector<16x32xbf16>
    tpu.vector_store %arg3[%c0_8, %c0_9], %12 {strides = array<i32>} : memref<16x32xbf16, #tpu.memory_space<vmem>>, vector<16x32xbf16>,
    return
  }
  func.func @transform_0(%arg0: i32) -> (i32, i32) {
    %c0_i32 = arith.constant 0 : i32
    %c0_i32_0 = arith.constant 0 : i32
    return %arg0, %c0_i32 : i32, i32
  }
  func.func @transform_1(%arg0: i32) -> (i32, i32) {
    %c0_i32 = arith.constant 0 : i32
    %c0_i32_0 = arith.constant 0 : i32
    %c0_i32_1 = arith.constant 0 : i32
    return %c0_i32, %c0_i32_0 : i32, i32
  }
  func.func @transform_2(%arg0: i32) -> (i32, i32) {
    %c0_i32 = arith.constant 0 : i32
    %c0_i32_0 = arith.constant 0 : i32
    return %arg0, %c0_i32 : i32, i32
  }
  func.func @transform_3(%arg0: i32) -> (i32, i32, i32) {
    %c0_i32 = arith.constant 0 : i32
    %c0_i32_0 = arith.constant 0 : i32
    %c0_i32_1 = arith.constant 0 : i32
    return %arg0, %c0_i32, %c0_i32_0 : i32, i32, i32
  }
}

module attributes {stable_mosaic.version = 11 : i64} {
  func.func @_affine_act_kernel(%arg0: i32, %arg1: memref<16x32xbf16, #tpu.memory_space<vmem>>, %arg2: memref<1x32xf32, #tpu.memory_space<vmem>>, %arg3: memref<1x32xf32, #tpu.memory_space<vmem>>, %arg4: memref<16x32xbf16, #tpu.memory_space<vmem>>) attributes {dimension_semantics = [#tpu.dimension_semantics<parallel>], iteration_bounds = array<i64: 2>, scalar_prefetch = 0 : i64, scratch_operands = 0 : i64, tpu.core_type = #tpu.core_type<tc>, window_params = [{transform_indices = @transform_0, window_bounds = array<i64: 16, 32>}, {pipeline_mode = #tpu.pipeline_mode<synchronous>, transform_indices = @transform_1, window_bounds = array<i64: 1, 32>}, {pipeline_mode = #tpu.pipeline_mode<synchronous>, transform_indices = @transform_2, window_bounds = array<i64: 1, 32>}, {transform_indices = @transform_3, window_bounds = array<i64: 16, 32>}]} {
    %c0 = arith.constant 0 : index
    %c0_0 = arith.constant 0 : index
    %0 = vector.load %arg1[%c0, %c0_0] : memref<16x32xbf16, #tpu.memory_space<vmem>>, vector<16x32xbf16>
    %1 = arith.extf %0 : vector<16x32xbf16> to vector<16x32xf32>
    %c0_1 = arith.constant 0 : index
    %c0_2 = arith.constant 0 : index
    %2 = vector.load %arg2[%c0_1, %c0_2] : memref<1x32xf32, #tpu.memory_space<vmem>>, vector<1x32xf32>
    %3 = vector.broadcast %2 : vector<1x32xf32> to vector<16x32xf32>
    %4 = arith.mulf %1, %3 : vector<16x32xf32>
    %c0_3 = arith.constant 0 : index
    %c0_4 = arith.constant 0 : index
    %5 = vector.load %arg3[%c0_3, %c0_4] : memref<1x32xf32, #tpu.memory_space<vmem>>, vector<1x32xf32>
    %6 = vector.broadcast %5 : vector<1x32xf32> to vector<16x32xf32>
    %7 = arith.addf %4, %6 : vector<16x32xf32>
    %cst = arith.constant 0.000000e+00 : f32
    %8 = vector.broadcast %cst : f32 to vector<16x32xf32>
    %9 = arith.maximumf %7, %8 : vector<16x32xf32>
    %10 = arith.truncf %9 : vector<16x32xf32> to vector<16x32xbf16>
    %c0_5 = arith.constant 0 : index
    %c0_6 = arith.constant 0 : index
    %11 = vector.load %arg4[%c0_5, %c0_6] : memref<16x32xbf16, #tpu.memory_space<vmem>>, vector<16x32xbf16>
    tpu.vector_store %arg4[%c0_5, %c0_6], %10 {strides = array<i32>} : memref<16x32xbf16, #tpu.memory_space<vmem>>, vector<16x32xbf16>,
    return
  }
  func.func @transform_0(%arg0: i32) -> (i32, i32) {
    %c0_i32 = arith.constant 0 : i32
    %c0_i32_0 = arith.constant 0 : i32
    return %arg0, %c0_i32 : i32, i32
  }
  func.func @transform_1(%arg0: i32) -> (i32, i32) {
    %c0_i32 = arith.constant 0 : i32
    %c0_i32_0 = arith.constant 0 : i32
    %c0_i32_1 = arith.constant 0 : i32
    return %c0_i32, %c0_i32_0 : i32, i32
  }
  func.func @transform_2(%arg0: i32) -> (i32, i32) {
    %c0_i32 = arith.constant 0 : i32
    %c0_i32_0 = arith.constant 0 : i32
    %c0_i32_1 = arith.constant 0 : i32
    return %c0_i32, %c0_i32_0 : i32, i32
  }
  func.func @transform_3(%arg0: i32) -> (i32, i32) {
    %c0_i32 = arith.constant 0 : i32
    %c0_i32_0 = arith.constant 0 : i32
    return %arg0, %c0_i32 : i32, i32
  }
}

module attributes {stable_mosaic.version = 11 : i64} {
  func.func @_affine_act_kernel(%arg0: i32, %arg1: memref<4x128xbf16, #tpu.memory_space<vmem>>, %arg2: memref<1x128xf32, #tpu.memory_space<vmem>>, %arg3: memref<1x128xf32, #tpu.memory_space<vmem>>, %arg4: memref<4x128xbf16, #tpu.memory_space<vmem>>) attributes {dimension_semantics = [#tpu.dimension_semantics<parallel>], iteration_bounds = array<i64: 1>, scalar_prefetch = 0 : i64, scratch_operands = 0 : i64, tpu.core_type = #tpu.core_type<tc>, window_params = [{transform_indices = @transform_0, window_bounds = array<i64: 4, 128>}, {pipeline_mode = #tpu.pipeline_mode<synchronous>, transform_indices = @transform_1, window_bounds = array<i64: 1, 128>}, {pipeline_mode = #tpu.pipeline_mode<synchronous>, transform_indices = @transform_2, window_bounds = array<i64: 1, 128>}, {transform_indices = @transform_3, window_bounds = array<i64: 4, 128>}]} {
    %c0 = arith.constant 0 : index
    %c0_0 = arith.constant 0 : index
    %0 = vector.load %arg1[%c0, %c0_0] : memref<4x128xbf16, #tpu.memory_space<vmem>>, vector<4x128xbf16>
    %1 = arith.extf %0 : vector<4x128xbf16> to vector<4x128xf32>
    %c0_1 = arith.constant 0 : index
    %c0_2 = arith.constant 0 : index
    %2 = vector.load %arg2[%c0_1, %c0_2] : memref<1x128xf32, #tpu.memory_space<vmem>>, vector<1x128xf32>
    %3 = vector.broadcast %2 : vector<1x128xf32> to vector<4x128xf32>
    %4 = arith.mulf %1, %3 : vector<4x128xf32>
    %c0_3 = arith.constant 0 : index
    %c0_4 = arith.constant 0 : index
    %5 = vector.load %arg3[%c0_3, %c0_4] : memref<1x128xf32, #tpu.memory_space<vmem>>, vector<1x128xf32>
    %6 = vector.broadcast %5 : vector<1x128xf32> to vector<4x128xf32>
    %7 = arith.addf %4, %6 : vector<4x128xf32>
    %cst = arith.constant 0.000000e+00 : f32
    %8 = vector.broadcast %cst : f32 to vector<4x128xf32>
    %9 = arith.maximumf %7, %8 : vector<4x128xf32>
    %10 = arith.truncf %9 : vector<4x128xf32> to vector<4x128xbf16>
    %c0_5 = arith.constant 0 : index
    %c0_6 = arith.constant 0 : index
    %11 = vector.load %arg4[%c0_5, %c0_6] : memref<4x128xbf16, #tpu.memory_space<vmem>>, vector<4x128xbf16>
    tpu.vector_store %arg4[%c0_5, %c0_6], %10 {strides = array<i32>} : memref<4x128xbf16, #tpu.memory_space<vmem>>, vector<4x128xbf16>,
    return
  }
  func.func @transform_0(%arg0: i32) -> (i32, i32) {
    %c0_i32 = arith.constant 0 : i32
    %c0_i32_0 = arith.constant 0 : i32
    return %arg0, %c0_i32 : i32, i32
  }
  func.func @transform_1(%arg0: i32) -> (i32, i32) {
    %c0_i32 = arith.constant 0 : i32
    %c0_i32_0 = arith.constant 0 : i32
    %c0_i32_1 = arith.constant 0 : i32
    return %c0_i32, %c0_i32_0 : i32, i32
  }
  func.func @transform_2(%arg0: i32) -> (i32, i32) {
    %c0_i32 = arith.constant 0 : i32
    %c0_i32_0 = arith.constant 0 : i32
    %c0_i32_1 = arith.constant 0 : i32
    return %c0_i32, %c0_i32_0 : i32, i32
  }
  func.func @transform_3(%arg0: i32) -> (i32, i32) {
    %c0_i32 = arith.constant 0 : i32
    %c0_i32_0 = arith.constant 0 : i32
    return %arg0, %c0_i32 : i32, i32
  }
}

module attributes {stable_mosaic.version = 11 : i64} {
  func.func @_gemm_stats_kernel(%arg0: i32, %arg1: memref<8x512xbf16, #tpu.memory_space<vmem>>, %arg2: memref<512x64xbf16, #tpu.memory_space<vmem>>, %arg3: memref<8x64xbf16, #tpu.memory_space<vmem>>, %arg4: memref<1x2x64xf32, #tpu.memory_space<vmem>>) attributes {dimension_semantics = [#tpu.dimension_semantics<parallel>], iteration_bounds = array<i64: 1>, scalar_prefetch = 0 : i64, scratch_operands = 0 : i64, tpu.core_type = #tpu.core_type<tc>, window_params = [{transform_indices = @transform_0, window_bounds = array<i64: 8, 512>}, {pipeline_mode = #tpu.pipeline_mode<synchronous>, transform_indices = @transform_1, window_bounds = array<i64: 512, 64>}, {transform_indices = @transform_2, window_bounds = array<i64: 8, 64>}, {transform_indices = @transform_3, window_bounds = array<i64: 1, 2, 64>}]} {
    %c0 = arith.constant 0 : index
    %c0_0 = arith.constant 0 : index
    %0 = vector.load %arg1[%c0, %c0_0] : memref<8x512xbf16, #tpu.memory_space<vmem>>, vector<8x512xbf16>
    %c0_1 = arith.constant 0 : index
    %c0_2 = arith.constant 0 : index
    %1 = vector.load %arg2[%c0_1, %c0_2] : memref<512x64xbf16, #tpu.memory_space<vmem>>, vector<512x64xbf16>
    %cst = arith.constant dense<0.000000e+00> : vector<8x64xf32>
    %2 = tpu.matmul %0, %1, %cst {dimension_numbers = #tpu.dot_dimension_numbers<[1], [0], [0], [1], [0, 0, 1, 1], [], []>} : vector<8x512xbf16>, vector<512x64xbf16>, vector<8x64xf32> -> vector<8x64xf32>
    %cst_3 = arith.constant dense<0.000000e+00> : vector<64xf32>
    %3 = vector.multi_reduction <add>, %2, %cst_3 [0] : vector<8x64xf32> to vector<64xf32>
    %4 = vector.shape_cast %3 : vector<64xf32> to vector<1x64xf32>
    %5 = arith.mulf %2, %2 : vector<8x64xf32>
    %cst_4 = arith.constant dense<0.000000e+00> : vector<64xf32>
    %6 = vector.multi_reduction <add>, %5, %cst_4 [0] : vector<8x64xf32> to vector<64xf32>
    %7 = vector.shape_cast %6 : vector<64xf32> to vector<1x64xf32>
    %8 = tpu.concatenate %4, %7 in 0 : vector<1x64xf32>, vector<1x64xf32> -> vector<2x64xf32>
    %c0_5 = arith.constant 0 : index
    %c0_6 = arith.constant 0 : index
    %c0_7 = arith.constant 0 : index
    %9 = vector.load %arg4[%c0_5, %c0_6, %c0_7] : memref<1x2x64xf32, #tpu.memory_space<vmem>>, vector<1x2x64xf32>
    %10 = vector.shape_cast %9 : vector<1x2x64xf32> to vector<2x64xf32>
    %11 = vector.shape_cast %8 : vector<2x64xf32> to vector<1x2x64xf32>
    tpu.vector_store %arg4[%c0_5, %c0_6, %c0_7], %11 {strides = array<i32>} : memref<1x2x64xf32, #tpu.memory_space<vmem>>, vector<1x2x64xf32>,
    %12 = arith.truncf %2 : vector<8x64xf32> to vector<8x64xbf16>
    %c0_8 = arith.constant 0 : index
    %c0_9 = arith.constant 0 : index
    %13 = vector.load %arg3[%c0_8, %c0_9] : memref<8x64xbf16, #tpu.memory_space<vmem>>, vector<8x64xbf16>
    tpu.vector_store %arg3[%c0_8, %c0_9], %12 {strides = array<i32>} : memref<8x64xbf16, #tpu.memory_space<vmem>>, vector<8x64xbf16>,
    return
  }
  func.func @transform_0(%arg0: i32) -> (i32, i32) {
    %c0_i32 = arith.constant 0 : i32
    %c0_i32_0 = arith.constant 0 : i32
    return %arg0, %c0_i32 : i32, i32
  }
  func.func @transform_1(%arg0: i32) -> (i32, i32) {
    %c0_i32 = arith.constant 0 : i32
    %c0_i32_0 = arith.constant 0 : i32
    %c0_i32_1 = arith.constant 0 : i32
    return %c0_i32, %c0_i32_0 : i32, i32
  }
  func.func @transform_2(%arg0: i32) -> (i32, i32) {
    %c0_i32 = arith.constant 0 : i32
    %c0_i32_0 = arith.constant 0 : i32
    return %arg0, %c0_i32 : i32, i32
  }
  func.func @transform_3(%arg0: i32) -> (i32, i32, i32) {
    %c0_i32 = arith.constant 0 : i32
    %c0_i32_0 = arith.constant 0 : i32
    %c0_i32_1 = arith.constant 0 : i32
    return %arg0, %c0_i32, %c0_i32_0 : i32, i32, i32
  }
}

module attributes {stable_mosaic.version = 11 : i64} {
  func.func @_gemm_stats_kernel(%arg0: i32, %arg1: memref<8x1024xbf16, #tpu.memory_space<vmem>>, %arg2: memref<1024x128xbf16, #tpu.memory_space<vmem>>, %arg3: memref<8x128xbf16, #tpu.memory_space<vmem>>, %arg4: memref<1x2x128xf32, #tpu.memory_space<vmem>>) attributes {dimension_semantics = [#tpu.dimension_semantics<parallel>], iteration_bounds = array<i64: 1>, scalar_prefetch = 0 : i64, scratch_operands = 0 : i64, tpu.core_type = #tpu.core_type<tc>, window_params = [{transform_indices = @transform_0, window_bounds = array<i64: 8, 1024>}, {pipeline_mode = #tpu.pipeline_mode<synchronous>, transform_indices = @transform_1, window_bounds = array<i64: 1024, 128>}, {transform_indices = @transform_2, window_bounds = array<i64: 8, 128>}, {transform_indices = @transform_3, window_bounds = array<i64: 1, 2, 128>}]} {
    %c0 = arith.constant 0 : index
    %c0_0 = arith.constant 0 : index
    %0 = vector.load %arg1[%c0, %c0_0] : memref<8x1024xbf16, #tpu.memory_space<vmem>>, vector<8x1024xbf16>
    %c0_1 = arith.constant 0 : index
    %c0_2 = arith.constant 0 : index
    %1 = vector.load %arg2[%c0_1, %c0_2] : memref<1024x128xbf16, #tpu.memory_space<vmem>>, vector<1024x128xbf16>
    %cst = arith.constant dense<0.000000e+00> : vector<8x128xf32>
    %2 = tpu.matmul %0, %1, %cst {dimension_numbers = #tpu.dot_dimension_numbers<[1], [0], [0], [1], [0, 0, 1, 1], [], []>} : vector<8x1024xbf16>, vector<1024x128xbf16>, vector<8x128xf32> -> vector<8x128xf32>
    %cst_3 = arith.constant dense<0.000000e+00> : vector<128xf32>
    %3 = vector.multi_reduction <add>, %2, %cst_3 [0] : vector<8x128xf32> to vector<128xf32>
    %4 = vector.shape_cast %3 : vector<128xf32> to vector<1x128xf32>
    %5 = arith.mulf %2, %2 : vector<8x128xf32>
    %cst_4 = arith.constant dense<0.000000e+00> : vector<128xf32>
    %6 = vector.multi_reduction <add>, %5, %cst_4 [0] : vector<8x128xf32> to vector<128xf32>
    %7 = vector.shape_cast %6 : vector<128xf32> to vector<1x128xf32>
    %8 = tpu.concatenate %4, %7 in 0 : vector<1x128xf32>, vector<1x128xf32> -> vector<2x128xf32>
    %c0_5 = arith.constant 0 : index
    %c0_6 = arith.constant 0 : index
    %c0_7 = arith.constant 0 : index
    %9 = vector.load %arg4[%c0_5, %c0_6, %c0_7] : memref<1x2x128xf32, #tpu.memory_space<vmem>>, vector<1x2x128xf32>
    %10 = vector.shape_cast %9 : vector<1x2x128xf32> to vector<2x128xf32>
    %11 = vector.shape_cast %8 : vector<2x128xf32> to vector<1x2x128xf32>
    tpu.vector_store %arg4[%c0_5, %c0_6, %c0_7], %11 {strides = array<i32>} : memref<1x2x128xf32, #tpu.memory_space<vmem>>, vector<1x2x128xf32>,
    %12 = arith.truncf %2 : vector<8x128xf32> to vector<8x128xbf16>
    %c0_8 = arith.constant 0 : index
    %c0_9 = arith.constant 0 : index
    %13 = vector.load %arg3[%c0_8, %c0_9] : memref<8x128xbf16, #tpu.memory_space<vmem>>, vector<8x128xbf16>
    tpu.vector_store %arg3[%c0_8, %c0_9], %12 {strides = array<i32>} : memref<8x128xbf16, #tpu.memory_space<vmem>>, vector<8x128xbf16>,
    return
  }
  func.func @transform_0(%arg0: i32) -> (i32, i32) {
    %c0_i32 = arith.constant 0 : i32
    %c0_i32_0 = arith.constant 0 : i32
    return %arg0, %c0_i32 : i32, i32
  }
  func.func @transform_1(%arg0: i32) -> (i32, i32) {
    %c0_i32 = arith.constant 0 : i32
    %c0_i32_0 = arith.constant 0 : i32
    %c0_i32_1 = arith.constant 0 : i32
    return %c0_i32, %c0_i32_0 : i32, i32
  }
  func.func @transform_2(%arg0: i32) -> (i32, i32) {
    %c0_i32 = arith.constant 0 : i32
    %c0_i32_0 = arith.constant 0 : i32
    return %arg0, %c0_i32 : i32, i32
  }
  func.func @transform_3(%arg0: i32) -> (i32, i32, i32) {
    %c0_i32 = arith.constant 0 : i32
    %c0_i32_0 = arith.constant 0 : i32
    %c0_i32_1 = arith.constant 0 : i32
    return %arg0, %c0_i32, %c0_i32_0 : i32, i32, i32
  }
}

module attributes {stable_mosaic.version = 11 : i64} {
  func.func @_affine_act_kernel(%arg0: i32, %arg1: memref<8x128xbf16, #tpu.memory_space<vmem>>, %arg2: memref<1x128xf32, #tpu.memory_space<vmem>>, %arg3: memref<1x128xf32, #tpu.memory_space<vmem>>, %arg4: memref<8x128xbf16, #tpu.memory_space<vmem>>) attributes {dimension_semantics = [#tpu.dimension_semantics<parallel>], iteration_bounds = array<i64: 1>, scalar_prefetch = 0 : i64, scratch_operands = 0 : i64, tpu.core_type = #tpu.core_type<tc>, window_params = [{transform_indices = @transform_0, window_bounds = array<i64: 8, 128>}, {pipeline_mode = #tpu.pipeline_mode<synchronous>, transform_indices = @transform_1, window_bounds = array<i64: 1, 128>}, {pipeline_mode = #tpu.pipeline_mode<synchronous>, transform_indices = @transform_2, window_bounds = array<i64: 1, 128>}, {transform_indices = @transform_3, window_bounds = array<i64: 8, 128>}]} {
    %c0 = arith.constant 0 : index
    %c0_0 = arith.constant 0 : index
    %0 = vector.load %arg1[%c0, %c0_0] : memref<8x128xbf16, #tpu.memory_space<vmem>>, vector<8x128xbf16>
    %1 = arith.extf %0 : vector<8x128xbf16> to vector<8x128xf32>
    %c0_1 = arith.constant 0 : index
    %c0_2 = arith.constant 0 : index
    %2 = vector.load %arg2[%c0_1, %c0_2] : memref<1x128xf32, #tpu.memory_space<vmem>>, vector<1x128xf32>
    %3 = vector.broadcast %2 : vector<1x128xf32> to vector<8x128xf32>
    %4 = arith.mulf %1, %3 : vector<8x128xf32>
    %c0_3 = arith.constant 0 : index
    %c0_4 = arith.constant 0 : index
    %5 = vector.load %arg3[%c0_3, %c0_4] : memref<1x128xf32, #tpu.memory_space<vmem>>, vector<1x128xf32>
    %6 = vector.broadcast %5 : vector<1x128xf32> to vector<8x128xf32>
    %7 = arith.addf %4, %6 : vector<8x128xf32>
    %cst = arith.constant 0.000000e+00 : f32
    %8 = vector.broadcast %cst : f32 to vector<8x128xf32>
    %9 = arith.maximumf %7, %8 : vector<8x128xf32>
    %10 = arith.truncf %9 : vector<8x128xf32> to vector<8x128xbf16>
    %c0_5 = arith.constant 0 : index
    %c0_6 = arith.constant 0 : index
    %11 = vector.load %arg4[%c0_5, %c0_6] : memref<8x128xbf16, #tpu.memory_space<vmem>>, vector<8x128xbf16>
    tpu.vector_store %arg4[%c0_5, %c0_6], %10 {strides = array<i32>} : memref<8x128xbf16, #tpu.memory_space<vmem>>, vector<8x128xbf16>,
    return
  }
  func.func @transform_0(%arg0: i32) -> (i32, i32) {
    %c0_i32 = arith.constant 0 : i32
    %c0_i32_0 = arith.constant 0 : i32
    return %arg0, %c0_i32 : i32, i32
  }
  func.func @transform_1(%arg0: i32) -> (i32, i32) {
    %c0_i32 = arith.constant 0 : i32
    %c0_i32_0 = arith.constant 0 : i32
    %c0_i32_1 = arith.constant 0 : i32
    return %c0_i32, %c0_i32_0 : i32, i32
  }
  func.func @transform_2(%arg0: i32) -> (i32, i32) {
    %c0_i32 = arith.constant 0 : i32
    %c0_i32_0 = arith.constant 0 : i32
    %c0_i32_1 = arith.constant 0 : i32
    return %c0_i32, %c0_i32_0 : i32, i32
  }
  func.func @transform_3(%arg0: i32) -> (i32, i32) {
    %c0_i32 = arith.constant 0 : i32
    %c0_i32_0 = arith.constant 0 : i32
    return %arg0, %c0_i32 : i32, i32
  }
}

module attributes {stable_mosaic.version = 11 : i64} {
  func.func @_gemm_stats_kernel(%arg0: i32, %arg1: memref<8x1152xbf16, #tpu.memory_space<vmem>>, %arg2: memref<1152x256xbf16, #tpu.memory_space<vmem>>, %arg3: memref<8x256xbf16, #tpu.memory_space<vmem>>, %arg4: memref<1x2x256xf32, #tpu.memory_space<vmem>>) attributes {dimension_semantics = [#tpu.dimension_semantics<parallel>], iteration_bounds = array<i64: 1>, scalar_prefetch = 0 : i64, scratch_operands = 0 : i64, tpu.core_type = #tpu.core_type<tc>, window_params = [{transform_indices = @transform_0, window_bounds = array<i64: 8, 1152>}, {pipeline_mode = #tpu.pipeline_mode<synchronous>, transform_indices = @transform_1, window_bounds = array<i64: 1152, 256>}, {transform_indices = @transform_2, window_bounds = array<i64: 8, 256>}, {transform_indices = @transform_3, window_bounds = array<i64: 1, 2, 256>}]} {
    %c0 = arith.constant 0 : index
    %c0_0 = arith.constant 0 : index
    %0 = vector.load %arg1[%c0, %c0_0] : memref<8x1152xbf16, #tpu.memory_space<vmem>>, vector<8x1152xbf16>
    %c0_1 = arith.constant 0 : index
    %c0_2 = arith.constant 0 : index
    %1 = vector.load %arg2[%c0_1, %c0_2] : memref<1152x256xbf16, #tpu.memory_space<vmem>>, vector<1152x256xbf16>
    %cst = arith.constant dense<0.000000e+00> : vector<8x256xf32>
    %2 = tpu.matmul %0, %1, %cst {dimension_numbers = #tpu.dot_dimension_numbers<[1], [0], [0], [1], [0, 0, 1, 1], [], []>} : vector<8x1152xbf16>, vector<1152x256xbf16>, vector<8x256xf32> -> vector<8x256xf32>
    %cst_3 = arith.constant dense<0.000000e+00> : vector<256xf32>
    %3 = vector.multi_reduction <add>, %2, %cst_3 [0] : vector<8x256xf32> to vector<256xf32>
    %4 = vector.shape_cast %3 : vector<256xf32> to vector<1x256xf32>
    %5 = arith.mulf %2, %2 : vector<8x256xf32>
    %cst_4 = arith.constant dense<0.000000e+00> : vector<256xf32>
    %6 = vector.multi_reduction <add>, %5, %cst_4 [0] : vector<8x256xf32> to vector<256xf32>
    %7 = vector.shape_cast %6 : vector<256xf32> to vector<1x256xf32>
    %8 = tpu.concatenate %4, %7 in 0 : vector<1x256xf32>, vector<1x256xf32> -> vector<2x256xf32>
    %c0_5 = arith.constant 0 : index
    %c0_6 = arith.constant 0 : index
    %c0_7 = arith.constant 0 : index
    %9 = vector.load %arg4[%c0_5, %c0_6, %c0_7] : memref<1x2x256xf32, #tpu.memory_space<vmem>>, vector<1x2x256xf32>
    %10 = vector.shape_cast %9 : vector<1x2x256xf32> to vector<2x256xf32>
    %11 = vector.shape_cast %8 : vector<2x256xf32> to vector<1x2x256xf32>
    tpu.vector_store %arg4[%c0_5, %c0_6, %c0_7], %11 {strides = array<i32>} : memref<1x2x256xf32, #tpu.memory_space<vmem>>, vector<1x2x256xf32>,
    %12 = arith.truncf %2 : vector<8x256xf32> to vector<8x256xbf16>
    %c0_8 = arith.constant 0 : index
    %c0_9 = arith.constant 0 : index
    %13 = vector.load %arg3[%c0_8, %c0_9] : memref<8x256xbf16, #tpu.memory_space<vmem>>, vector<8x256xbf16>
    tpu.vector_store %arg3[%c0_8, %c0_9], %12 {strides = array<i32>} : memref<8x256xbf16, #tpu.memory_space<vmem>>, vector<8x256xbf16>,
    return
  }
  func.func @transform_0(%arg0: i32) -> (i32, i32) {
    %c0_i32 = arith.constant 0 : i32
    %c0_i32_0 = arith.constant 0 : i32
    return %arg0, %c0_i32 : i32, i32
  }
  func.func @transform_1(%arg0: i32) -> (i32, i32) {
    %c0_i32 = arith.constant 0 : i32
    %c0_i32_0 = arith.constant 0 : i32
    %c0_i32_1 = arith.constant 0 : i32
    return %c0_i32, %c0_i32_0 : i32, i32
  }
  func.func @transform_2(%arg0: i32) -> (i32, i32) {
    %c0_i32 = arith.constant 0 : i32
    %c0_i32_0 = arith.constant 0 : i32
    return %arg0, %c0_i32 : i32, i32
  }
  func.func @transform_3(%arg0: i32) -> (i32, i32, i32) {
    %c0_i32 = arith.constant 0 : i32
    %c0_i32_0 = arith.constant 0 : i32
    %c0_i32_1 = arith.constant 0 : i32
    return %arg0, %c0_i32, %c0_i32_0 : i32, i32, i32
  }
}

module attributes {stable_mosaic.version = 11 : i64} {
  func.func @_affine_act_kernel(%arg0: i32, %arg1: memref<8x256xbf16, #tpu.memory_space<vmem>>, %arg2: memref<1x256xf32, #tpu.memory_space<vmem>>, %arg3: memref<1x256xf32, #tpu.memory_space<vmem>>, %arg4: memref<8x256xbf16, #tpu.memory_space<vmem>>) attributes {dimension_semantics = [#tpu.dimension_semantics<parallel>], iteration_bounds = array<i64: 1>, scalar_prefetch = 0 : i64, scratch_operands = 0 : i64, tpu.core_type = #tpu.core_type<tc>, window_params = [{transform_indices = @transform_0, window_bounds = array<i64: 8, 256>}, {pipeline_mode = #tpu.pipeline_mode<synchronous>, transform_indices = @transform_1, window_bounds = array<i64: 1, 256>}, {pipeline_mode = #tpu.pipeline_mode<synchronous>, transform_indices = @transform_2, window_bounds = array<i64: 1, 256>}, {transform_indices = @transform_3, window_bounds = array<i64: 8, 256>}]} {
    %c0 = arith.constant 0 : index
    %c0_0 = arith.constant 0 : index
    %0 = vector.load %arg1[%c0, %c0_0] : memref<8x256xbf16, #tpu.memory_space<vmem>>, vector<8x256xbf16>
    %1 = arith.extf %0 : vector<8x256xbf16> to vector<8x256xf32>
    %c0_1 = arith.constant 0 : index
    %c0_2 = arith.constant 0 : index
    %2 = vector.load %arg2[%c0_1, %c0_2] : memref<1x256xf32, #tpu.memory_space<vmem>>, vector<1x256xf32>
    %3 = vector.broadcast %2 : vector<1x256xf32> to vector<8x256xf32>
    %4 = arith.mulf %1, %3 : vector<8x256xf32>
    %c0_3 = arith.constant 0 : index
    %c0_4 = arith.constant 0 : index
    %5 = vector.load %arg3[%c0_3, %c0_4] : memref<1x256xf32, #tpu.memory_space<vmem>>, vector<1x256xf32>
    %6 = vector.broadcast %5 : vector<1x256xf32> to vector<8x256xf32>
    %7 = arith.addf %4, %6 : vector<8x256xf32>
    %cst = arith.constant 0.000000e+00 : f32
    %8 = vector.broadcast %cst : f32 to vector<8x256xf32>
    %9 = arith.maximumf %7, %8 : vector<8x256xf32>
    %10 = arith.truncf %9 : vector<8x256xf32> to vector<8x256xbf16>
    %c0_5 = arith.constant 0 : index
    %c0_6 = arith.constant 0 : index
    %11 = vector.load %arg4[%c0_5, %c0_6] : memref<8x256xbf16, #tpu.memory_space<vmem>>, vector<8x256xbf16>
    tpu.vector_store %arg4[%c0_5, %c0_6], %10 {strides = array<i32>} : memref<8x256xbf16, #tpu.memory_space<vmem>>, vector<8x256xbf16>,
    return
  }
  func.func @transform_0(%arg0: i32) -> (i32, i32) {
    %c0_i32 = arith.constant 0 : i32
    %c0_i32_0 = arith.constant 0 : i32
    return %arg0, %c0_i32 : i32, i32
  }
  func.func @transform_1(%arg0: i32) -> (i32, i32) {
    %c0_i32 = arith.constant 0 : i32
    %c0_i32_0 = arith.constant 0 : i32
    %c0_i32_1 = arith.constant 0 : i32
    return %c0_i32, %c0_i32_0 : i32, i32
  }
  func.func @transform_2(%arg0: i32) -> (i32, i32) {
    %c0_i32 = arith.constant 0 : i32
    %c0_i32_0 = arith.constant 0 : i32
    %c0_i32_1 = arith.constant 0 : i32
    return %c0_i32, %c0_i32_0 : i32, i32
  }
  func.func @transform_3(%arg0: i32) -> (i32, i32) {
    %c0_i32 = arith.constant 0 : i32
    %c0_i32_0 = arith.constant 0 : i32
    return %arg0, %c0_i32 : i32, i32
  }
}

module attributes {stable_mosaic.version = 11 : i64} {
  func.func @_gemm_stats_kernel(%arg0: i32, %arg1: memref<8x640xbf16, #tpu.memory_space<vmem>>, %arg2: memref<640x128xbf16, #tpu.memory_space<vmem>>, %arg3: memref<8x128xbf16, #tpu.memory_space<vmem>>, %arg4: memref<1x2x128xf32, #tpu.memory_space<vmem>>) attributes {dimension_semantics = [#tpu.dimension_semantics<parallel>], iteration_bounds = array<i64: 1>, scalar_prefetch = 0 : i64, scratch_operands = 0 : i64, tpu.core_type = #tpu.core_type<tc>, window_params = [{transform_indices = @transform_0, window_bounds = array<i64: 8, 640>}, {pipeline_mode = #tpu.pipeline_mode<synchronous>, transform_indices = @transform_1, window_bounds = array<i64: 640, 128>}, {transform_indices = @transform_2, window_bounds = array<i64: 8, 128>}, {transform_indices = @transform_3, window_bounds = array<i64: 1, 2, 128>}]} {
    %c0 = arith.constant 0 : index
    %c0_0 = arith.constant 0 : index
    %0 = vector.load %arg1[%c0, %c0_0] : memref<8x640xbf16, #tpu.memory_space<vmem>>, vector<8x640xbf16>
    %c0_1 = arith.constant 0 : index
    %c0_2 = arith.constant 0 : index
    %1 = vector.load %arg2[%c0_1, %c0_2] : memref<640x128xbf16, #tpu.memory_space<vmem>>, vector<640x128xbf16>
    %cst = arith.constant dense<0.000000e+00> : vector<8x128xf32>
    %2 = tpu.matmul %0, %1, %cst {dimension_numbers = #tpu.dot_dimension_numbers<[1], [0], [0], [1], [0, 0, 1, 1], [], []>} : vector<8x640xbf16>, vector<640x128xbf16>, vector<8x128xf32> -> vector<8x128xf32>
    %cst_3 = arith.constant dense<0.000000e+00> : vector<128xf32>
    %3 = vector.multi_reduction <add>, %2, %cst_3 [0] : vector<8x128xf32> to vector<128xf32>
    %4 = vector.shape_cast %3 : vector<128xf32> to vector<1x128xf32>
    %5 = arith.mulf %2, %2 : vector<8x128xf32>
    %cst_4 = arith.constant dense<0.000000e+00> : vector<128xf32>
    %6 = vector.multi_reduction <add>, %5, %cst_4 [0] : vector<8x128xf32> to vector<128xf32>
    %7 = vector.shape_cast %6 : vector<128xf32> to vector<1x128xf32>
    %8 = tpu.concatenate %4, %7 in 0 : vector<1x128xf32>, vector<1x128xf32> -> vector<2x128xf32>
    %c0_5 = arith.constant 0 : index
    %c0_6 = arith.constant 0 : index
    %c0_7 = arith.constant 0 : index
    %9 = vector.load %arg4[%c0_5, %c0_6, %c0_7] : memref<1x2x128xf32, #tpu.memory_space<vmem>>, vector<1x2x128xf32>
    %10 = vector.shape_cast %9 : vector<1x2x128xf32> to vector<2x128xf32>
    %11 = vector.shape_cast %8 : vector<2x128xf32> to vector<1x2x128xf32>
    tpu.vector_store %arg4[%c0_5, %c0_6, %c0_7], %11 {strides = array<i32>} : memref<1x2x128xf32, #tpu.memory_space<vmem>>, vector<1x2x128xf32>,
    %12 = arith.truncf %2 : vector<8x128xf32> to vector<8x128xbf16>
    %c0_8 = arith.constant 0 : index
    %c0_9 = arith.constant 0 : index
    %13 = vector.load %arg3[%c0_8, %c0_9] : memref<8x128xbf16, #tpu.memory_space<vmem>>, vector<8x128xbf16>
    tpu.vector_store %arg3[%c0_8, %c0_9], %12 {strides = array<i32>} : memref<8x128xbf16, #tpu.memory_space<vmem>>, vector<8x128xbf16>,
    return
  }
  func.func @transform_0(%arg0: i32) -> (i32, i32) {
    %c0_i32 = arith.constant 0 : i32
    %c0_i32_0 = arith.constant 0 : i32
    return %arg0, %c0_i32 : i32, i32
  }
  func.func @transform_1(%arg0: i32) -> (i32, i32) {
    %c0_i32 = arith.constant 0 : i32
    %c0_i32_0 = arith.constant 0 : i32
    %c0_i32_1 = arith.constant 0 : i32
    return %c0_i32, %c0_i32_0 : i32, i32
  }
  func.func @transform_2(%arg0: i32) -> (i32, i32) {
    %c0_i32 = arith.constant 0 : i32
    %c0_i32_0 = arith.constant 0 : i32
    return %arg0, %c0_i32 : i32, i32
  }
  func.func @transform_3(%arg0: i32) -> (i32, i32, i32) {
    %c0_i32 = arith.constant 0 : i32
    %c0_i32_0 = arith.constant 0 : i32
    %c0_i32_1 = arith.constant 0 : i32
    return %arg0, %c0_i32, %c0_i32_0 : i32, i32, i32
  }
}

module attributes {stable_mosaic.version = 11 : i64} {
  func.func @_gemm_stats_kernel(%arg0: i32, %arg1: memref<16x384xbf16, #tpu.memory_space<vmem>>, %arg2: memref<384x64xbf16, #tpu.memory_space<vmem>>, %arg3: memref<16x64xbf16, #tpu.memory_space<vmem>>, %arg4: memref<1x2x64xf32, #tpu.memory_space<vmem>>) attributes {dimension_semantics = [#tpu.dimension_semantics<parallel>], iteration_bounds = array<i64: 2>, scalar_prefetch = 0 : i64, scratch_operands = 0 : i64, tpu.core_type = #tpu.core_type<tc>, window_params = [{transform_indices = @transform_0, window_bounds = array<i64: 16, 384>}, {pipeline_mode = #tpu.pipeline_mode<synchronous>, transform_indices = @transform_1, window_bounds = array<i64: 384, 64>}, {transform_indices = @transform_2, window_bounds = array<i64: 16, 64>}, {transform_indices = @transform_3, window_bounds = array<i64: 1, 2, 64>}]} {
    %c0 = arith.constant 0 : index
    %c0_0 = arith.constant 0 : index
    %0 = vector.load %arg1[%c0, %c0_0] : memref<16x384xbf16, #tpu.memory_space<vmem>>, vector<16x384xbf16>
    %c0_1 = arith.constant 0 : index
    %c0_2 = arith.constant 0 : index
    %1 = vector.load %arg2[%c0_1, %c0_2] : memref<384x64xbf16, #tpu.memory_space<vmem>>, vector<384x64xbf16>
    %cst = arith.constant dense<0.000000e+00> : vector<16x64xf32>
    %2 = tpu.matmul %0, %1, %cst {dimension_numbers = #tpu.dot_dimension_numbers<[1], [0], [0], [1], [0, 0, 1, 1], [], []>} : vector<16x384xbf16>, vector<384x64xbf16>, vector<16x64xf32> -> vector<16x64xf32>
    %cst_3 = arith.constant dense<0.000000e+00> : vector<64xf32>
    %3 = vector.multi_reduction <add>, %2, %cst_3 [0] : vector<16x64xf32> to vector<64xf32>
    %4 = vector.shape_cast %3 : vector<64xf32> to vector<1x64xf32>
    %5 = arith.mulf %2, %2 : vector<16x64xf32>
    %cst_4 = arith.constant dense<0.000000e+00> : vector<64xf32>
    %6 = vector.multi_reduction <add>, %5, %cst_4 [0] : vector<16x64xf32> to vector<64xf32>
    %7 = vector.shape_cast %6 : vector<64xf32> to vector<1x64xf32>
    %8 = tpu.concatenate %4, %7 in 0 : vector<1x64xf32>, vector<1x64xf32> -> vector<2x64xf32>
    %c0_5 = arith.constant 0 : index
    %c0_6 = arith.constant 0 : index
    %c0_7 = arith.constant 0 : index
    %9 = vector.load %arg4[%c0_5, %c0_6, %c0_7] : memref<1x2x64xf32, #tpu.memory_space<vmem>>, vector<1x2x64xf32>
    %10 = vector.shape_cast %9 : vector<1x2x64xf32> to vector<2x64xf32>
    %11 = vector.shape_cast %8 : vector<2x64xf32> to vector<1x2x64xf32>
    tpu.vector_store %arg4[%c0_5, %c0_6, %c0_7], %11 {strides = array<i32>} : memref<1x2x64xf32, #tpu.memory_space<vmem>>, vector<1x2x64xf32>,
    %12 = arith.truncf %2 : vector<16x64xf32> to vector<16x64xbf16>
    %c0_8 = arith.constant 0 : index
    %c0_9 = arith.constant 0 : index
    %13 = vector.load %arg3[%c0_8, %c0_9] : memref<16x64xbf16, #tpu.memory_space<vmem>>, vector<16x64xbf16>
    tpu.vector_store %arg3[%c0_8, %c0_9], %12 {strides = array<i32>} : memref<16x64xbf16, #tpu.memory_space<vmem>>, vector<16x64xbf16>,
    return
  }
  func.func @transform_0(%arg0: i32) -> (i32, i32) {
    %c0_i32 = arith.constant 0 : i32
    %c0_i32_0 = arith.constant 0 : i32
    return %arg0, %c0_i32 : i32, i32
  }
  func.func @transform_1(%arg0: i32) -> (i32, i32) {
    %c0_i32 = arith.constant 0 : i32
    %c0_i32_0 = arith.constant 0 : i32
    %c0_i32_1 = arith.constant 0 : i32
    return %c0_i32, %c0_i32_0 : i32, i32
  }
  func.func @transform_2(%arg0: i32) -> (i32, i32) {
    %c0_i32 = arith.constant 0 : i32
    %c0_i32_0 = arith.constant 0 : i32
    return %arg0, %c0_i32 : i32, i32
  }
  func.func @transform_3(%arg0: i32) -> (i32, i32, i32) {
    %c0_i32 = arith.constant 0 : i32
    %c0_i32_0 = arith.constant 0 : i32
    %c0_i32_1 = arith.constant 0 : i32
    return %arg0, %c0_i32, %c0_i32_0 : i32, i32, i32
  }
}

module attributes {stable_mosaic.version = 11 : i64} {
  func.func @_affine_act_kernel(%arg0: i32, %arg1: memref<16x64xbf16, #tpu.memory_space<vmem>>, %arg2: memref<1x64xf32, #tpu.memory_space<vmem>>, %arg3: memref<1x64xf32, #tpu.memory_space<vmem>>, %arg4: memref<16x64xbf16, #tpu.memory_space<vmem>>) attributes {dimension_semantics = [#tpu.dimension_semantics<parallel>], iteration_bounds = array<i64: 2>, scalar_prefetch = 0 : i64, scratch_operands = 0 : i64, tpu.core_type = #tpu.core_type<tc>, window_params = [{transform_indices = @transform_0, window_bounds = array<i64: 16, 64>}, {pipeline_mode = #tpu.pipeline_mode<synchronous>, transform_indices = @transform_1, window_bounds = array<i64: 1, 64>}, {pipeline_mode = #tpu.pipeline_mode<synchronous>, transform_indices = @transform_2, window_bounds = array<i64: 1, 64>}, {transform_indices = @transform_3, window_bounds = array<i64: 16, 64>}]} {
    %c0 = arith.constant 0 : index
    %c0_0 = arith.constant 0 : index
    %0 = vector.load %arg1[%c0, %c0_0] : memref<16x64xbf16, #tpu.memory_space<vmem>>, vector<16x64xbf16>
    %1 = arith.extf %0 : vector<16x64xbf16> to vector<16x64xf32>
    %c0_1 = arith.constant 0 : index
    %c0_2 = arith.constant 0 : index
    %2 = vector.load %arg2[%c0_1, %c0_2] : memref<1x64xf32, #tpu.memory_space<vmem>>, vector<1x64xf32>
    %3 = vector.broadcast %2 : vector<1x64xf32> to vector<16x64xf32>
    %4 = arith.mulf %1, %3 : vector<16x64xf32>
    %c0_3 = arith.constant 0 : index
    %c0_4 = arith.constant 0 : index
    %5 = vector.load %arg3[%c0_3, %c0_4] : memref<1x64xf32, #tpu.memory_space<vmem>>, vector<1x64xf32>
    %6 = vector.broadcast %5 : vector<1x64xf32> to vector<16x64xf32>
    %7 = arith.addf %4, %6 : vector<16x64xf32>
    %cst = arith.constant 0.000000e+00 : f32
    %8 = vector.broadcast %cst : f32 to vector<16x64xf32>
    %9 = arith.maximumf %7, %8 : vector<16x64xf32>
    %10 = arith.truncf %9 : vector<16x64xf32> to vector<16x64xbf16>
    %c0_5 = arith.constant 0 : index
    %c0_6 = arith.constant 0 : index
    %11 = vector.load %arg4[%c0_5, %c0_6] : memref<16x64xbf16, #tpu.memory_space<vmem>>, vector<16x64xbf16>
    tpu.vector_store %arg4[%c0_5, %c0_6], %10 {strides = array<i32>} : memref<16x64xbf16, #tpu.memory_space<vmem>>, vector<16x64xbf16>,
    return
  }
  func.func @transform_0(%arg0: i32) -> (i32, i32) {
    %c0_i32 = arith.constant 0 : i32
    %c0_i32_0 = arith.constant 0 : i32
    return %arg0, %c0_i32 : i32, i32
  }
  func.func @transform_1(%arg0: i32) -> (i32, i32) {
    %c0_i32 = arith.constant 0 : i32
    %c0_i32_0 = arith.constant 0 : i32
    %c0_i32_1 = arith.constant 0 : i32
    return %c0_i32, %c0_i32_0 : i32, i32
  }
  func.func @transform_2(%arg0: i32) -> (i32, i32) {
    %c0_i32 = arith.constant 0 : i32
    %c0_i32_0 = arith.constant 0 : i32
    %c0_i32_1 = arith.constant 0 : i32
    return %c0_i32, %c0_i32_0 : i32, i32
  }
  func.func @transform_3(%arg0: i32) -> (i32, i32) {
    %c0_i32 = arith.constant 0 : i32
    %c0_i32_0 = arith.constant 0 : i32
    return %arg0, %c0_i32 : i32, i32
  }
}

module attributes {stable_mosaic.version = 11 : i64} {
  func.func @_gemm_bias_act_kernel(%arg0: i32, %arg1: memref<64x144xbf16, #tpu.memory_space<vmem>>, %arg2: memref<144x12xbf16, #tpu.memory_space<vmem>>, %arg3: memref<1x12xf32, #tpu.memory_space<vmem>>, %arg4: memref<64x12xbf16, #tpu.memory_space<vmem>>) attributes {dimension_semantics = [#tpu.dimension_semantics<parallel>], iteration_bounds = array<i64: 2>, scalar_prefetch = 0 : i64, scratch_operands = 0 : i64, tpu.core_type = #tpu.core_type<tc>, window_params = [{transform_indices = @transform_0, window_bounds = array<i64: 64, 144>}, {pipeline_mode = #tpu.pipeline_mode<synchronous>, transform_indices = @transform_1, window_bounds = array<i64: 144, 12>}, {pipeline_mode = #tpu.pipeline_mode<synchronous>, transform_indices = @transform_2, window_bounds = array<i64: 1, 12>}, {transform_indices = @transform_3, window_bounds = array<i64: 64, 12>}]} {
    %c0 = arith.constant 0 : index
    %c0_0 = arith.constant 0 : index
    %0 = vector.load %arg1[%c0, %c0_0] : memref<64x144xbf16, #tpu.memory_space<vmem>>, vector<64x144xbf16>
    %c0_1 = arith.constant 0 : index
    %c0_2 = arith.constant 0 : index
    %1 = vector.load %arg2[%c0_1, %c0_2] : memref<144x12xbf16, #tpu.memory_space<vmem>>, vector<144x12xbf16>
    %cst = arith.constant dense<0.000000e+00> : vector<64x12xf32>
    %2 = tpu.matmul %0, %1, %cst {dimension_numbers = #tpu.dot_dimension_numbers<[1], [0], [0], [1], [0, 0, 1, 1], [], []>} : vector<64x144xbf16>, vector<144x12xbf16>, vector<64x12xf32> -> vector<64x12xf32>
    %c0_3 = arith.constant 0 : index
    %c0_4 = arith.constant 0 : index
    %3 = vector.load %arg3[%c0_3, %c0_4] : memref<1x12xf32, #tpu.memory_space<vmem>>, vector<1x12xf32>
    %4 = vector.broadcast %3 : vector<1x12xf32> to vector<64x12xf32>
    %5 = arith.addf %2, %4 : vector<64x12xf32>
    %6 = math.tanh %5 : vector<64x12xf32>
    %7 = arith.truncf %6 : vector<64x12xf32> to vector<64x12xbf16>
    %c0_5 = arith.constant 0 : index
    %c0_6 = arith.constant 0 : index
    %8 = vector.load %arg4[%c0_5, %c0_6] : memref<64x12xbf16, #tpu.memory_space<vmem>>, vector<64x12xbf16>
    tpu.vector_store %arg4[%c0_5, %c0_6], %7 {strides = array<i32>} : memref<64x12xbf16, #tpu.memory_space<vmem>>, vector<64x12xbf16>,
    return
  }
  func.func @transform_0(%arg0: i32) -> (i32, i32) {
    %c0_i32 = arith.constant 0 : i32
    %c0_i32_0 = arith.constant 0 : i32
    return %arg0, %c0_i32 : i32, i32
  }
  func.func @transform_1(%arg0: i32) -> (i32, i32) {
    %c0_i32 = arith.constant 0 : i32
    %c0_i32_0 = arith.constant 0 : i32
    %c0_i32_1 = arith.constant 0 : i32
    return %c0_i32, %c0_i32_0 : i32, i32
  }
  func.func @transform_2(%arg0: i32) -> (i32, i32) {
    %c0_i32 = arith.constant 0 : i32
    %c0_i32_0 = arith.constant 0 : i32
    %c0_i32_1 = arith.constant 0 : i32
    return %c0_i32, %c0_i32_0 : i32, i32
  }
  func.func @transform_3(%arg0: i32) -> (i32, i32) {
    %c0_i32 = arith.constant 0 : i32
    %c0_i32_0 = arith.constant 0 : i32
    return %arg0, %c0_i32 : i32, i32
  }
}

</mosaic_0001>

<bundles_post_ra>
// kernel: autoencoder_forward.16
= control target key start
LH: loop header
LB: loop body
LE: loop exit
PB: predicated region body
PF: predicated region fallthrough
CT: control target
= control target key end

     0   :  { %s409_s12 = smov 0   ;;  %s447_s0 = inlined_call_operand.vmem [shape: bf16[128,16], index: 0, kind: input, shape index: {}, may-alias: {0,3}]   ;;  %s448_s1 = inlined_call_operand.vmem [shape: f32[1,16], index: 1, kind: input, shape index: {}]   ;;  %s449_s2 = inlined_call_operand.vmem [shape: f32[1,16], index: 2, kind: input, shape index: {}]   ;;  %s450_s3 = inlined_call_operand.vmem [shape: bf16[128,16], index: 3, kind: output, shape index: {}, may-alias: {0,3}]  }
   0x1 LB: > { %s325_s13 = sadd.s32 4294967295, %s387_s12   ;;  %p329_p0 = scmp.ge.s32.totalorder %s387_s12, 1  ;;  %s387_s12 = sphi %s409_s12, %s13_s12  }
   0x2   : > { %p138_p1 = scmp.lt.s32.totalorder %s387_s12, 3 }
   0x4   : > { %p139_p2 = pnand %p329_p0, %p138_p1 }
   0x5   : > { %s330_s14 = sshll.u32 (!%p139_p2), %s325_s13, 3  ;;  %v334_v0 = vld [vmem:[%s448_s1] ss:$0 sm:$0xff] (!%p139_p2)  ;;  %vm260_vm0 = vcmask (!%p139_p2), 125952  }
   0x6   : > { %142 = sbr.rel (%p139_p2) target bundleno = 31 (0x1f), region = 32  ;;  %p163_p3 = scmp.lt.s32.totalorder (!%p139_p2), %s330_s14, 15  ;;  %v335_v9 = vld [vmem:[%s449_s2] ss:$0 sm:$0xff] (!%p139_p2) }
   0xd   : > { %s452_s14 = smov (!%p163_p3, %s330_s14), 15 }
   0xe   : > { %s331_s15 = sshll.u32 %s452_s14, 2 }
   0xf   : > { %s166_s18 = scalar_lea.vmem %s447_s0, %s331_s15  ;;  %s172_s25 = scalar_lea.vmem %s450_s3, %s331_s15 }
  0x10   : > { %v355_v1 = vld [vmem:[%s166_s18] sm:$0xff]   ;;  %v370_v2 = vld [vmem:[%s166_s18 + $0x8] sm:$0xff]   ;;  %v371_v3 = vld [vmem:[%s166_s18 + $0x10] sm:$0xff]  }
  0x11   : > { %v356_v4 = vunpack.c.l.bf16 %v355_v1  ;;  %v372_v5 = vld [vmem:[%s166_s18 + $0x18] sm:$0xff]   ;;  %v357_v6 = vunpack.c.h.bf16 %v355_v1  ;;  %v360_v7 = vunpack.c.l.bf16 %v370_v2  ;;  %v361_v8 = vunpack.c.h.bf16 %v370_v2 }
  0x12   : > { %v364_v10 = vunpack.c.l.bf16 %v371_v3  ;;  %v365_v11 = vunpack.c.h.bf16 %v371_v3  ;;  %v368_v12 = vunpack.c.l.bf16 %v372_v5  ;;  %v369_v13 = vunpack.c.h.bf16 %v372_v5 }
  0x13   : > { %v197_v14 = vmul.f32 %v356_v4, %v334_v0  ;;  %v198_v15 = vmul.f32 %v357_v6, %v334_v0  ;;  %v199_v16 = vmul.f32 %v360_v7, %v334_v0  ;;  %v200_v17 = vmul.f32 %v361_v8, %v334_v0 }
  0x14   : > { %v201_v18 = vmul.f32 %v364_v10, %v334_v0  ;;  %v202_v19 = vmul.f32 %v365_v11, %v334_v0  ;;  %v203_v20 = vmul.f32 %v368_v12, %v334_v0  ;;  %v204_v21 = vmul.f32 %v369_v13, %v334_v0 }
  0x15   : > { %v212_v22 = vadd.f32 %v335_v9, %v197_v14  ;;  %v213_v23 = vadd.f32 %v335_v9, %v198_v15  ;;  %v214_v24 = vadd.f32 %v335_v9, %v199_v16  ;;  %v215_v25 = vadd.f32 %v335_v9, %v200_v17 }
  0x16   : > { %v216_v26 = vadd.f32 %v335_v9, %v201_v18  ;;  %v217_v27 = vadd.f32 %v335_v9, %v202_v19  ;;  %v218_v28 = vadd.f32 %v335_v9, %v203_v20  ;;  %v219_v29 = vadd.f32 %v335_v9, %v204_v21 }
  0x17   : > { %v220_v30 = vmax.f32 %v212_v22, 0.0  ;;  %v221_v31 = vmax.f32 %v213_v23, 0.0  ;;  %v222_v32 = vmax.f32 %v214_v24, 0.0  ;;  %v223_v33 = vmax.f32 %v215_v25, 0.0 }
  0x18   : > { %v224_v34 = vmax.f32 %v216_v26, 0.0  ;;  %v225_v35 = vmax.f32 %v217_v27, 0.0  ;;  %v226_v36 = vmax.f32 %v218_v28, 0.0  ;;  %v227_v37 = vmax.f32 %v219_v29, 0.0 }
  0x19   : > { %v346_v38 = vpack.c.bf16 %v220_v30, %v220_v30  ;;  %v347_v39 = vpack.c.bf16 %v221_v31, %v221_v31  ;;  %v348_v40 = vpack.c.bf16 %v222_v32, %v222_v32  ;;  %v349_v41 = vpack.c.bf16 %v223_v33, %v223_v33 }
  0x1a   : > { %v350_v42 = vpack.c.bf16 %v224_v34, %v224_v34  ;;  %v351_v43 = vpack.c.bf16 %v225_v35, %v225_v35  ;;  %v352_v44 = vpack.c.bf16 %v226_v36, %v226_v36  ;;  %v353_v45 = vpack.c.bf16 %v227_v37, %v227_v37 }
  0x1b   : > { %261 = vst.msk [vmem:[%s172_s25] sm:$0xf] %vm260_vm0, %v346_v38  ;;  %262 = vst.msk [vmem:[%s172_s25 + $0x4] sm:$0xf] %vm260_vm0, %v347_v39 }
  0x1c   : > { %263 = vst.msk [vmem:[%s172_s25 + $0x8] sm:$0xf] %vm260_vm0, %v348_v40  ;;  %264 = vst.msk [vmem:[%s172_s25 + $0xc] sm:$0xf] %vm260_vm0, %v349_v41 }
  0x1d   : > { %265 = vst.msk [vmem:[%s172_s25 + $0x10] sm:$0xf] %vm260_vm0, %v350_v42  ;;  %266 = vst.msk [vmem:[%s172_s25 + $0x14] sm:$0xf] %vm260_vm0, %v351_v43 }
  0x1e   : > { %267 = vst.msk [vmem:[%s172_s25 + $0x18] sm:$0xf] %vm260_vm0, %v352_v44  ;;  %268 = vst.msk [vmem:[%s172_s25 + $0x1c] sm:$0xf] %vm260_vm0, %v353_v45 }
  0x1f PF: > { %s13_s12 = sadd.s32 1, %s387_s12  }
  0x20   : > { %p10_p4 = scmp.ge.s32.totalorder %s13_s12, 4  }
  0x22   :  { %12 = sbr.rel (!%p10_p4) target bundleno = 1 (0x1), region = 62 }

// kernel: autoencoder_forward.15
= control target key start
LH: loop header
LB: loop body
LE: loop exit
PB: predicated region body
PF: predicated region fallthrough
CT: control target
= control target key end

     0   :  { %s608_s12 = smov 0   ;;  %s676_s0 = inlined_call_operand.vmem [shape: bf16[128,48], index: 0, kind: input, shape index: {}]   ;;  %s677_s1 = inlined_call_operand.vmem [shape: bf16[48,16], index: 1, kind: input, shape index: {}]   ;;  %s678_s2 = inlined_call_operand.vmem [shape: bf16[128,16], index: 2, kind: output, shape index: {0}]   ;;  %s679_s3 = inlined_call_operand.vmem [shape: f32[2,2,16], index: 3, kind: output, shape index: {1}]  }
   0x1 LB: > { %s614_s13 = sadd.s32 4294967295, %s586_s12   ;;  %p503_p0 = scmp.ge.s32.totalorder %s586_s12, 1  ;;  %s586_s12 = sphi %s608_s12, %s14_s12  }
   0x2   : > { %p141_p1 = scmp.lt.s32.totalorder %s586_s12, 3 }
   0x4   : > { %p142_p2 = pnand %p503_p0, %p141_p1 }
   0x5   : > { %v573_v0 = vld [vmem:[%s677_s1] sm:$0xff] (!%p142_p2)   ;;  %s504_s16 = sshll.u32 (!%p142_p2), %s614_s13, 3  ;;  %v574_v1 = vld [vmem:[%s677_s1 + $0x8] sm:$0xff] (!%p142_p2)   ;;  %v575_v2 = vld [vmem:[%s677_s1 + $0x10] sm:$0xff] (!%p142_p2)   ;;  %vm238_vm0 = vcmask (!%p142_p2), 392192   ;;  %vm403_vm1 = vcmask (!%p142_p2), 125952  }
   0x6   : > { %145 = sbr.rel (%p142_p2) target bundleno = 264 (0x108), region = 28  ;;  %p170_p3 = scmp.lt.s32.totalorder (!%p142_p2), %s504_s16, 15  ;;  %545 = vmatprep.subr.bf16.mxu0 (!%p142_p2), %v573_v0  ;;  %559 = vmatprep.subr.bf16.mxu1 (!%p142_p2), %v573_v0  ;;  %vm316_vm2 = vcmask (!%p142_p2), 130048   ;;  %vm367_vm3 = vcmask (!%p142_p2), 1040384   ;;  %vm369_vm4 = vcmask (!%p142_p2), 123904  }
   0x7   : > { %546 = vmatpush3.bf16.msra.mxu0 (!%p142_p2), %v573_v0  ;;  %562 = vmatpush3.bf16.msra.mxu1 (!%p142_p2), %v573_v0  ;;  %p181_p4 = scmp.lt.s32.totalorder (!%p142_p2), %s614_s13, 1 }
   0x8   : > { %547 = vmatprep.subr.bf16.mxu0 (!%p142_p2), %v574_v1  ;;  %560 = vmatprep.subr.bf16.mxu1 (!%p142_p2), %v574_v1 }
   0xb   : > { %548 = vmatpush3.bf16.msra.mxu0 (!%p142_p2), %v574_v1  ;;  %563 = vmatpush3.bf16.msra.mxu1 (!%p142_p2), %v574_v1 }
   0xc   : > { %549 = vmatprep.subr.bf16.mxu0 (!%p142_p2), %v575_v2  ;;  %561 = vmatprep.subr.bf16.mxu1 (!%p142_p2), %v575_v2 }
   0xd   : > { %s681_s16 = smov (!%p170_p3, %s504_s16), 15  ;;  %s683_s13 = smov (!%p181_p4, %s614_s13), 1 }
   0xe   : > { %s505_s21 = sshll.u32 %s681_s16, 2  ;;  %s508_s28 = sshll.u32 %s683_s13, 1 }
   0xf   : > { %s173_s24 = scalar_lea.vmem %s676_s0, %s505_s21  ;;  %550 = vmatpush3.bf16.msra.mxu0 %v575_v2  ;;  %564 = vmatpush3.bf16.msra.mxu1 %v575_v2  ;;  %s634_s27 = scalar_lea.vmem %s678_s2, %s505_s21 }
  0x10   : > { %v576_v3 = vld [vmem:[%s173_s24] sm:$0xff]   ;;  %v577_v4 = vld [vmem:[%s173_s24 + $0x8] sm:$0xff]   ;;  %v578_v5 = vld [vmem:[%s173_s24 + $0x10] sm:$0xff]   ;;  %s184_s4 = scalar_lea.vmem %s679_s3, %s508_s28 }
  0x11   : > { %551 = vmatprep.mubr.msk.bf16.mxu0 %vm238_vm0, %v576_v3  ;;  %v579_v6 = vld [vmem:[%s173_s24 + $0x18] sm:$0xff]   ;;  %555 = vmatprep.mubr.msk.bf16.mxu1 %vm238_vm0, %v578_v5 }
  0x12   : > { %552 = vmatmul.mubr.msk.bf16.vlgmr.msra.gmra.mrb[0].mxu0 %vm238_vm0, %v577_v4  ;;  %556 = vmatmul.mubr.msk.bf16.vlgmr.msra.gmra.mrb[0].mxu1 %vm238_vm0, %v579_v6 }
  0xe5   : > { %v553_v7 = vpop.f32.mrb[0].mxu0  ;;  %v557_v8 = vpop.f32.mrb[0].mxu1 }
  0xe6   : > { %v532_v9 = vpack.c.bf16 %v553_v7, %v553_v7  ;;  %v285_v10 = vpop.f32.mrb[1].mxu0  ;;  %v301_v11 = vpop.f32.mrb[1].mxu1  ;;  %v340_v16 = vmul.f32 %v553_v7, %v553_v7  ;;  %v320_v24 = vsel %vm316_vm2, %v553_v7, 0.0  ;;  %v536_v27 = vpack.c.bf16 %v557_v8, %v557_v8 }
  0xe7   : > { %v338_v12 = vmul.f32 %v285_v10, %v285_v10  ;;  %v530_v13 = vpack.c.bf16 %v285_v10, %v285_v10  ;;  %v554_v14 = vpop.f32.mrb[2].mxu0  ;;  %v558_v15 = vpop.f32.mrb[2].mxu1  ;;  %v317_v20 = vsel %vm316_vm2, %v285_v10, 0.0  ;;  %v342_v30 = vmul.f32 %v301_v11, %v301_v11 }
  0xe8   : > { %406 = vst.msk [vmem:[%s634_s27 + $0x8] sm:$0xf] %vm403_vm1, %v532_v9  ;;  %v533_v17 = vpack.c.bf16 %v554_v14, %v554_v14  ;;  %v288_v18 = vpop.f32.mrb[3].mxu0  ;;  %v304_v19 = vpop.f32.mrb[3].mxu1  ;;  %v341_v25 = vmul.f32 %v554_v14, %v554_v14  ;;  %v534_v31 = vpack.c.bf16 %v301_v11, %v301_v11  ;;  %410 = vst.msk [vmem:[%s634_s27 + $0x18] sm:$0xf] %vm403_vm1, %v536_v27 }
  0xe9   : > { %404 = vst.msk [vmem:[%s634_s27] sm:$0xf] %vm403_vm1, %v530_v13  ;;  %v318_v21 = vsel %vm316_vm2, %v288_v18, 0.0  ;;  %v339_v22 = vmul.f32 %v288_v18, %v288_v18  ;;  %v531_v23 = vpack.c.bf16 %v288_v18, %v288_v18  ;;  %v346_v28 = vsel %vm316_vm2, %v338_v12, 0.0 }
  0xea   : > { %407 = vst.msk [vmem:[%s634_s27 + $0xc] sm:$0xf] %vm403_vm1, %v533_v17  ;;  %v319_v26 = vadd.f32 %v318_v21, %v317_v20  ;;  %v349_v34 = vsel %vm316_vm2, %v340_v16, 0.0  ;;  %v322_v35 = vsel %vm316_vm2, %v554_v14, 0.0  ;;  %v324_v36 = vsel %vm316_vm2, %v301_v11, 0.0 }
  0xeb   : > { %v347_v29 = vsel %vm316_vm2, %v339_v22, 0.0  ;;  %405 = vst.msk [vmem:[%s634_s27 + $0x4] sm:$0xf] %vm403_vm1, %v531_v23  ;;  %408 = vst.msk [vmem:[%s634_s27 + $0x10] sm:$0xf] %vm403_vm1, %v534_v31  ;;  %v537_v37 = vpack.c.bf16 %v558_v15, %v558_v15  ;;  %v535_v40 = vpack.c.bf16 %v304_v19, %v304_v19  ;;  %v351_v41 = vsel %vm316_vm2, %v341_v25, 0.0 }
  0xec   : > { %v321_v32 = vadd.f32 %v320_v24, %v319_v26  ;;  %v348_v33 = vadd.f32 %v347_v29, %v346_v28  ;;  %v353_v42 = vsel %vm316_vm2, %v342_v30, 0.0  ;;  %v343_v43 = vmul.f32 %v304_v19, %v304_v19 }
  0xed   : > { %411 = vst.msk [vmem:[%s634_s27 + $0x1c] sm:$0xf] %vm403_vm1, %v537_v37  ;;  %409 = vst.msk [vmem:[%s634_s27 + $0x14] sm:$0xf] %vm403_vm1, %v535_v40  ;;  %v344_v46 = vmul.f32 %v557_v8, %v557_v8  ;;  %v326_v47 = vsel %vm316_vm2, %v304_v19, 0.0  ;;  %v328_v50 = vsel %vm316_vm2, %v557_v8, 0.0  ;;  %v345_v51 = vmul.f32 %v558_v15, %v558_v15 }
  0xee   : > { %v350_v38 = vadd.f32 %v349_v34, %v348_v33  ;;  %v323_v39 = vadd.f32 %v322_v35, %v321_v32  ;;  %v355_v52 = vsel %vm316_vm2, %v343_v43, 0.0  ;;  %v330_v56 = vsel %vm316_vm2, %v558_v15, 0.0 }
  0xef   : > { %v357_v55 = vsel %vm316_vm2, %v344_v46, 0.0  ;;  %v359_v59 = vsel %vm316_vm2, %v345_v51, 0.0 }
  0xf0   : > { %v325_v44 = vadd.f32 %v324_v36, %v323_v39  ;;  %v352_v45 = vadd.f32 %v351_v41, %v350_v38 }
  0xf2   : > { %v354_v48 = vadd.f32 %v353_v42, %v352_v45  ;;  %v327_v49 = vadd.f32 %v326_v47, %v325_v44 }
  0xf4   : > { %v329_v53 = vadd.f32 %v328_v50, %v327_v49  ;;  %v356_v54 = vadd.f32 %v355_v52, %v354_v48 }
  0xf6   : > { %v331_v57 = vadd.f32 %v330_v56, %v329_v53  ;;  %v358_v58 = vadd.f32 %v357_v55, %v356_v54 }
  0xf8   : > { %v332_v60 = vrot.slane %v331_v57, 4  ;;  %v360_v61 = vadd.f32 %v359_v59, %v358_v58 }
  0xfa   : > { %v333_v62 = vadd.f32 %v332_v60, %v331_v57  ;;  %v361_v63 = vrot.slane %v360_v61, 4 }
  0xfc   : > { %v334_v0 = vrot.slane %v333_v62, 2  ;;  %v362_v1 = vadd.f32 %v361_v63, %v360_v61 }
  0xfe   : > { %v335_v2 = vadd.f32 %v334_v0, %v333_v62  ;;  %v363_v3 = vrot.slane %v362_v1, 2 }
 0x100   : > { %v336_v4 = vrot.slane %v335_v2, 1  ;;  %v364_v5 = vadd.f32 %v363_v3, %v362_v1 }
 0x102   : > { %v365_v6 = vrot.slane %v364_v5, 1  ;;  %v337_v7 = vadd.f32 %v336_v4, %v335_v2 }
 0x104   : > { %v366_v8 = vadd.f32 %v365_v6, %v364_v5 }
 0x106   : > { %v368_v9 = vsel %vm367_vm3, %v337_v7, %v366_v8 }
 0x107   : > { %370 = vst.msk [vmem:[%s184_s4] sm:$0x3] %vm369_vm4, %v368_v9 }
 0x108 PF: > { %s14_s12 = sadd.s32 1, %s586_s12  }
 0x109   : > { %p11_p5 = scmp.ge.s32.totalorder %s14_s12, 4  }
 0x10b   :  { %13 = sbr.rel (!%p11_p5) target bundleno = 1 (0x1), region = 70 }

// kernel: autoencoder_forward.17
= control target key start
LH: loop header
LB: loop body
LE: loop exit
PB: predicated region body
PF: predicated region fallthrough
CT: control target
= control target key end

     0   :  { %s606_s12 = smov 0   ;;  %s683_s0 = inlined_call_operand.vmem [shape: bf16[32,256], index: 0, kind: input, shape index: {}]   ;;  %s684_s1 = inlined_call_operand.vmem [shape: bf16[256,32], index: 1, kind: input, shape index: {}]   ;;  %s685_s2 = inlined_call_operand.vmem [shape: bf16[32,32], index: 2, kind: output, shape index: {0}]   ;;  %s686_s3 = inlined_call_operand.vmem [shape: f32[2,2,32], index: 3, kind: output, shape index: {1}]  }
   0x1 LB: > { %s612_s13 = sadd.s32 4294967295, %s584_s12   ;;  %p497_p0 = scmp.ge.s32.totalorder %s584_s12, 1  ;;  %s584_s12 = sphi %s606_s12, %s14_s12  }
   0x2   : > { %p142_p1 = scmp.lt.s32.totalorder %s584_s12, 3 }
   0x4   : > { %p143_p2 = pnand %p497_p0, %p142_p1 }
   0x5   : > { %v559_v0 = vld [vmem:[%s684_s1 + $0x40] sm:$0xff] (!%p143_p2)   ;;  %s498_s16 = sshll.u32 (!%p143_p2), %s612_s13, 1  ;;  %v561_v2 = vld [vmem:[%s684_s1 + $0x48] sm:$0xff] (!%p143_p2)   ;;  %v563_v4 = vld [vmem:[%s684_s1 + $0x50] sm:$0xff] (!%p143_p2)   ;;  %vm370_vm0 = vcmask (!%p143_p2), 261120   ;;  %vm403_vm1 = vcmask (!%p143_p2), 257024  }
   0x6   : > { %146 = sbr.rel (%p143_p2) target bundleno = 274 (0x112), region = 28  ;;  %v560_v1 = vld [vmem:[%s684_s1] sm:$0xff] (!%p143_p2)   ;;  %529 = vmatprep.subr.bf16.mxu0 (!%p143_p2), %v559_v0  ;;  %v562_v3 = vld [vmem:[%s684_s1 + $0x8] sm:$0xff] (!%p143_p2)   ;;  %p172_p3 = scmp.lt.s32.totalorder (!%p143_p2), %s498_s16, 3  ;;  %v564_v5 = vld [vmem:[%s684_s1 + $0x10] sm:$0xff] (!%p143_p2)   ;;  %vm391_vm2 = vcmask (!%p143_p2), 1040384  }
   0x7   : > { %530 = vmatpush3.bf16.msra.mxu0 (!%p143_p2), %v560_v1  ;;  %v565_v6 = vld [vmem:[%s684_s1 + $0x58] sm:$0xff] (!%p143_p2)   ;;  %v567_v8 = vld [vmem:[%s684_s1 + $0x60] sm:$0xff] (!%p143_p2)   ;;  %v569_v10 = vld [vmem:[%s684_s1 + $0x68] sm:$0xff] (!%p143_p2)   ;;  %p184_p4 = scmp.lt.s32.totalorder (!%p143_p2), %s612_s13, 1  ;;  %vm393_vm3 = vcmask (!%p143_p2), 254976  }
   0x8   : > { %531 = vmatprep.subr.bf16.mxu0 (!%p143_p2), %v561_v2  ;;  %v566_v7 = vld [vmem:[%s684_s1 + $0x18] sm:$0xff] (!%p143_p2)   ;;  %v568_v9 = vld [vmem:[%s684_s1 + $0x20] sm:$0xff] (!%p143_p2)   ;;  %v570_v12 = vld [vmem:[%s684_s1 + $0x28] sm:$0xff] (!%p143_p2)  }
   0x9   : > { %v571_v13 = vld [vmem:[%s684_s1 + $0x70] sm:$0xff] (!%p143_p2)   ;;  %v573_v15 = vld [vmem:[%s684_s1 + $0x78] sm:$0xff] (!%p143_p2)  }
   0xa   : > { %v572_v14 = vld [vmem:[%s684_s1 + $0x30] sm:$0xff] (!%p143_p2)   ;;  %v574_v16 = vld [vmem:[%s684_s1 + $0x38] sm:$0xff] (!%p143_p2)  }
   0xb   : > { %532 = vmatpush3.bf16.msra.mxu0 (!%p143_p2), %v562_v3 }
   0xc   : > { %533 = vmatprep.subr.bf16.mxu0 (!%p143_p2), %v563_v4 }
   0xd   : > { %s688_s16 = smov (!%p172_p3, %s498_s16), 3  ;;  %s690_s13 = smov (!%p184_p4, %s612_s13), 1 }
   0xe   : > { %s526_s4 = sshll.u32 %s688_s16, 3  ;;  %s502_s27 = sshll.u32 %s688_s16, 2 }
   0xf   : > { %534 = vmatpush3.bf16.msra.mxu0 %v564_v5  ;;  %s176_s9 = scalar_lea.vmem %s683_s0, %s526_s4  ;;  %s182_s30 = scalar_lea.vmem %s685_s2, %s502_s27 }
  0x10   : > { %535 = vmatprep.subr.bf16.mxu0 %v565_v6  ;;  %v577_v11 = vld [vmem:[%s176_s9 + $0x4] ss:$8 sps:$4 sm:$0xff]   ;;  %v575_v17 = vld [vmem:[%s176_s9] ss:$8 sps:$4 sm:$0xff]   ;;  %s503_s16 = sshll.u32 %s690_s13, 1 }
  0x11   : > { %361 = vmatprep.mubr.bf16.mxu0 %v577_v11  ;;  %s187_s6 = scalar_lea.vmem %s686_s3, %s503_s16 }
  0x13   : > { %536 = vmatpush3.bf16.msra.mxu0 %v566_v7 }
  0x14   : > { %537 = vmatprep.subr.bf16.mxu0 %v567_v8 }
  0x17   : > { %538 = vmatpush3.bf16.msra.mxu0 %v568_v9 }
  0x18   : > { %539 = vmatprep.subr.bf16.mxu0 %v569_v10 }
  0x1b   : > { %540 = vmatpush3.bf16.msra.mxu0 %v570_v12 }
  0x1c   : > { %541 = vmatprep.subr.bf16.mxu0 %v571_v13 }
  0x1f   : > { %542 = vmatpush3.bf16.msra.mxu0 %v572_v14 }
  0x20   : > { %543 = vmatprep.subr.bf16.mxu0 %v573_v15 }
  0x23   : > { %544 = vmatpush3.bf16.msra.mxu0 %v574_v16 }
  0x26   : > { %362 = vmatmul.mubr.bf16.vlgmr.msra.gmra.mrb[0].mxu0 %v575_v17 }
  0xf9   : > { %v545_v18 = vpop.f32.mrb[0].mxu0 }
  0xfa   : > { %v546_v19 = vpop.f32.mrb[1].mxu0 }
  0xfb   : > { %v547_v20 = vadd.f32 %v546_v19, %v545_v18  ;;  %v548_v21 = vpop.f32.mrb[2].mxu0 }
  0xfc   : > { %v549_v22 = vpop.f32.mrb[3].mxu0 }
  0xfd   : > { %v380_v23 = vmul.f32 %v547_v20, %v547_v20  ;;  %v527_v24 = vpack.c.bf16 %v547_v20, %v547_v20  ;;  %v550_v25 = vadd.f32 %v549_v22, %v548_v21  ;;  %v371_v26 = vsel %vm370_vm0, %v547_v20, 0.0 }
  0xff   : > { %404 = vst.msk [vmem:[%s182_s30] sm:$0xf] %vm403_vm1, %v527_v24  ;;  %v372_v27 = vsel %vm370_vm0, %v550_v25, 0.0  ;;  %v381_v28 = vmul.f32 %v550_v25, %v550_v25  ;;  %v528_v29 = vpack.c.bf16 %v550_v25, %v550_v25  ;;  %v382_v31 = vsel %vm370_vm0, %v380_v23, 0.0 }
 0x100   : > { %v373_v30 = vadd.f32 %v372_v27, %v371_v26 }
 0x101   : > { %v383_v32 = vsel %vm370_vm0, %v381_v28, 0.0  ;;  %405 = vst.msk [vmem:[%s182_s30 + $0x4] sm:$0xf] %vm403_vm1, %v528_v29 }
 0x102   : > { %v374_v33 = vrot.slane %v373_v30, 4  ;;  %v384_v34 = vadd.f32 %v383_v32, %v382_v31 }
 0x104   : > { %v375_v35 = vadd.f32 %v374_v33, %v373_v30  ;;  %v385_v36 = vrot.slane %v384_v34, 4 }
 0x106   : > { %v376_v37 = vrot.slane %v375_v35, 2  ;;  %v386_v38 = vadd.f32 %v385_v36, %v384_v34 }
 0x108   : > { %v377_v39 = vadd.f32 %v376_v37, %v375_v35  ;;  %v387_v40 = vrot.slane %v386_v38, 2 }
 0x10a   : > { %v378_v41 = vrot.slane %v377_v39, 1  ;;  %v388_v42 = vadd.f32 %v387_v40, %v386_v38 }
 0x10c   : > { %v389_v43 = vrot.slane %v388_v42, 1  ;;  %v379_v44 = vadd.f32 %v378_v41, %v377_v39 }
 0x10e   : > { %v390_v45 = vadd.f32 %v389_v43, %v388_v42 }
 0x110   : > { %v392_v46 = vsel %vm391_vm2, %v379_v44, %v390_v45 }
 0x111   : > { %394 = vst.msk [vmem:[%s187_s6] sm:$0x3] %vm393_vm3, %v392_v46 }
 0x112 PF: > { %s14_s12 = sadd.s32 1, %s584_s12  }
 0x113   : > { %p11_p5 = scmp.ge.s32.totalorder %s14_s12, 4  }
 0x115   :  { %13 = sbr.rel (!%p11_p5) target bundleno = 1 (0x1), region = 70 }

// kernel: autoencoder_forward.18
= control target key start
LH: loop header
LB: loop body
LE: loop exit
PB: predicated region body
PF: predicated region fallthrough
CT: control target
= control target key end

     0   :  { %s322_s12 = smov 0   ;;  %s345_s0 = inlined_call_operand.vmem [shape: bf16[32,32], index: 0, kind: input, shape index: {}, may-alias: {0,3}]   ;;  %s346_s1 = inlined_call_operand.vmem [shape: f32[1,32], index: 1, kind: input, shape index: {}]   ;;  %s347_s2 = inlined_call_operand.vmem [shape: f32[1,32], index: 2, kind: input, shape index: {}]   ;;  %s348_s3 = inlined_call_operand.vmem [shape: bf16[32,32], index: 3, kind: output, shape index: {}, may-alias: {0,3}]  }
   0x1 LB: > { %s265_s13 = sadd.s32 4294967295, %s300_s12   ;;  %p269_p0 = scmp.ge.s32.totalorder %s300_s12, 1  ;;  %s300_s12 = sphi %s322_s12, %s13_s12  }
   0x2   : > { %p138_p1 = scmp.lt.s32.totalorder %s300_s12, 3 }
   0x4   : > { %p139_p2 = pnand %p269_p0, %p138_p1 }
   0x5   : > { %s270_s14 = sshll.u32 (!%p139_p2), %s265_s13, 1  ;;  %v274_v1 = vld [vmem:[%s346_s1] ss:$0 sm:$0xff] (!%p139_p2)  ;;  %vm206_vm0 = vcmask (!%p139_p2), 257024  }
   0x6   : > { %142 = sbr.rel (%p139_p2) target bundleno = 28 (0x1c), region = 32  ;;  %p163_p3 = scmp.lt.s32.totalorder (!%p139_p2), %s270_s14, 3  ;;  %v275_v4 = vld [vmem:[%s347_s2] ss:$0 sm:$0xff] (!%p139_p2) }
   0xd   : > { %s350_s14 = smov (!%p163_p3, %s270_s14), 3 }
   0xe   : > { %s271_s15 = sshll.u32 %s350_s14, 2 }
   0xf   : > { %s166_s18 = scalar_lea.vmem %s345_s0, %s271_s15  ;;  %s172_s25 = scalar_lea.vmem %s348_s3, %s271_s15 }
  0x10   : > { %v283_v0 = vld [vmem:[%s166_s18] sm:$0xff]  }
  0x11   : > { %v284_v2 = vunpack.c.l.bf16 %v283_v0  ;;  %v285_v3 = vunpack.c.h.bf16 %v283_v0 }
  0x13   : > { %v185_v5 = vmul.f32 %v284_v2, %v274_v1  ;;  %v186_v6 = vmul.f32 %v285_v3, %v274_v1 }
  0x15   : > { %v194_v7 = vadd.f32 %v275_v4, %v185_v5  ;;  %v195_v8 = vadd.f32 %v275_v4, %v186_v6 }
  0x17   : > { %v196_v9 = vmax.f32 %v194_v7, 0.0  ;;  %v197_v10 = vmax.f32 %v195_v8, 0.0 }
  0x19   : > { %v280_v11 = vpack.c.bf16 %v196_v9, %v196_v9  ;;  %v281_v12 = vpack.c.bf16 %v197_v10, %v197_v10 }
  0x1b   : > { %207 = vst.msk [vmem:[%s172_s25] sm:$0xf] %vm206_vm0, %v280_v11  ;;  %208 = vst.msk [vmem:[%s172_s25 + $0x4] sm:$0xf] %vm206_vm0, %v281_v12 }
  0x1c PF: > { %s13_s12 = sadd.s32 1, %s300_s12  }
  0x1d   : > { %p10_p4 = scmp.ge.s32.totalorder %s13_s12, 4  }
  0x1f   :  { %12 = sbr.rel (!%p10_p4) target bundleno = 1 (0x1), region = 62 }

// kernel: tile.58
= control target key start
LH: loop header
LB: loop body
LE: loop exit
PB: predicated region body
PF: predicated region fallthrough
CT: control target
= control target key end

     0   :  { %s22_s0 = inlined_call_operand.vmem [shape: f32[64], index: 0, kind: input, shape index: {}]   ;;  %s23_s1 = inlined_call_operand.vmem [shape: f32[2,64], index: 1, kind: output, shape index: {}]  }
   0x1   :  { %v4_v0 = vld [vmem:[%s22_s0] ss:$0 sm:$0xff] }
   0x2   :  { %5 = vst [vmem:[%s23_s1] sm:$0x3] %v4_v0 }

// kernel: tile.59
= control target key start
LH: loop header
LB: loop body
LE: loop exit
PB: predicated region body
PF: predicated region fallthrough
CT: control target
= control target key end

     0   :  { %vm7_vm0 = vcmask 523264   ;;  %vm13_vm1 = vcmask 1048064   ;;  %s39_s0 = inlined_call_operand.vmem [shape: f32[2,64], index: 0, kind: input, shape index: {}]   ;;  %s40_s1 = inlined_call_operand.vmem [shape: f32[1,128], index: 1, kind: output, shape index: {}]  }
   0x1   :  { %v4_v0 = vld [vmem:[%s39_s0] sm:$0x3]  ;;  %s22_s0 = smov 64  }
   0x2   :  { %5 = vst [vmem:[#allocation1] sm:$0x3] %v4_v0 }
   0x9   :  { %v10_v1 = vld [vmem:[#allocation1 + $0x1] sm:$0x1]   ;;  %v6_v2 = vld [vmem:[#allocation1] sm:$0x1]  }
   0xa   :  { %11 = vrot.lane.b32.xlu0 %v10_v1, %s22_s0  ;;  %8 = vst.msk [vmem:[#allocation0] sm:$0x1] %vm7_vm0, %v6_v2  }
  0x7c   :  { %v12_v3 = vpop.permute.xlu0 %11  }
  0x7d   :  { %14 = vst.msk [vmem:[#allocation0] sm:$0x1] %vm13_vm1, %v12_v3  }
  0x84   :  { %v18_v4 = vld [vmem:[#allocation0] sm:$0x1] }
  0x85   :  { %20 = vst [vmem:[%s40_s1] sm:$0x1] %v18_v4 }

// kernel: autoencoder_forward.20
= control target key start
LH: loop header
LB: loop body
LE: loop exit
PB: predicated region body
PF: predicated region fallthrough
CT: control target
= control target key end

     0   :  { %s73_s0 = inlined_call_operand.vmem [shape: bf16[4,128], index: 0, kind: input, shape index: {}, may-alias: {0,3}]   ;;  %s74_s1 = inlined_call_operand.vmem [shape: f32[1,128], index: 1, kind: input, shape index: {}]   ;;  %s75_s2 = inlined_call_operand.vmem [shape: f32[1,128], index: 2, kind: input, shape index: {}]   ;;  %s76_s3 = inlined_call_operand.vmem [shape: bf16[4,128], index: 3, kind: output, shape index: {}, may-alias: {0,3}]  }
   0x1   :  { %v14_v0 = vld [vmem:[%s73_s0] sm:$0x3] }
   0x2   :  { %v39_v1 = vld [vmem:[%s74_s1] ss:$0 sm:$0xff]  ;;  %v15_v2 = vunpack.c.l.bf16 %v14_v0 }
   0x3   :  { %v40_v3 = vld [vmem:[%s75_s2] ss:$0 sm:$0xff] }
   0x4   :  { %v23_v4 = vmul.f32 %v39_v1, %v15_v2 }
   0x6   :  { %v31_v5 = vadd.f32 %v40_v3, %v23_v4 }
   0x8   :  { %v32_v6 = vmax.f32 %v31_v5, 0.0 }
   0xa   :  { %v33_v7 = vpack.c.bf16 %v32_v6, %v32_v6 }
   0xc   :  { %34 = vst [vmem:[%s76_s3] sm:$0x3] %v33_v7 }

// kernel: autoencoder_forward.19
= control target key start
LH: loop header
LB: loop body
LE: loop exit
PB: predicated region body
PF: predicated region fallthrough
CT: control target
= control target key end

     0   :  { %vm366_vm0 = vcmask 523264   ;;  %vm387_vm1 = vcmask 519168   ;;  %vm382_vm2 = vcmask 1040384   ;;  %vm384_vm3 = vcmask 517120   ;;  %s641_s1 = inlined_call_operand.vmem [shape: bf16[512,64], index: 1, kind: input, shape index: {}]   ;;  %s642_s0 = inlined_call_operand.vmem [shape: bf16[8,512], index: 0, kind: input, shape index: {}]   ;;  %s643_s2 = inlined_call_operand.vmem [shape: bf16[8,64], index: 2, kind: output, shape index: {0}]   ;;  %s644_s3 = inlined_call_operand.vmem [shape: f32[1,2,64], index: 3, kind: output, shape index: {1}]  }
   0x1   :  { %v477_v0 = vld [vmem:[%s641_s1 + $0x40] sm:$0xff]   ;;  %v481_v4 = vld [vmem:[%s641_s1 + $0x48] sm:$0xff]   ;;  %v485_v8 = vld [vmem:[%s641_s1 + $0x50] sm:$0xff]  }
   0x2   :  { %v478_v1 = vld [vmem:[%s641_s1 + $0xc0] sm:$0xff]   ;;  %433 = vmatprep.subr.bf16.mxu0 %v477_v0  ;;  %v482_v5 = vld [vmem:[%s641_s1 + $0xc8] sm:$0xff]   ;;  %v486_v9 = vld [vmem:[%s641_s1 + $0xd0] sm:$0xff]  }
   0x3   :  { %v479_v2 = vld [vmem:[%s641_s1] sm:$0xff]   ;;  %455 = vmatprep.subr.bf16.mxu1 %v478_v1  ;;  %v483_v6 = vld [vmem:[%s641_s1 + $0x8] sm:$0xff]   ;;  %v487_v10 = vld [vmem:[%s641_s1 + $0x10] sm:$0xff]  }
   0x4   :  { %v480_v3 = vld [vmem:[%s641_s1 + $0x80] sm:$0xff]   ;;  %434 = vmatpush3.bf16.msra.mxu0 %v479_v2  ;;  %v484_v7 = vld [vmem:[%s641_s1 + $0x88] sm:$0xff]   ;;  %v488_v11 = vld [vmem:[%s641_s1 + $0x90] sm:$0xff]  }
   0x5   :  { %456 = vmatpush3.bf16.msra.mxu1 %v480_v3  ;;  %435 = vmatprep.subr.bf16.mxu0 %v481_v4  ;;  %v489_v12 = vld [vmem:[%s641_s1 + $0x58] sm:$0xff]   ;;  %v493_v16 = vld [vmem:[%s641_s1 + $0x60] sm:$0xff]   ;;  %v497_v20 = vld [vmem:[%s641_s1 + $0x68] sm:$0xff]  }
   0x6   :  { %457 = vmatprep.subr.bf16.mxu1 %v482_v5  ;;  %v490_v13 = vld [vmem:[%s641_s1 + $0xd8] sm:$0xff]   ;;  %v494_v17 = vld [vmem:[%s641_s1 + $0xe0] sm:$0xff]   ;;  %v498_v21 = vld [vmem:[%s641_s1 + $0xe8] sm:$0xff]  }
   0x7   :  { %v491_v14 = vld [vmem:[%s641_s1 + $0x18] sm:$0xff]   ;;  %v495_v18 = vld [vmem:[%s641_s1 + $0x20] sm:$0xff]   ;;  %v499_v22 = vld [vmem:[%s641_s1 + $0x28] sm:$0xff]  }
   0x8   :  { %436 = vmatpush3.bf16.msra.mxu0 %v483_v6  ;;  %v492_v15 = vld [vmem:[%s641_s1 + $0x98] sm:$0xff]   ;;  %v496_v19 = vld [vmem:[%s641_s1 + $0xa0] sm:$0xff]   ;;  %v500_v23 = vld [vmem:[%s641_s1 + $0xa8] sm:$0xff]  }
   0x9   :  { %458 = vmatpush3.bf16.msra.mxu1 %v484_v7  ;;  %437 = vmatprep.subr.bf16.mxu0 %v485_v8  ;;  %v501_v24 = vld [vmem:[%s641_s1 + $0x70] sm:$0xff]   ;;  %v505_v28 = vld [vmem:[%s641_s1 + $0x78] sm:$0xff]   ;;  %v14_v32 = vld [vmem:[%s642_s0] sm:$0xff] }
   0xa   :  { %459 = vmatprep.subr.bf16.mxu1 %v486_v9  ;;  %v502_v25 = vld [vmem:[%s641_s1 + $0xf0] sm:$0xff]   ;;  %v506_v29 = vld [vmem:[%s641_s1 + $0xf8] sm:$0xff]   ;;  %v15_v33 = vld [vmem:[%s642_s0 + $0x8] sm:$0xff]  ;;  %v397_v34 = vcombine.low %v14_v32, %v14_v32  ;;  %v398_v35 = vcombine.high %v14_v32, %v14_v32 }
   0xb   :  { %v503_v26 = vld [vmem:[%s641_s1 + $0x30] sm:$0xff]   ;;  %v507_v30 = vld [vmem:[%s641_s1 + $0x38] sm:$0xff]   ;;  %v399_v36 = vcombine.low %v15_v33, %v15_v33  ;;  %v400_v37 = vcombine.high %v15_v33, %v15_v33 }
   0xc   :  { %438 = vmatpush3.bf16.msra.mxu0 %v487_v10  ;;  %v504_v27 = vld [vmem:[%s641_s1 + $0xb0] sm:$0xff]   ;;  %v508_v31 = vld [vmem:[%s641_s1 + $0xb8] sm:$0xff]   ;;  %318 = vmatprep.mubr.bf16.mxu0 %v398_v35 }
   0xd   :  { %460 = vmatpush3.bf16.msra.mxu1 %v488_v11  ;;  %439 = vmatprep.subr.bf16.mxu0 %v489_v12 }
   0xe   :  { %461 = vmatprep.subr.bf16.mxu1 %v490_v13  ;;  %358 = vmatprep.mubr.bf16.mxu1 %v400_v37 }
  0x10   :  { %440 = vmatpush3.bf16.msra.mxu0 %v491_v14 }
  0x11   :  { %462 = vmatpush3.bf16.msra.mxu1 %v492_v15  ;;  %441 = vmatprep.subr.bf16.mxu0 %v493_v16 }
  0x12   :  { %463 = vmatprep.subr.bf16.mxu1 %v494_v17 }
  0x14   :  { %442 = vmatpush3.bf16.msra.mxu0 %v495_v18 }
  0x15   :  { %464 = vmatpush3.bf16.msra.mxu1 %v496_v19  ;;  %443 = vmatprep.subr.bf16.mxu0 %v497_v20 }
  0x16   :  { %465 = vmatprep.subr.bf16.mxu1 %v498_v21 }
  0x18   :  { %444 = vmatpush3.bf16.msra.mxu0 %v499_v22 }
  0x19   :  { %466 = vmatpush3.bf16.msra.mxu1 %v500_v23  ;;  %445 = vmatprep.subr.bf16.mxu0 %v501_v24 }
  0x1a   :  { %467 = vmatprep.subr.bf16.mxu1 %v502_v25 }
  0x1c   :  { %446 = vmatpush3.bf16.msra.mxu0 %v503_v26 }
  0x1d   :  { %468 = vmatpush3.bf16.msra.mxu1 %v504_v27  ;;  %447 = vmatprep.subr.bf16.mxu0 %v505_v28 }
  0x1e   :  { %469 = vmatprep.subr.bf16.mxu1 %v506_v29 }
  0x20   :  { %448 = vmatpush3.bf16.msra.mxu0 %v507_v30 }
  0x21   :  { %470 = vmatpush3.bf16.msra.mxu1 %v508_v31 }
  0x23   :  { %319 = vmatmul.mubr.bf16.vlgmr.msra.gmra.mrb[0].mxu0 %v397_v34 }
  0x24   :  { %359 = vmatmul.mubr.bf16.vlgmr.msra.gmra.mrb[0].mxu1 %v399_v36 }
  0xf6   :  { %v449_v38 = vpop.f32.mrb[0].mxu0 }
  0xf7   :  { %v471_v39 = vpop.f32.mrb[0].mxu1  ;;  %v450_v40 = vpop.f32.mrb[1].mxu0 }
  0xf8   :  { %v472_v41 = vpop.f32.mrb[1].mxu1  ;;  %v451_v42 = vadd.f32 %v450_v40, %v449_v38  ;;  %v452_v44 = vpop.f32.mrb[2].mxu0 }
  0xf9   :  { %v473_v43 = vadd.f32 %v472_v41, %v471_v39  ;;  %v474_v45 = vpop.f32.mrb[2].mxu1  ;;  %v453_v46 = vpop.f32.mrb[3].mxu0 }
  0xfa   :  { %v475_v47 = vpop.f32.mrb[3].mxu1 }
  0xfb   :  { %v361_v48 = vadd.f32 %v473_v43, %v451_v42 }
  0xfd   :  { %v367_v49 = vsel %vm366_vm0, %v361_v48, 0.0  ;;  %v374_v50 = vmul.f32 %v361_v48, %v361_v48  ;;  %v386_v51 = vpack.c.bf16 %v361_v48, %v361_v48 }
  0xfe   :  { %v368_v52 = vrot.slane %v367_v49, 4 }
  0xff   :  { %v375_v53 = vsel %vm366_vm0, %v374_v50, 0.0  ;;  %388 = vst.msk [vmem:[%s643_s2] sm:$0xf] %vm387_vm1, %v386_v51 }
 0x100   :  { %v369_v54 = vadd.f32 %v368_v52, %v367_v49  ;;  %v376_v55 = vrot.slane %v375_v53, 4 }
 0x102   :  { %v370_v56 = vrot.slane %v369_v54, 2  ;;  %v377_v57 = vadd.f32 %v376_v55, %v375_v53 }
 0x104   :  { %v371_v58 = vadd.f32 %v370_v56, %v369_v54  ;;  %v378_v59 = vrot.slane %v377_v57, 2 }
 0x106   :  { %v372_v60 = vrot.slane %v371_v58, 1  ;;  %v379_v61 = vadd.f32 %v378_v59, %v377_v57 }
 0x108   :  { %v380_v62 = vrot.slane %v379_v61, 1  ;;  %v373_v63 = vadd.f32 %v372_v60, %v371_v58 }
 0x10a   :  { %v381_v0 = vadd.f32 %v380_v62, %v379_v61 }
 0x10c   :  { %v383_v1 = vsel %vm382_vm2, %v373_v63, %v381_v0 }
 0x10d   :  { %385 = vst.msk [vmem:[%s644_s3] sm:$0x3] %vm384_vm3, %v383_v1 }

// kernel: autoencoder_forward.22
= control target key start
LH: loop header
LB: loop body
LE: loop exit
PB: predicated region body
PF: predicated region fallthrough
CT: control target
= control target key end

     0   :  { %s73_s0 = inlined_call_operand.vmem [shape: bf16[8,128], index: 0, kind: input, shape index: {}, may-alias: {0,3}]   ;;  %s74_s1 = inlined_call_operand.vmem [shape: f32[1,128], index: 1, kind: input, shape index: {}]   ;;  %s75_s2 = inlined_call_operand.vmem [shape: f32[1,128], index: 2, kind: input, shape index: {}]   ;;  %s76_s3 = inlined_call_operand.vmem [shape: bf16[8,128], index: 3, kind: output, shape index: {}, may-alias: {0,3}]  }
   0x1   :  { %v14_v0 = vld [vmem:[%s73_s0] sm:$0xf] }
   0x2   :  { %v39_v1 = vld [vmem:[%s74_s1] ss:$0 sm:$0xff]  ;;  %v15_v2 = vunpack.c.l.bf16 %v14_v0 }
   0x3   :  { %v40_v3 = vld [vmem:[%s75_s2] ss:$0 sm:$0xff] }
   0x4   :  { %v23_v4 = vmul.f32 %v39_v1, %v15_v2 }
   0x6   :  { %v31_v5 = vadd.f32 %v40_v3, %v23_v4 }
   0x8   :  { %v32_v6 = vmax.f32 %v31_v5, 0.0 }
   0xa   :  { %v33_v7 = vpack.c.bf16 %v32_v6, %v32_v6 }
   0xc   :  { %34 = vst [vmem:[%s76_s3] sm:$0xf] %v33_v7 }

// kernel: autoencoder_forward.21
= control target key start
LH: loop header
LB: loop body
LE: loop exit
PB: predicated region body
PF: predicated region fallthrough
CT: control target
= control target key end

     0   :  { %vm731_vm0 = vcmask 1040384   ;;  %s1206_s1 = inlined_call_operand.vmem [shape: bf16[1024,128], index: 1, kind: input, shape index: {}]   ;;  %s1207_s0 = inlined_call_operand.vmem [shape: bf16[8,1024], index: 0, kind: input, shape index: {}]   ;;  %s1208_s2 = inlined_call_operand.vmem [shape: bf16[8,128], index: 2, kind: output, shape index: {0}]   ;;  %s1209_s3 = inlined_call_operand.vmem [shape: f32[1,2,128], index: 3, kind: output, shape index: {1}]  }
   0x1   :  { %v904_v0 = vld [vmem:[%s1206_s1 + $0x40] sm:$0xff]   ;;  %v908_v4 = vld [vmem:[%s1206_s1 + $0x48] sm:$0xff]   ;;  %v912_v8 = vld [vmem:[%s1206_s1 + $0x50] sm:$0xff]  }
   0x2   :  { %v905_v1 = vld [vmem:[%s1206_s1 + $0xc0] sm:$0xff]   ;;  %816 = vmatprep.subr.bf16.mxu0 %v904_v0  ;;  %v909_v5 = vld [vmem:[%s1206_s1 + $0xc8] sm:$0xff]   ;;  %v913_v9 = vld [vmem:[%s1206_s1 + $0xd0] sm:$0xff]  }
   0x3   :  { %v906_v2 = vld [vmem:[%s1206_s1] sm:$0xff]   ;;  %838 = vmatprep.subr.bf16.mxu1 %v905_v1  ;;  %v910_v6 = vld [vmem:[%s1206_s1 + $0x8] sm:$0xff]   ;;  %v914_v10 = vld [vmem:[%s1206_s1 + $0x10] sm:$0xff]  }
   0x4   :  { %v907_v3 = vld [vmem:[%s1206_s1 + $0x80] sm:$0xff]   ;;  %817 = vmatpush3.bf16.msra.mxu0 %v906_v2  ;;  %v911_v7 = vld [vmem:[%s1206_s1 + $0x88] sm:$0xff]   ;;  %v915_v11 = vld [vmem:[%s1206_s1 + $0x90] sm:$0xff]  }
   0x5   :  { %839 = vmatpush3.bf16.msra.mxu1 %v907_v3  ;;  %818 = vmatprep.subr.bf16.mxu0 %v908_v4  ;;  %v916_v12 = vld [vmem:[%s1206_s1 + $0x58] sm:$0xff]   ;;  %v920_v16 = vld [vmem:[%s1206_s1 + $0x60] sm:$0xff]   ;;  %v924_v20 = vld [vmem:[%s1206_s1 + $0x68] sm:$0xff]  }
   0x6   :  { %840 = vmatprep.subr.bf16.mxu1 %v909_v5  ;;  %v917_v13 = vld [vmem:[%s1206_s1 + $0xd8] sm:$0xff]   ;;  %v921_v17 = vld [vmem:[%s1206_s1 + $0xe0] sm:$0xff]   ;;  %v925_v21 = vld [vmem:[%s1206_s1 + $0xe8] sm:$0xff]  }
   0x7   :  { %v918_v14 = vld [vmem:[%s1206_s1 + $0x18] sm:$0xff]   ;;  %v922_v18 = vld [vmem:[%s1206_s1 + $0x20] sm:$0xff]   ;;  %v926_v22 = vld [vmem:[%s1206_s1 + $0x28] sm:$0xff]  }
   0x8   :  { %819 = vmatpush3.bf16.msra.mxu0 %v910_v6  ;;  %v919_v15 = vld [vmem:[%s1206_s1 + $0x98] sm:$0xff]   ;;  %v923_v19 = vld [vmem:[%s1206_s1 + $0xa0] sm:$0xff]   ;;  %v927_v23 = vld [vmem:[%s1206_s1 + $0xa8] sm:$0xff]  }
   0x9   :  { %841 = vmatpush3.bf16.msra.mxu1 %v911_v7  ;;  %820 = vmatprep.subr.bf16.mxu0 %v912_v8  ;;  %v928_v24 = vld [vmem:[%s1206_s1 + $0x70] sm:$0xff]   ;;  %v932_v28 = vld [vmem:[%s1206_s1 + $0x78] sm:$0xff]   ;;  %v14_v32 = vld [vmem:[%s1207_s0] sm:$0xff] }
   0xa   :  { %842 = vmatprep.subr.bf16.mxu1 %v913_v9  ;;  %v929_v25 = vld [vmem:[%s1206_s1 + $0xf0] sm:$0xff]   ;;  %v933_v29 = vld [vmem:[%s1206_s1 + $0xf8] sm:$0xff]   ;;  %v15_v33 = vld [vmem:[%s1207_s0 + $0x8] sm:$0xff]  ;;  %v744_v34 = vcombine.low %v14_v32, %v14_v32  ;;  %v745_v35 = vcombine.high %v14_v32, %v14_v32 }
   0xb   :  { %v930_v26 = vld [vmem:[%s1206_s1 + $0x30] sm:$0xff]   ;;  %v934_v30 = vld [vmem:[%s1206_s1 + $0x38] sm:$0xff]   ;;  %v746_v36 = vcombine.low %v15_v33, %v15_v33  ;;  %v747_v37 = vcombine.high %v15_v33, %v15_v33  ;;  %v940_v38 = vld [vmem:[%s1206_s1 + $0x140] sm:$0xff]  }
   0xc   :  { %821 = vmatpush3.bf16.msra.mxu0 %v914_v10  ;;  %v931_v27 = vld [vmem:[%s1206_s1 + $0xb0] sm:$0xff]   ;;  %v935_v31 = vld [vmem:[%s1206_s1 + $0xb8] sm:$0xff]   ;;  %v941_v39 = vld [vmem:[%s1206_s1 + $0x1c0] sm:$0xff]   ;;  %590 = vmatprep.mubr.bf16.mxu0 %v745_v35 }
   0xd   :  { %843 = vmatpush3.bf16.msra.mxu1 %v915_v11  ;;  %822 = vmatprep.subr.bf16.mxu0 %v916_v12  ;;  %v942_v40 = vld [vmem:[%s1206_s1 + $0x100] sm:$0xff]   ;;  %v944_v42 = vld [vmem:[%s1206_s1 + $0x148] sm:$0xff]   ;;  %v948_v46 = vld [vmem:[%s1206_s1 + $0x150] sm:$0xff]  }
   0xe   :  { %844 = vmatprep.subr.bf16.mxu1 %v917_v13  ;;  %630 = vmatprep.mubr.bf16.mxu1 %v747_v37  ;;  %v943_v41 = vld [vmem:[%s1206_s1 + $0x180] sm:$0xff]   ;;  %v945_v43 = vld [vmem:[%s1206_s1 + $0x1c8] sm:$0xff]   ;;  %v949_v47 = vld [vmem:[%s1206_s1 + $0x1d0] sm:$0xff]  }
   0xf   :  { %v946_v44 = vld [vmem:[%s1206_s1 + $0x108] sm:$0xff]   ;;  %v950_v48 = vld [vmem:[%s1206_s1 + $0x110] sm:$0xff]   ;;  %v952_v50 = vld [vmem:[%s1206_s1 + $0x158] sm:$0xff]  }
  0x10   :  { %823 = vmatpush3.bf16.msra.mxu0 %v918_v14  ;;  %v947_v45 = vld [vmem:[%s1206_s1 + $0x188] sm:$0xff]   ;;  %v951_v49 = vld [vmem:[%s1206_s1 + $0x190] sm:$0xff]   ;;  %v953_v51 = vld [vmem:[%s1206_s1 + $0x1d8] sm:$0xff]  }
  0x11   :  { %845 = vmatpush3.bf16.msra.mxu1 %v919_v15  ;;  %824 = vmatprep.subr.bf16.mxu0 %v920_v16  ;;  %v954_v52 = vld [vmem:[%s1206_s1 + $0x118] sm:$0xff]   ;;  %v956_v54 = vld [vmem:[%s1206_s1 + $0x160] sm:$0xff]   ;;  %v960_v58 = vld [vmem:[%s1206_s1 + $0x168] sm:$0xff]  }
  0x12   :  { %846 = vmatprep.subr.bf16.mxu1 %v921_v17  ;;  %v955_v53 = vld [vmem:[%s1206_s1 + $0x198] sm:$0xff]   ;;  %v957_v55 = vld [vmem:[%s1206_s1 + $0x1e0] sm:$0xff]   ;;  %v961_v59 = vld [vmem:[%s1206_s1 + $0x1e8] sm:$0xff]  }
  0x13   :  { %v958_v56 = vld [vmem:[%s1206_s1 + $0x120] sm:$0xff]   ;;  %v962_v60 = vld [vmem:[%s1206_s1 + $0x128] sm:$0xff]   ;;  %v964_v62 = vld [vmem:[%s1206_s1 + $0x170] sm:$0xff]  }
  0x14   :  { %825 = vmatpush3.bf16.msra.mxu0 %v922_v18  ;;  %v959_v57 = vld [vmem:[%s1206_s1 + $0x1a0] sm:$0xff]   ;;  %v963_v61 = vld [vmem:[%s1206_s1 + $0x1a8] sm:$0xff]   ;;  %v965_v63 = vld [vmem:[%s1206_s1 + $0x1f0] sm:$0xff]  }
  0x15   :  { %847 = vmatpush3.bf16.msra.mxu1 %v923_v19  ;;  %826 = vmatprep.subr.bf16.mxu0 %v924_v20  ;;  %v966_v0 = vld [vmem:[%s1206_s1 + $0x130] sm:$0xff]   ;;  %v968_v2 = vld [vmem:[%s1206_s1 + $0x178] sm:$0xff]  }
  0x16   :  { %848 = vmatprep.subr.bf16.mxu1 %v925_v21  ;;  %v967_v1 = vld [vmem:[%s1206_s1 + $0x1b0] sm:$0xff]   ;;  %v969_v3 = vld [vmem:[%s1206_s1 + $0x1f8] sm:$0xff]  }
  0x17   :  { %v970_v4 = vld [vmem:[%s1206_s1 + $0x138] sm:$0xff]   ;;  %v16_v6 = vld [vmem:[%s1207_s0 + $0x10] sm:$0xff] }
  0x18   :  { %827 = vmatpush3.bf16.msra.mxu0 %v926_v22  ;;  %v971_v5 = vld [vmem:[%s1206_s1 + $0x1b8] sm:$0xff]   ;;  %v748_v7 = vcombine.low %v16_v6, %v16_v6  ;;  %v749_v8 = vcombine.high %v16_v6, %v16_v6 }
  0x19   :  { %849 = vmatpush3.bf16.msra.mxu1 %v927_v23  ;;  %828 = vmatprep.subr.bf16.mxu0 %v928_v24  ;;  %v17_v9 = vld [vmem:[%s1207_s0 + $0x18] sm:$0xff] }
  0x1a   :  { %850 = vmatprep.subr.bf16.mxu1 %v929_v25  ;;  %v750_v10 = vcombine.low %v17_v9, %v17_v9  ;;  %v751_v11 = vcombine.high %v17_v9, %v17_v9 }
  0x1c   :  { %829 = vmatpush3.bf16.msra.mxu0 %v930_v26 }
  0x1d   :  { %851 = vmatpush3.bf16.msra.mxu1 %v931_v27  ;;  %830 = vmatprep.subr.bf16.mxu0 %v932_v28 }
  0x1e   :  { %852 = vmatprep.subr.bf16.mxu1 %v933_v29 }
  0x20   :  { %831 = vmatpush3.bf16.msra.mxu0 %v934_v30 }
  0x21   :  { %853 = vmatpush3.bf16.msra.mxu1 %v935_v31  ;;  %860 = vmatprep.subr.bf16.mxu0 %v940_v38 }
  0x22   :  { %882 = vmatprep.subr.bf16.mxu1 %v941_v39 }
  0x23   :  { %591 = vmatmul.mubr.bf16.vlgmr.msra.gmra.mrb[0].mxu0 %v744_v34 }
  0x24   :  { %631 = vmatmul.mubr.bf16.vlgmr.msra.gmra.mrb[0].mxu1 %v746_v36  ;;  %861 = vmatpush3.bf16.msra.mxu0 %v942_v40 }
  0x25   :  { %883 = vmatpush3.bf16.msra.mxu1 %v943_v41  ;;  %862 = vmatprep.subr.bf16.mxu0 %v944_v42 }
  0x26   :  { %884 = vmatprep.subr.bf16.mxu1 %v945_v43  ;;  %670 = vmatprep.mubr.bf16.mxu0 %v749_v8 }
  0x27   :  { %710 = vmatprep.mubr.bf16.mxu1 %v751_v11 }
  0x28   :  { %863 = vmatpush3.bf16.msra.mxu0 %v946_v44 }
  0x29   :  { %885 = vmatpush3.bf16.msra.mxu1 %v947_v45  ;;  %864 = vmatprep.subr.bf16.mxu0 %v948_v46 }
  0x2a   :  { %886 = vmatprep.subr.bf16.mxu1 %v949_v47 }
  0x2c   :  { %865 = vmatpush3.bf16.msra.mxu0 %v950_v48 }
  0x2d   :  { %887 = vmatpush3.bf16.msra.mxu1 %v951_v49  ;;  %866 = vmatprep.subr.bf16.mxu0 %v952_v50 }
  0x2e   :  { %888 = vmatprep.subr.bf16.mxu1 %v953_v51 }
  0x30   :  { %867 = vmatpush3.bf16.msra.mxu0 %v954_v52 }
  0x31   :  { %889 = vmatpush3.bf16.msra.mxu1 %v955_v53  ;;  %868 = vmatprep.subr.bf16.mxu0 %v956_v54 }
  0x32   :  { %890 = vmatprep.subr.bf16.mxu1 %v957_v55 }
  0x34   :  { %869 = vmatpush3.bf16.msra.mxu0 %v958_v56 }
  0x35   :  { %891 = vmatpush3.bf16.msra.mxu1 %v959_v57  ;;  %870 = vmatprep.subr.bf16.mxu0 %v960_v58 }
  0x36   :  { %892 = vmatprep.subr.bf16.mxu1 %v961_v59 }
  0x38   :  { %871 = vmatpush3.bf16.msra.mxu0 %v962_v60 }
  0x39   :  { %893 = vmatpush3.bf16.msra.mxu1 %v963_v61  ;;  %872 = vmatprep.subr.bf16.mxu0 %v964_v62 }
  0x3a   :  { %894 = vmatprep.subr.bf16.mxu1 %v965_v63 }
  0x3c   :  { %873 = vmatpush3.bf16.msra.mxu0 %v966_v0 }
  0x3d   :  { %895 = vmatpush3.bf16.msra.mxu1 %v967_v1  ;;  %874 = vmatprep.subr.bf16.mxu0 %v968_v2 }
  0x3e   :  { %896 = vmatprep.subr.bf16.mxu1 %v969_v3 }
  0x40   :  { %875 = vmatpush3.bf16.msra.mxu0 %v970_v4 }
  0x41   :  { %897 = vmatpush3.bf16.msra.mxu1 %v971_v5 }
  0x43   :  { %671 = vmatmul.mubr.bf16.vlgmr.msra.gmra.mrb[4].mxu0 %v748_v7 }
  0x44   :  { %711 = vmatmul.mubr.bf16.vlgmr.msra.gmra.mrb[4].mxu1 %v750_v10 }
  0xf6   :  { %v832_v12 = vpop.f32.mrb[0].mxu0 }
  0xf7   :  { %v854_v13 = vpop.f32.mrb[0].mxu1  ;;  %v833_v14 = vpop.f32.mrb[1].mxu0 }
  0xf8   :  { %v855_v15 = vpop.f32.mrb[1].mxu1  ;;  %v834_v16 = vadd.f32 %v833_v14, %v832_v12  ;;  %v835_v18 = vpop.f32.mrb[2].mxu0 }
  0xf9   :  { %v856_v17 = vadd.f32 %v855_v15, %v854_v13  ;;  %v857_v19 = vpop.f32.mrb[2].mxu1  ;;  %v836_v20 = vpop.f32.mrb[3].mxu0 }
  0xfa   :  { %v858_v21 = vpop.f32.mrb[3].mxu1 }
  0xfb   :  { %v633_v22 = vadd.f32 %v856_v17, %v834_v16 }
 0x116   :  { %v876_v23 = vpop.f32.mrb[4].mxu0 }
 0x117   :  { %v898_v24 = vpop.f32.mrb[4].mxu1  ;;  %v877_v25 = vpop.f32.mrb[5].mxu0 }
 0x118   :  { %v899_v26 = vpop.f32.mrb[5].mxu1  ;;  %v878_v27 = vadd.f32 %v877_v25, %v876_v23  ;;  %v879_v29 = vpop.f32.mrb[6].mxu0 }
 0x119   :  { %v900_v28 = vadd.f32 %v899_v26, %v898_v24  ;;  %v901_v30 = vpop.f32.mrb[6].mxu1  ;;  %v880_v31 = vpop.f32.mrb[7].mxu0 }
 0x11a   :  { %v902_v32 = vpop.f32.mrb[7].mxu1  ;;  %v673_v33 = vadd.f32 %v878_v27, %v633_v22 }
 0x11c   :  { %v713_v34 = vadd.f32 %v900_v28, %v673_v33 }
 0x11e   :  { %v718_v35 = vrot.slane %v713_v34, 4  ;;  %v724_v36 = vmul.f32 %v713_v34, %v713_v34  ;;  %v734_v37 = vpack.c.bf16 %v713_v34, %v713_v34 }
 0x120   :  { %v719_v38 = vadd.f32 %v718_v35, %v713_v34  ;;  %v725_v39 = vrot.slane %v724_v36, 4  ;;  %735 = vst [vmem:[%s1208_s2] sm:$0xf] %v734_v37 }
 0x122   :  { %v720_v40 = vrot.slane %v719_v38, 2  ;;  %v726_v41 = vadd.f32 %v725_v39, %v724_v36 }
 0x124   :  { %v721_v42 = vadd.f32 %v720_v40, %v719_v38  ;;  %v727_v43 = vrot.slane %v726_v41, 2 }
 0x126   :  { %v722_v44 = vrot.slane %v721_v42, 1  ;;  %v728_v45 = vadd.f32 %v727_v43, %v726_v41 }
 0x128   :  { %v729_v46 = vrot.slane %v728_v45, 1  ;;  %v723_v47 = vadd.f32 %v722_v44, %v721_v42 }
 0x12a   :  { %v730_v48 = vadd.f32 %v729_v46, %v728_v45 }
 0x12c   :  { %v732_v49 = vsel %vm731_vm0, %v723_v47, %v730_v48 }
 0x12d   :  { %733 = vst [vmem:[%s1209_s3] sm:$0x3] %v732_v49 }

// kernel: autoencoder_forward.23
= control target key start
LH: loop header
LB: loop body
LE: loop exit
PB: predicated region body
PF: predicated region fallthrough
CT: control target
= control target key end

     0   :  { %vm1146_vm0 = vcmask 1040384   ;;  %s2060_s1 = inlined_call_operand.vmem [shape: bf16[1152,256], index: 1, kind: input, shape index: {}]   ;;  %s2061_s0 = inlined_call_operand.vmem [shape: bf16[8,1152], index: 0, kind: input, shape index: {}]   ;;  %s2062_s2 = inlined_call_operand.vmem [shape: bf16[8,256], index: 2, kind: output, shape index: {0}]   ;;  %s2063_s3 = inlined_call_operand.vmem [shape: f32[1,2,256], index: 3, kind: output, shape index: {1}]  }
   0x1   :  { %v1349_v0 = vld [vmem:[%s2060_s1 + $0x4] ss:$8 sps:$4 sm:$0xff]   ;;  %v1353_v2 = vld [vmem:[%s2060_s1] ss:$8 sps:$4 sm:$0xff]   ;;  %v1355_v4 = vld [vmem:[%s2060_s1 + $0x14] ss:$8 sps:$4 sm:$0xff]  }
   0x2   :  { %v1351_v1 = vld [vmem:[%s2060_s1 + $0x204] ss:$8 sps:$4 sm:$0xff]   ;;  %915 = vmatprep.subr.bf16.mxu1 %v1349_v0  ;;  %v1354_v3 = vld [vmem:[%s2060_s1 + $0x200] ss:$8 sps:$4 sm:$0xff]   ;;  %v1357_v5 = vld [vmem:[%s2060_s1 + $0x214] ss:$8 sps:$4 sm:$0xff]  }
   0x3   :  { %997 = vmatprep.subr.bf16.mxu0 %v1351_v1  ;;  %916 = vmatpush1.bf16.msra.mxu1 %v1353_v2  ;;  %v1359_v6 = vld [vmem:[%s2060_s1 + $0x10] ss:$8 sps:$4 sm:$0xff]   ;;  %v1361_v8 = vld [vmem:[%s2060_s1 + $0x24] ss:$8 sps:$4 sm:$0xff]   ;;  %v1365_v10 = vld [vmem:[%s2060_s1 + $0x20] ss:$8 sps:$4 sm:$0xff]  }
   0x4   :  { %998 = vmatpush1.bf16.msra.mxu0 %v1354_v3  ;;  %917 = vmatprep.subr.bf16.mxu1 %v1355_v4  ;;  %v1360_v7 = vld [vmem:[%s2060_s1 + $0x210] ss:$8 sps:$4 sm:$0xff]   ;;  %v1363_v9 = vld [vmem:[%s2060_s1 + $0x224] ss:$8 sps:$4 sm:$0xff]   ;;  %v1366_v11 = vld [vmem:[%s2060_s1 + $0x220] ss:$8 sps:$4 sm:$0xff]  }
   0x5   :  { %999 = vmatprep.subr.bf16.mxu0 %v1357_v5  ;;  %v1367_v12 = vld [vmem:[%s2060_s1 + $0x34] ss:$8 sps:$4 sm:$0xff]   ;;  %v1371_v14 = vld [vmem:[%s2060_s1 + $0x30] ss:$8 sps:$4 sm:$0xff]   ;;  %v1373_v16 = vld [vmem:[%s2060_s1 + $0x44] ss:$8 sps:$4 sm:$0xff]  }
   0x6   :  { %v1369_v13 = vld [vmem:[%s2060_s1 + $0x234] ss:$8 sps:$4 sm:$0xff]   ;;  %v1372_v15 = vld [vmem:[%s2060_s1 + $0x230] ss:$8 sps:$4 sm:$0xff]   ;;  %v1375_v17 = vld [vmem:[%s2060_s1 + $0x244] ss:$8 sps:$4 sm:$0xff]  }
   0x7   :  { %918 = vmatpush1.bf16.msra.mxu1 %v1359_v6  ;;  %v1377_v18 = vld [vmem:[%s2060_s1 + $0x40] ss:$8 sps:$4 sm:$0xff]   ;;  %v1379_v20 = vld [vmem:[%s2060_s1 + $0x54] ss:$8 sps:$4 sm:$0xff]   ;;  %v1383_v22 = vld [vmem:[%s2060_s1 + $0x50] ss:$8 sps:$4 sm:$0xff]  }
   0x8   :  { %1000 = vmatpush1.bf16.msra.mxu0 %v1360_v7  ;;  %919 = vmatprep.subr.bf16.mxu1 %v1361_v8  ;;  %v1378_v19 = vld [vmem:[%s2060_s1 + $0x240] ss:$8 sps:$4 sm:$0xff]   ;;  %v1381_v21 = vld [vmem:[%s2060_s1 + $0x254] ss:$8 sps:$4 sm:$0xff]   ;;  %v1384_v23 = vld [vmem:[%s2060_s1 + $0x250] ss:$8 sps:$4 sm:$0xff]  }
   0x9   :  { %1001 = vmatprep.subr.bf16.mxu0 %v1363_v9  ;;  %v1385_v24 = vld [vmem:[%s2060_s1 + $0x64] ss:$8 sps:$4 sm:$0xff]   ;;  %v1389_v26 = vld [vmem:[%s2060_s1 + $0x60] ss:$8 sps:$4 sm:$0xff]   ;;  %v1391_v28 = vld [vmem:[%s2060_s1 + $0x74] ss:$8 sps:$4 sm:$0xff]  }
   0xa   :  { %v1387_v25 = vld [vmem:[%s2060_s1 + $0x264] ss:$8 sps:$4 sm:$0xff]   ;;  %v1390_v27 = vld [vmem:[%s2060_s1 + $0x260] ss:$8 sps:$4 sm:$0xff]   ;;  %v1393_v29 = vld [vmem:[%s2060_s1 + $0x274] ss:$8 sps:$4 sm:$0xff]  }
   0xb   :  { %920 = vmatpush1.bf16.msra.mxu1 %v1365_v10  ;;  %v1395_v30 = vld [vmem:[%s2060_s1 + $0x70] ss:$8 sps:$4 sm:$0xff]   ;;  %v1397_v32 = vld [vmem:[%s2060_s1 + $0x84] ss:$8 sps:$4 sm:$0xff]   ;;  %v1401_v34 = vld [vmem:[%s2060_s1 + $0x80] ss:$8 sps:$4 sm:$0xff]  }
   0xc   :  { %1002 = vmatpush1.bf16.msra.mxu0 %v1366_v11  ;;  %921 = vmatprep.subr.bf16.mxu1 %v1367_v12  ;;  %v1396_v31 = vld [vmem:[%s2060_s1 + $0x270] ss:$8 sps:$4 sm:$0xff]   ;;  %v1399_v33 = vld [vmem:[%s2060_s1 + $0x284] ss:$8 sps:$4 sm:$0xff]   ;;  %v1402_v35 = vld [vmem:[%s2060_s1 + $0x280] ss:$8 sps:$4 sm:$0xff]  }
   0xd   :  { %1003 = vmatprep.subr.bf16.mxu0 %v1369_v13  ;;  %v1403_v36 = vld [vmem:[%s2060_s1 + $0x94] ss:$8 sps:$4 sm:$0xff]   ;;  %v1407_v38 = vld [vmem:[%s2060_s1 + $0x90] ss:$8 sps:$4 sm:$0xff]   ;;  %v1409_v40 = vld [vmem:[%s2060_s1 + $0xa4] ss:$8 sps:$4 sm:$0xff]  }
   0xe   :  { %v1405_v37 = vld [vmem:[%s2060_s1 + $0x294] ss:$8 sps:$4 sm:$0xff]   ;;  %v1408_v39 = vld [vmem:[%s2060_s1 + $0x290] ss:$8 sps:$4 sm:$0xff]   ;;  %v1411_v41 = vld [vmem:[%s2060_s1 + $0x2a4] ss:$8 sps:$4 sm:$0xff]  }
   0xf   :  { %922 = vmatpush1.bf16.msra.mxu1 %v1371_v14  ;;  %v1413_v42 = vld [vmem:[%s2060_s1 + $0xa0] ss:$8 sps:$4 sm:$0xff]   ;;  %v1415_v44 = vld [vmem:[%s2060_s1 + $0xb4] ss:$8 sps:$4 sm:$0xff]   ;;  %v1419_v47 = vld [vmem:[%s2060_s1 + $0xb0] ss:$8 sps:$4 sm:$0xff]  }
  0x10   :  { %1004 = vmatpush1.bf16.msra.mxu0 %v1372_v15  ;;  %923 = vmatprep.subr.bf16.mxu1 %v1373_v16  ;;  %v1414_v43 = vld [vmem:[%s2060_s1 + $0x2a0] ss:$8 sps:$4 sm:$0xff]   ;;  %v1417_v45 = vld [vmem:[%s2060_s1 + $0x2b4] ss:$8 sps:$4 sm:$0xff]   ;;  %v1420_v49 = vld [vmem:[%s2060_s1 + $0x2b0] ss:$8 sps:$4 sm:$0xff]  }
  0x11   :  { %1005 = vmatprep.subr.bf16.mxu0 %v1375_v17  ;;  %v14_v46 = vld [vmem:[%s2061_s0] sm:$0xff]  ;;  %v16_v50 = vld [vmem:[%s2061_s0 + $0x10] sm:$0xff] }
  0x12   :  { %v1179_v48 = vcombine.high %v14_v46, %v14_v46  ;;  %v1421_v51 = vld [vmem:[%s2060_s1 + $0xc4] ss:$8 sps:$4 sm:$0xff]   ;;  %v1183_v53 = vcombine.high %v16_v50, %v16_v50  ;;  %v1425_v54 = vld [vmem:[%s2060_s1 + $0xc0] ss:$8 sps:$4 sm:$0xff]   ;;  %v1427_v56 = vld [vmem:[%s2060_s1 + $0xd4] ss:$8 sps:$4 sm:$0xff]   ;;  %v1178_v6 = vcombine.low %v14_v46, %v14_v46  ;;  %v1182_v7 = vcombine.low %v16_v50, %v16_v50 }
  0x13   :  { %924 = vmatpush1.bf16.msra.mxu1 %v1377_v18  ;;  %v1423_v52 = vld [vmem:[%s2060_s1 + $0x2c4] ss:$8 sps:$4 sm:$0xff]   ;;  %v1426_v55 = vld [vmem:[%s2060_s1 + $0x2c0] ss:$8 sps:$4 sm:$0xff]   ;;  %v1429_v57 = vld [vmem:[%s2060_s1 + $0x2d4] ss:$8 sps:$4 sm:$0xff]  }
  0x14   :  { %1006 = vmatpush1.bf16.msra.mxu0 %v1378_v19  ;;  %925 = vmatprep.subr.bf16.mxu1 %v1379_v20  ;;  %v1431_v58 = vld [vmem:[%s2060_s1 + $0xd0] ss:$8 sps:$4 sm:$0xff]   ;;  %v1433_v60 = vld [vmem:[%s2060_s1 + $0xe4] ss:$8 sps:$4 sm:$0xff]   ;;  %v1437_v62 = vld [vmem:[%s2060_s1 + $0xe0] ss:$8 sps:$4 sm:$0xff]  }
  0x15   :  { %1007 = vmatprep.subr.bf16.mxu0 %v1381_v21  ;;  %947 = vmatprep.mubr.bf16.mxu1 %v1179_v48  ;;  %v1432_v59 = vld [vmem:[%s2060_s1 + $0x2d0] ss:$8 sps:$4 sm:$0xff]   ;;  %v1435_v61 = vld [vmem:[%s2060_s1 + $0x2e4] ss:$8 sps:$4 sm:$0xff]   ;;  %v1438_v63 = vld [vmem:[%s2060_s1 + $0x2e0] ss:$8 sps:$4 sm:$0xff]  }
  0x16   :  { %1029 = vmatprep.mubr.bf16.mxu0 %v1183_v53  ;;  %v1439_v0 = vld [vmem:[%s2060_s1 + $0xf4] ss:$8 sps:$4 sm:$0xff]   ;;  %v1443_v2 = vld [vmem:[%s2060_s1 + $0xf0] ss:$8 sps:$4 sm:$0xff]   ;;  %v1449_v4 = vld [vmem:[%s2060_s1 + $0x104] ss:$8 sps:$4 sm:$0xff]  }
  0x17   :  { %926 = vmatpush1.bf16.msra.mxu1 %v1383_v22  ;;  %v1441_v1 = vld [vmem:[%s2060_s1 + $0x2f4] ss:$8 sps:$4 sm:$0xff]   ;;  %v1444_v3 = vld [vmem:[%s2060_s1 + $0x2f0] ss:$8 sps:$4 sm:$0xff]   ;;  %v1454_v5 = vld [vmem:[%s2060_s1 + $0x304] ss:$8 sps:$4 sm:$0xff]  }
  0x18   :  { %1008 = vmatpush1.bf16.msra.mxu0 %v1384_v23  ;;  %927 = vmatprep.subr.bf16.mxu1 %v1385_v24  ;;  %v1447_v8 = vld [vmem:[%s2060_s1 + $0x100] ss:$8 sps:$4 sm:$0xff]   ;;  %v1457_v10 = vld [vmem:[%s2060_s1 + $0x114] ss:$8 sps:$4 sm:$0xff]   ;;  %v1455_v12 = vld [vmem:[%s2060_s1 + $0x110] ss:$8 sps:$4 sm:$0xff]  }
  0x19   :  { %1009 = vmatprep.subr.bf16.mxu0 %v1387_v25  ;;  %v1452_v9 = vld [vmem:[%s2060_s1 + $0x300] ss:$8 sps:$4 sm:$0xff]   ;;  %v1460_v11 = vld [vmem:[%s2060_s1 + $0x314] ss:$8 sps:$4 sm:$0xff]   ;;  %v1458_v13 = vld [vmem:[%s2060_s1 + $0x310] ss:$8 sps:$4 sm:$0xff]  }
  0x1a   :  { %v1463_v14 = vld [vmem:[%s2060_s1 + $0x124] ss:$8 sps:$4 sm:$0xff]   ;;  %v1461_v16 = vld [vmem:[%s2060_s1 + $0x120] ss:$8 sps:$4 sm:$0xff]   ;;  %v1469_v18 = vld [vmem:[%s2060_s1 + $0x134] ss:$8 sps:$4 sm:$0xff]  }
  0x1b   :  { %928 = vmatpush1.bf16.msra.mxu1 %v1389_v26  ;;  %v1466_v15 = vld [vmem:[%s2060_s1 + $0x324] ss:$8 sps:$4 sm:$0xff]   ;;  %v1464_v17 = vld [vmem:[%s2060_s1 + $0x320] ss:$8 sps:$4 sm:$0xff]   ;;  %v1472_v19 = vld [vmem:[%s2060_s1 + $0x334] ss:$8 sps:$4 sm:$0xff]  }
  0x1c   :  { %1010 = vmatpush1.bf16.msra.mxu0 %v1390_v27  ;;  %929 = vmatprep.subr.bf16.mxu1 %v1391_v28  ;;  %v1467_v20 = vld [vmem:[%s2060_s1 + $0x130] ss:$8 sps:$4 sm:$0xff]   ;;  %v1475_v22 = vld [vmem:[%s2060_s1 + $0x144] ss:$8 sps:$4 sm:$0xff]   ;;  %v1473_v24 = vld [vmem:[%s2060_s1 + $0x140] ss:$8 sps:$4 sm:$0xff]  }
  0x1d   :  { %1011 = vmatprep.subr.bf16.mxu0 %v1393_v29  ;;  %v1470_v21 = vld [vmem:[%s2060_s1 + $0x330] ss:$8 sps:$4 sm:$0xff]   ;;  %v1478_v23 = vld [vmem:[%s2060_s1 + $0x344] ss:$8 sps:$4 sm:$0xff]   ;;  %v1476_v25 = vld [vmem:[%s2060_s1 + $0x340] ss:$8 sps:$4 sm:$0xff]  }
  0x1e   :  { %v1481_v26 = vld [vmem:[%s2060_s1 + $0x154] ss:$8 sps:$4 sm:$0xff]   ;;  %v1479_v28 = vld [vmem:[%s2060_s1 + $0x150] ss:$8 sps:$4 sm:$0xff]   ;;  %v1511_v50 = vld [vmem:[%s2060_s1 + $0x1a4] ss:$8 sps:$4 sm:$0xff]  }
  0x1f   :  { %930 = vmatpush1.bf16.msra.mxu1 %v1395_v30  ;;  %v1484_v27 = vld [vmem:[%s2060_s1 + $0x354] ss:$8 sps:$4 sm:$0xff]   ;;  %v1482_v29 = vld [vmem:[%s2060_s1 + $0x350] ss:$8 sps:$4 sm:$0xff]   ;;  %v1487_v30 = vld [vmem:[%s2060_s1 + $0x164] ss:$8 sps:$4 sm:$0xff]  }
  0x20   :  { %1012 = vmatpush1.bf16.msra.mxu0 %v1396_v31  ;;  %931 = vmatprep.subr.bf16.mxu1 %v1397_v32  ;;  %v1490_v31 = vld [vmem:[%s2060_s1 + $0x364] ss:$8 sps:$4 sm:$0xff]   ;;  %v1505_v46 = vld [vmem:[%s2060_s1 + $0x194] ss:$8 sps:$4 sm:$0xff]   ;;  %v1503_v48 = vld [vmem:[%s2060_s1 + $0x190] ss:$8 sps:$4 sm:$0xff]  }
  0x21   :  { %1013 = vmatprep.subr.bf16.mxu0 %v1399_v33  ;;  %v1874_v32 = vld [vmem:[%s2061_s0 + $0x8] sm:$0xff]  ;;  %v1879_v33 = vld [vmem:[%s2061_s0 + $0x18] sm:$0xff] }
  0x22   :  { %v1512_v53 = vld [vmem:[%s2060_s1 + $0x3a0] ss:$8 sps:$4 sm:$0xff]  }
  0x23   :  { %932 = vmatpush1.bf16.msra.mxu1 %v1401_v34  ;;  %v1485_v34 = vld [vmem:[%s2060_s1 + $0x160] ss:$8 sps:$4 sm:$0xff]  }
  0x24   :  { %1014 = vmatpush1.bf16.msra.mxu0 %v1402_v35  ;;  %933 = vmatprep.subr.bf16.mxu1 %v1403_v36  ;;  %v1488_v35 = vld [vmem:[%s2060_s1 + $0x360] ss:$8 sps:$4 sm:$0xff]   ;;  %v1181_v36 = vcombine.high %v1874_v32, %v1874_v32 }
  0x25   :  { %1015 = vmatprep.subr.bf16.mxu0 %v1405_v37  ;;  %v1185_v37 = vcombine.high %v1879_v33, %v1879_v33 }
  0x27   :  { %934 = vmatpush1.bf16.msra.mxu1 %v1407_v38  ;;  %v1493_v38 = vld [vmem:[%s2060_s1 + $0x174] ss:$8 sps:$4 sm:$0xff]  }
  0x28   :  { %1016 = vmatpush1.bf16.msra.mxu0 %v1408_v39  ;;  %935 = vmatprep.subr.bf16.mxu1 %v1409_v40  ;;  %v1496_v39 = vld [vmem:[%s2060_s1 + $0x374] ss:$8 sps:$4 sm:$0xff]   ;;  %v1491_v40 = vld [vmem:[%s2060_s1 + $0x170] ss:$8 sps:$4 sm:$0xff]  }
  0x29   :  { %1017 = vmatprep.subr.bf16.mxu0 %v1411_v41  ;;  %v1494_v41 = vld [vmem:[%s2060_s1 + $0x370] ss:$8 sps:$4 sm:$0xff]  }
  0x2b   :  { %936 = vmatpush1.bf16.msra.mxu1 %v1413_v42  ;;  %v1499_v42 = vld [vmem:[%s2060_s1 + $0x184] ss:$8 sps:$4 sm:$0xff]  }
  0x2c   :  { %1018 = vmatpush1.bf16.msra.mxu0 %v1414_v43  ;;  %937 = vmatprep.subr.bf16.mxu1 %v1415_v44  ;;  %v1502_v43 = vld [vmem:[%s2060_s1 + $0x384] ss:$8 sps:$4 sm:$0xff]   ;;  %v1497_v44 = vld [vmem:[%s2060_s1 + $0x180] ss:$8 sps:$4 sm:$0xff]  }
  0x2d   :  { %1019 = vmatprep.subr.bf16.mxu0 %v1417_v45  ;;  %v1500_v45 = vld [vmem:[%s2060_s1 + $0x380] ss:$8 sps:$4 sm:$0xff]  }
  0x2f   :  { %938 = vmatpush1.bf16.msra.mxu1 %v1419_v47  ;;  %v1508_v47 = vld [vmem:[%s2060_s1 + $0x394] ss:$8 sps:$4 sm:$0xff]  }
  0x30   :  { %1020 = vmatpush1.bf16.msra.mxu0 %v1420_v49  ;;  %939 = vmatprep.subr.bf16.mxu1 %v1421_v51  ;;  %v1506_v49 = vld [vmem:[%s2060_s1 + $0x390] ss:$8 sps:$4 sm:$0xff]   ;;  %v1514_v51 = vld [vmem:[%s2060_s1 + $0x3a4] ss:$8 sps:$4 sm:$0xff]  }
  0x31   :  { %1021 = vmatprep.subr.bf16.mxu0 %v1423_v52  ;;  %v1509_v52 = vld [vmem:[%s2060_s1 + $0x1a0] ss:$8 sps:$4 sm:$0xff]  }
  0x33   :  { %940 = vmatpush1.bf16.msra.mxu1 %v1425_v54  ;;  %v1517_v54 = vld [vmem:[%s2060_s1 + $0x1b4] ss:$8 sps:$4 sm:$0xff]  }
  0x34   :  { %1022 = vmatpush1.bf16.msra.mxu0 %v1426_v55  ;;  %941 = vmatprep.subr.bf16.mxu1 %v1427_v56  ;;  %v1520_v55 = vld [vmem:[%s2060_s1 + $0x3b4] ss:$8 sps:$4 sm:$0xff]   ;;  %v1515_v56 = vld [vmem:[%s2060_s1 + $0x1b0] ss:$8 sps:$4 sm:$0xff]  }
  0x35   :  { %1023 = vmatprep.subr.bf16.mxu0 %v1429_v57  ;;  %v1518_v57 = vld [vmem:[%s2060_s1 + $0x3b0] ss:$8 sps:$4 sm:$0xff]  }
  0x37   :  { %942 = vmatpush1.bf16.msra.mxu1 %v1431_v58  ;;  %v1523_v58 = vld [vmem:[%s2060_s1 + $0x1c4] ss:$8 sps:$4 sm:$0xff]  }
  0x38   :  { %1024 = vmatpush1.bf16.msra.mxu0 %v1432_v59  ;;  %943 = vmatprep.subr.bf16.mxu1 %v1433_v60  ;;  %v1526_v59 = vld [vmem:[%s2060_s1 + $0x3c4] ss:$8 sps:$4 sm:$0xff]   ;;  %v1521_v60 = vld [vmem:[%s2060_s1 + $0x1c0] ss:$8 sps:$4 sm:$0xff]  }
  0x39   :  { %1025 = vmatprep.subr.bf16.mxu0 %v1435_v61  ;;  %v1524_v61 = vld [vmem:[%s2060_s1 + $0x3c0] ss:$8 sps:$4 sm:$0xff]  }
  0x3b   :  { %944 = vmatpush1.bf16.msra.mxu1 %v1437_v62  ;;  %v1529_v62 = vld [vmem:[%s2060_s1 + $0x1d4] ss:$8 sps:$4 sm:$0xff]  }
  0x3c   :  { %1026 = vmatpush1.bf16.msra.mxu0 %v1438_v63  ;;  %945 = vmatprep.subr.bf16.mxu1 %v1439_v0  ;;  %v1532_v63 = vld [vmem:[%s2060_s1 + $0x3d4] ss:$8 sps:$4 sm:$0xff]   ;;  %v1527_v0 = vld [vmem:[%s2060_s1 + $0x1d0] ss:$8 sps:$4 sm:$0xff]  }
  0x3d   :  { %1027 = vmatprep.subr.bf16.mxu0 %v1441_v1  ;;  %v1530_v1 = vld [vmem:[%s2060_s1 + $0x3d0] ss:$8 sps:$4 sm:$0xff]  }
  0x3f   :  { %946 = vmatpush1.bf16.msra.mxu1 %v1443_v2  ;;  %v1535_v2 = vld [vmem:[%s2060_s1 + $0x1e4] ss:$8 sps:$4 sm:$0xff]  }
  0x40   :  { %1028 = vmatpush1.bf16.msra.mxu0 %v1444_v3  ;;  %956 = vmatprep.subr.bf16.mxu1 %v1449_v4  ;;  %v1538_v3 = vld [vmem:[%s2060_s1 + $0x3e4] ss:$8 sps:$4 sm:$0xff]   ;;  %v1533_v4 = vld [vmem:[%s2060_s1 + $0x1e0] ss:$8 sps:$4 sm:$0xff]  }
  0x41   :  { %1038 = vmatprep.subr.bf16.mxu0 %v1454_v5  ;;  %v1536_v5 = vld [vmem:[%s2060_s1 + $0x3e0] ss:$8 sps:$4 sm:$0xff]  }
  0x42   :  { %948 = vmatmul.mubr.bf16.vlgmr.msra.gmra.mrb[0].mxu1 %v1178_v6  ;;  %v1541_v6 = vld [vmem:[%s2060_s1 + $0x1f4] ss:$8 sps:$4 sm:$0xff]  }
  0x43   :  { %1030 = vmatmul.mubr.bf16.vlgmr.msra.gmra.mrb[0].mxu0 %v1182_v7  ;;  %957 = vmatpush1.bf16.msra.mxu1 %v1447_v8  ;;  %v1544_v7 = vld [vmem:[%s2060_s1 + $0x3f4] ss:$8 sps:$4 sm:$0xff]   ;;  %v1539_v8 = vld [vmem:[%s2060_s1 + $0x1f0] ss:$8 sps:$4 sm:$0xff]  }
  0x44   :  { %1039 = vmatpush1.bf16.msra.mxu0 %v1452_v9  ;;  %958 = vmatprep.subr.bf16.mxu1 %v1457_v10  ;;  %v1542_v9 = vld [vmem:[%s2060_s1 + $0x3f0] ss:$8 sps:$4 sm:$0xff]   ;;  %v1551_v10 = vld [vmem:[%s2060_s1 + $0x404] ss:$8 sps:$4 sm:$0xff]  }
  0x45   :  { %1040 = vmatprep.subr.bf16.mxu0 %v1460_v11  ;;  %988 = vmatprep.mubr.bf16.mxu1 %v1181_v36  ;;  %v1180_v11 = vcombine.low %v1874_v32, %v1874_v32 }
  0x46   :  { %1070 = vmatprep.mubr.bf16.mxu0 %v1185_v37 }
  0x47   :  { %959 = vmatpush1.bf16.msra.mxu1 %v1455_v12  ;;  %v1184_v12 = vcombine.low %v1879_v33, %v1879_v33 }
  0x48   :  { %1041 = vmatpush1.bf16.msra.mxu0 %v1458_v13  ;;  %960 = vmatprep.subr.bf16.mxu1 %v1463_v14  ;;  %v1549_v13 = vld [vmem:[%s2060_s1 + $0x400] ss:$8 sps:$4 sm:$0xff]   ;;  %v1554_v14 = vld [vmem:[%s2060_s1 + $0x414] ss:$8 sps:$4 sm:$0xff]  }
  0x49   :  { %1042 = vmatprep.subr.bf16.mxu0 %v1466_v15  ;;  %v1552_v15 = vld [vmem:[%s2060_s1 + $0x410] ss:$8 sps:$4 sm:$0xff]  }
  0x4b   :  { %961 = vmatpush1.bf16.msra.mxu1 %v1461_v16  ;;  %v1574_v16 = vmov 0  }
  0x4c   :  { %1043 = vmatpush1.bf16.msra.mxu0 %v1464_v17  ;;  %962 = vmatprep.subr.bf16.mxu1 %v1469_v18  ;;  %v1557_v17 = vld [vmem:[%s2060_s1 + $0x424] ss:$8 sps:$4 sm:$0xff]   ;;  %v1555_v18 = vld [vmem:[%s2060_s1 + $0x420] ss:$8 sps:$4 sm:$0xff]  }
  0x4d   :  { %1044 = vmatprep.subr.bf16.mxu0 %v1472_v19  ;;  %v1560_v19 = vld [vmem:[%s2060_s1 + $0x434] ss:$8 sps:$4 sm:$0xff]  }
  0x4f   :  { %963 = vmatpush1.bf16.msra.mxu1 %v1467_v20  ;;  %v1558_v20 = vld [vmem:[%s2060_s1 + $0x430] ss:$8 sps:$4 sm:$0xff]  }
  0x50   :  { %1045 = vmatpush1.bf16.msra.mxu0 %v1470_v21  ;;  %964 = vmatprep.subr.bf16.mxu1 %v1475_v22  ;;  %v1563_v21 = vld [vmem:[%s2060_s1 + $0x444] ss:$8 sps:$4 sm:$0xff]   ;;  %v1561_v22 = vld [vmem:[%s2060_s1 + $0x440] ss:$8 sps:$4 sm:$0xff]  }
  0x51   :  { %1046 = vmatprep.subr.bf16.mxu0 %v1478_v23  ;;  %v1566_v23 = vld [vmem:[%s2060_s1 + $0x454] ss:$8 sps:$4 sm:$0xff]  }
  0x53   :  { %965 = vmatpush1.bf16.msra.mxu1 %v1473_v24  ;;  %v1564_v24 = vld [vmem:[%s2060_s1 + $0x450] ss:$8 sps:$4 sm:$0xff]  }
  0x54   :  { %1047 = vmatpush1.bf16.msra.mxu0 %v1476_v25  ;;  %966 = vmatprep.subr.bf16.mxu1 %v1481_v26  ;;  %v1569_v25 = vld [vmem:[%s2060_s1 + $0x464] ss:$8 sps:$4 sm:$0xff]   ;;  %v1567_v26 = vld [vmem:[%s2060_s1 + $0x460] ss:$8 sps:$4 sm:$0xff]  }
  0x55   :  { %1048 = vmatprep.subr.bf16.mxu0 %v1484_v27  ;;  %v1572_v27 = vld [vmem:[%s2060_s1 + $0x474] ss:$8 sps:$4 sm:$0xff]  }
  0x57   :  { %967 = vmatpush1.bf16.msra.mxu1 %v1479_v28  ;;  %v1570_v28 = vld [vmem:[%s2060_s1 + $0x470] ss:$8 sps:$4 sm:$0xff]  }
  0x58   :  { %1049 = vmatpush1.bf16.msra.mxu0 %v1482_v29  ;;  %968 = vmatprep.subr.bf16.mxu1 %v1487_v30  ;;  %v1573_v29 = vld [vmem:[%s2061_s0 + $0x20] ss:$0 sps:$4 sm:$0xff]  }
  0x59   :  { %1050 = vmatprep.subr.bf16.mxu0 %v1490_v31 }
  0x5b   :  { %969 = vmatpush1.bf16.msra.mxu1 %v1485_v34 }
  0x5c   :  { %1051 = vmatpush1.bf16.msra.mxu0 %v1488_v35  ;;  %970 = vmatprep.subr.bf16.mxu1 %v1493_v38 }
  0x5d   :  { %1052 = vmatprep.subr.bf16.mxu0 %v1496_v39 }
  0x5f   :  { %971 = vmatpush1.bf16.msra.mxu1 %v1491_v40 }
  0x60   :  { %1053 = vmatpush1.bf16.msra.mxu0 %v1494_v41  ;;  %972 = vmatprep.subr.bf16.mxu1 %v1499_v42 }
  0x61   :  { %1054 = vmatprep.subr.bf16.mxu0 %v1502_v43 }
  0x63   :  { %973 = vmatpush1.bf16.msra.mxu1 %v1497_v44 }
  0x64   :  { %1055 = vmatpush1.bf16.msra.mxu0 %v1500_v45  ;;  %974 = vmatprep.subr.bf16.mxu1 %v1505_v46 }
  0x65   :  { %1056 = vmatprep.subr.bf16.mxu0 %v1508_v47 }
  0x67   :  { %975 = vmatpush1.bf16.msra.mxu1 %v1503_v48 }
  0x68   :  { %1057 = vmatpush1.bf16.msra.mxu0 %v1506_v49  ;;  %976 = vmatprep.subr.bf16.mxu1 %v1511_v50 }
  0x69   :  { %1058 = vmatprep.subr.bf16.mxu0 %v1514_v51 }
  0x6b   :  { %977 = vmatpush1.bf16.msra.mxu1 %v1509_v52 }
  0x6c   :  { %1059 = vmatpush1.bf16.msra.mxu0 %v1512_v53  ;;  %978 = vmatprep.subr.bf16.mxu1 %v1517_v54 }
  0x6d   :  { %1060 = vmatprep.subr.bf16.mxu0 %v1520_v55 }
  0x6f   :  { %979 = vmatpush1.bf16.msra.mxu1 %v1515_v56 }
  0x70   :  { %1061 = vmatpush1.bf16.msra.mxu0 %v1518_v57  ;;  %980 = vmatprep.subr.bf16.mxu1 %v1523_v58 }
  0x71   :  { %1062 = vmatprep.subr.bf16.mxu0 %v1526_v59 }
  0x73   :  { %981 = vmatpush1.bf16.msra.mxu1 %v1521_v60 }
  0x74   :  { %1063 = vmatpush1.bf16.msra.mxu0 %v1524_v61  ;;  %982 = vmatprep.subr.bf16.mxu1 %v1529_v62 }
  0x75   :  { %1064 = vmatprep.subr.bf16.mxu0 %v1532_v63 }
  0x77   :  { %983 = vmatpush1.bf16.msra.mxu1 %v1527_v0 }
  0x78   :  { %1065 = vmatpush1.bf16.msra.mxu0 %v1530_v1  ;;  %984 = vmatprep.subr.bf16.mxu1 %v1535_v2 }
  0x79   :  { %1066 = vmatprep.subr.bf16.mxu0 %v1538_v3 }
  0x7b   :  { %985 = vmatpush1.bf16.msra.mxu1 %v1533_v4 }
  0x7c   :  { %1067 = vmatpush1.bf16.msra.mxu0 %v1536_v5  ;;  %986 = vmatprep.subr.bf16.mxu1 %v1541_v6 }
  0x7d   :  { %1068 = vmatprep.subr.bf16.mxu0 %v1544_v7 }
  0x7f   :  { %987 = vmatpush1.bf16.msra.mxu1 %v1539_v8 }
  0x80   :  { %1069 = vmatpush1.bf16.msra.mxu0 %v1542_v9 }
  0x81   :  { %1079 = vmatprep.subr.bf16.mxu0 %v1551_v10 }
  0x82   :  { %989 = vmatmul.mubr.bf16.vlgmr.msra.gmra.mrb[0].mxu1 %v1180_v11 }
  0x83   :  { %1071 = vmatmul.mubr.bf16.vlgmr.msra.gmra.mrb[0].mxu0 %v1184_v12 }
  0x84   :  { %1080 = vmatpush1.bf16.msra.mxu0 %v1549_v13  ;;  %1111 = vmatprep.mubr.bf16.mxu0 %v1574_v16 }
  0x85   :  { %1081 = vmatprep.subr.bf16.mxu0 %v1554_v14 }
  0x88   :  { %1082 = vmatpush1.bf16.msra.mxu0 %v1552_v15 }
  0x89   :  { %1083 = vmatprep.subr.bf16.mxu0 %v1557_v17 }
  0x8c   :  { %1084 = vmatpush1.bf16.msra.mxu0 %v1555_v18 }
  0x8d   :  { %1085 = vmatprep.subr.bf16.mxu0 %v1560_v19 }
  0x90   :  { %1086 = vmatpush1.bf16.msra.mxu0 %v1558_v20 }
  0x91   :  { %1087 = vmatprep.subr.bf16.mxu0 %v1563_v21 }
  0x94   :  { %1088 = vmatpush1.bf16.msra.mxu0 %v1561_v22 }
  0x95   :  { %1089 = vmatprep.subr.bf16.mxu0 %v1566_v23 }
  0x98   :  { %1090 = vmatpush1.bf16.msra.mxu0 %v1564_v24 }
  0x99   :  { %1091 = vmatprep.subr.bf16.mxu0 %v1569_v25 }
  0x9c   :  { %1092 = vmatpush1.bf16.msra.mxu0 %v1567_v26 }
  0x9d   :  { %1093 = vmatprep.subr.bf16.mxu0 %v1572_v27 }
  0xa0   :  { %1094 = vmatpush1.bf16.msra.mxu0 %v1570_v28 }
  0xa3   :  { %1112 = vmatmul.mubr.bf16.vlgmr.msra.gmra.mrb[0].mxu0 %v1573_v29 }
 0x155   :  { %v990_v30 = vpop.f32.mrb[0].mxu1 }
 0x156   :  { %v992_v31 = vpop.f32.mrb[1].mxu1 }
 0x157   :  { %v994_v32 = vpop.f32.mrb[2].mxu1 }
 0x158   :  { %v995_v33 = vpop.f32.mrb[3].mxu1 }
 0x176   :  { %v1113_v34 = vpop.f32.mrb[0].mxu0 }
 0x177   :  { %v1334_v35 = vadd.f32 %v1113_v34, %v990_v30  ;;  %v1115_v36 = vpop.f32.mrb[1].mxu0 }
 0x178   :  { %v1335_v37 = vadd.f32 %v1115_v36, %v992_v31  ;;  %v1117_v38 = vpop.f32.mrb[2].mxu0 }
 0x179   :  { %v1120_v39 = vrot.slane %v1334_v35, 4  ;;  %v1132_v40 = vmul.f32 %v1334_v35, %v1334_v35  ;;  %v1118_v41 = vpop.f32.mrb[3].mxu0 }
 0x17a   :  { %v1126_v42 = vrot.slane %v1335_v37, 4  ;;  %v1133_v43 = vmul.f32 %v1335_v37, %v1335_v37  ;;  %v1333_v44 = vpack.c.bf16 %v1335_v37, %v1334_v35 }
 0x17b   :  { %v1121_v45 = vadd.f32 %v1334_v35, %v1120_v39  ;;  %v1134_v46 = vrot.slane %v1132_v40, 4 }
 0x17c   :  { %v1127_v47 = vadd.f32 %v1335_v37, %v1126_v42  ;;  %v1140_v48 = vrot.slane %v1133_v43, 4  ;;  %1169 = vst [vmem:[%s2062_s2] sm:$0xff] %v1333_v44 }
 0x17d   :  { %v1122_v49 = vrot.slane %v1121_v45, 2  ;;  %v1135_v50 = vadd.f32 %v1134_v46, %v1132_v40 }
 0x17e   :  { %v1128_v51 = vrot.slane %v1127_v47, 2  ;;  %v1141_v52 = vadd.f32 %v1140_v48, %v1133_v43 }
 0x17f   :  { %v1123_v53 = vadd.f32 %v1122_v49, %v1121_v45  ;;  %v1136_v54 = vrot.slane %v1135_v50, 2 }
 0x180   :  { %v1129_v55 = vadd.f32 %v1128_v51, %v1127_v47  ;;  %v1142_v56 = vrot.slane %v1141_v52, 2 }
 0x181   :  { %v1124_v57 = vrot.slane %v1123_v53, 1  ;;  %v1137_v58 = vadd.f32 %v1136_v54, %v1135_v50 }
 0x182   :  { %v1130_v59 = vrot.slane %v1129_v55, 1  ;;  %v1143_v60 = vadd.f32 %v1142_v56, %v1141_v52 }
 0x183   :  { %v1138_v61 = vrot.slane %v1137_v58, 1  ;;  %v1125_v63 = vadd.f32 %v1124_v57, %v1123_v53 }
 0x184   :  { %v1144_v62 = vrot.slane %v1143_v60, 1  ;;  %v1131_v1 = vadd.f32 %v1130_v59, %v1129_v55 }
 0x185   :  { %v1139_v0 = vadd.f32 %v1138_v61, %v1137_v58 }
 0x186   :  { %v1145_v2 = vadd.f32 %v1144_v62, %v1143_v60 }
 0x187   :  { %v1147_v3 = vsel %vm1146_vm0, %v1125_v63, %v1139_v0 }
 0x188   :  { %v1148_v4 = vsel %vm1146_vm0, %v1131_v1, %v1145_v2 }
 0x189   :  { %v1151_v5 = vcombine.low %v1147_v3, %v1148_v4 }
 0x18b   :  { %1331 = vst.sshfl [vmem:[%s2063_s3] sm:$0x33 pattern:$0x76325410] %v1151_v5 }

// kernel: tile.70
= control target key start
LH: loop header
LB: loop body
LE: loop exit
PB: predicated region body
PF: predicated region fallthrough
CT: control target
= control target key end

     0   :  { %s22_s0 = inlined_call_operand.vmem [shape: f32[64], index: 0, kind: input, shape index: {}]   ;;  %s23_s1 = inlined_call_operand.vmem [shape: f32[4,64], index: 1, kind: output, shape index: {}]  }
   0x1   :  { %v4_v0 = vld [vmem:[%s22_s0] ss:$0 sm:$0xff] }
   0x2   :  { %5 = vst [vmem:[%s23_s1] sm:$0xf] %v4_v0 }

// kernel: tile.75
= control target key start
LH: loop header
LB: loop body
LE: loop exit
PB: predicated region body
PF: predicated region fallthrough
CT: control target
= control target key end

     0   :  { %s6_s8 = smov 3  ;;  %vm8_vm0 = vcmask 523264   ;;  %s30_s9 = smov 64   ;;  %vm15_vm1 = vcmask 1048064   ;;  %s50_s0 = inlined_call_operand.vmem [shape: f32[4,64], index: 0, kind: input, shape index: {}]   ;;  %s51_s1 = inlined_call_operand.vmem [shape: f32[1,256], index: 1, kind: output, shape index: {}]  }
   0x1   :  { %v4_v0 = vld [vmem:[%s50_s0] sm:$0xf]  ;;  %s11_s0 = smov 3 }
   0x2   :  { %5 = vst [vmem:[#allocation1] sm:$0xf] %v4_v0 }
   0x9   :  { %v12_v1 = vld [vmem:[#allocation1 + $0x1] ss:$2 sm:%s11_s0]   ;;  %v7_v2 = vld [vmem:[#allocation1] ss:$2 sm:%s6_s8]  }
   0xa   :  { %13 = vrot.lane.b32.xlu0 %v12_v1, %s30_s9  ;;  %9 = vst.msk [vmem:[#allocation0] ss:$8 sm:$0x3] %vm8_vm0, %v7_v2  }
  0x7c   :  { %v14_v3 = vpop.permute.xlu0 %13  }
  0x7d   :  { %16 = vst.msk [vmem:[#allocation0] ss:$8 sm:$0x3] %vm15_vm1, %v14_v3  }
  0x84   :  { %v20_v4 = vld [vmem:[#allocation0] sm:$0x1]  ;;  %v24_v5 = vld [vmem:[#allocation0 + $0x8] sm:$0x1] }
  0x85   :  { %22 = vst [vmem:[%s51_s1] sm:$0x1] %v20_v4  ;;  %28 = vst [vmem:[%s51_s1 + $0x1] sm:$0x1] %v24_v5 }

// kernel: autoencoder_forward.24
= control target key start
LH: loop header
LB: loop body
LE: loop exit
PB: predicated region body
PF: predicated region fallthrough
CT: control target
= control target key end

     0   :  { %v19_v0 = vlaneseq  ;;  %s94_s0 = inlined_call_operand.vmem [shape: bf16[8,256], index: 0, kind: input, shape index: {}, may-alias: {0,3}]   ;;  %s95_s1 = inlined_call_operand.vmem [shape: f32[1,256], index: 1, kind: input, shape index: {}]   ;;  %s96_s2 = inlined_call_operand.vmem [shape: f32[1,256], index: 2, kind: input, shape index: {}]   ;;  %s97_s3 = inlined_call_operand.vmem [shape: bf16[8,256], index: 3, kind: output, shape index: {}, may-alias: {0,3}]  }
   0x1   :  { %v14_v1 = vld [vmem:[%s94_s0] sm:$0xff] }
   0x2   :  { %v20_v2 = vshrl.u32 %v19_v0, 7  ;;  %v17_v3 = vld [vmem:[%s95_s1] sm:$0x3]  ;;  %v15_v5 = vunpack.c.l.bf16 %v14_v1  ;;  %v16_v6 = vunpack.c.h.bf16 %v14_v1 }
   0x3   :  { %v31_v4 = vld [vmem:[%s96_s2] sm:$0x3] }
   0x4   :  { %v21_v7 = vsub.s32 0, %v20_v2  ;;  %v25_v8 = vsub.s32 1, %v20_v2 }
   0x6   :  { %v22_v9 = vrot.slane %v17_v3, %v21_v7  ;;  %v26_v10 = vrot.slane %v17_v3, %v25_v8  ;;  %v36_v11 = vrot.slane %v31_v4, %v21_v7  ;;  %v40_v12 = vrot.slane %v31_v4, %v25_v8 }
   0x8   :  { %v29_v13 = vmul.f32 %v22_v9, %v15_v5  ;;  %v30_v14 = vmul.f32 %v26_v10, %v16_v6 }
   0xa   :  { %v43_v15 = vadd.f32 %v36_v11, %v29_v13  ;;  %v44_v16 = vadd.f32 %v40_v12, %v30_v14 }
   0xc   :  { %v45_v17 = vmax.f32 %v43_v15, 0.0  ;;  %v46_v18 = vmax.f32 %v44_v16, 0.0 }
   0xe   :  { %v61_v19 = vpack.c.bf16 %v46_v18, %v45_v17 }
  0x10   :  { %55 = vst [vmem:[%s97_s3] sm:$0xff] %v61_v19 }

// kernel: autoencoder_forward.25
= control target key start
LH: loop header
LB: loop body
LE: loop exit
PB: predicated region body
PF: predicated region fallthrough
CT: control target
= control target key end

     0   :  { %v666_v36 = vmov 0.0   ;;  %vm667_vm0 = vmmov 0   ;;  %vm488_vm1 = vcmask 1040384   ;;  %s823_s1 = inlined_call_operand.vmem [shape: bf16[640,128], index: 1, kind: input, shape index: {}]   ;;  %s824_s0 = inlined_call_operand.vmem [shape: bf16[8,640], index: 0, kind: input, shape index: {}]   ;;  %s825_s2 = inlined_call_operand.vmem [shape: bf16[8,128], index: 2, kind: output, shape index: {0}]   ;;  %s826_s3 = inlined_call_operand.vmem [shape: f32[1,2,128], index: 3, kind: output, shape index: {1}]  }
   0x1   :  { %v621_v0 = vld [vmem:[%s823_s1 + $0x40] sm:$0xff]   ;;  %v625_v4 = vld [vmem:[%s823_s1 + $0x48] sm:$0xff]   ;;  %v629_v8 = vld [vmem:[%s823_s1 + $0x50] sm:$0xff]  }
   0x2   :  { %v622_v1 = vld [vmem:[%s823_s1 + $0xc0] sm:$0xff]   ;;  %546 = vmatprep.subr.bf16.mxu0 %v621_v0  ;;  %v626_v5 = vld [vmem:[%s823_s1 + $0xc8] sm:$0xff]   ;;  %v630_v9 = vld [vmem:[%s823_s1 + $0xd0] sm:$0xff]  }
   0x3   :  { %v623_v2 = vld [vmem:[%s823_s1] sm:$0xff]   ;;  %568 = vmatprep.subr.bf16.mxu1 %v622_v1  ;;  %v627_v6 = vld [vmem:[%s823_s1 + $0x8] sm:$0xff]   ;;  %v631_v10 = vld [vmem:[%s823_s1 + $0x10] sm:$0xff]  }
   0x4   :  { %v624_v3 = vld [vmem:[%s823_s1 + $0x80] sm:$0xff]   ;;  %547 = vmatpush3.bf16.msra.mxu0 %v623_v2  ;;  %v628_v7 = vld [vmem:[%s823_s1 + $0x88] sm:$0xff]   ;;  %v632_v11 = vld [vmem:[%s823_s1 + $0x90] sm:$0xff]  }
   0x5   :  { %569 = vmatpush3.bf16.msra.mxu1 %v624_v3  ;;  %548 = vmatprep.subr.bf16.mxu0 %v625_v4  ;;  %v633_v12 = vld [vmem:[%s823_s1 + $0x58] sm:$0xff]   ;;  %v637_v16 = vld [vmem:[%s823_s1 + $0x60] sm:$0xff]   ;;  %v641_v20 = vld [vmem:[%s823_s1 + $0x68] sm:$0xff]  }
   0x6   :  { %570 = vmatprep.subr.bf16.mxu1 %v626_v5  ;;  %v634_v13 = vld [vmem:[%s823_s1 + $0xd8] sm:$0xff]   ;;  %v638_v17 = vld [vmem:[%s823_s1 + $0xe0] sm:$0xff]   ;;  %v642_v21 = vld [vmem:[%s823_s1 + $0xe8] sm:$0xff]  }
   0x7   :  { %v635_v14 = vld [vmem:[%s823_s1 + $0x18] sm:$0xff]   ;;  %v639_v18 = vld [vmem:[%s823_s1 + $0x20] sm:$0xff]   ;;  %v643_v22 = vld [vmem:[%s823_s1 + $0x28] sm:$0xff]  }
   0x8   :  { %549 = vmatpush3.bf16.msra.mxu0 %v627_v6  ;;  %v636_v15 = vld [vmem:[%s823_s1 + $0x98] sm:$0xff]   ;;  %v640_v19 = vld [vmem:[%s823_s1 + $0xa0] sm:$0xff]   ;;  %v644_v23 = vld [vmem:[%s823_s1 + $0xa8] sm:$0xff]  }
   0x9   :  { %571 = vmatpush3.bf16.msra.mxu1 %v628_v7  ;;  %550 = vmatprep.subr.bf16.mxu0 %v629_v8  ;;  %v645_v24 = vld [vmem:[%s823_s1 + $0x70] sm:$0xff]   ;;  %v649_v28 = vld [vmem:[%s823_s1 + $0x78] sm:$0xff]   ;;  %v14_v32 = vld [vmem:[%s824_s0] sm:$0xff] }
   0xa   :  { %572 = vmatprep.subr.bf16.mxu1 %v630_v9  ;;  %v646_v25 = vld [vmem:[%s823_s1 + $0xf0] sm:$0xff]   ;;  %v650_v29 = vld [vmem:[%s823_s1 + $0xf8] sm:$0xff]   ;;  %v501_v33 = vcombine.low %v14_v32, %v14_v32  ;;  %v502_v34 = vcombine.high %v14_v32, %v14_v32  ;;  %v15_v35 = vld [vmem:[%s824_s0 + $0x8] sm:$0xff] }
   0xb   :  { %v647_v26 = vld [vmem:[%s823_s1 + $0x30] sm:$0xff]   ;;  %v651_v30 = vld [vmem:[%s823_s1 + $0x38] sm:$0xff]   ;;  %v503_v37 = vcombine.low %v15_v35, %v15_v35  ;;  %v504_v38 = vcombine.high %v15_v35, %v15_v35  ;;  %v658_v39 = vld [vmem:[%s823_s1 + $0x100] sm:$0xff]  }
   0xc   :  { %551 = vmatpush3.bf16.msra.mxu0 %v631_v10  ;;  %v648_v27 = vld [vmem:[%s823_s1 + $0xb0] sm:$0xff]   ;;  %v652_v31 = vld [vmem:[%s823_s1 + $0xb8] sm:$0xff]   ;;  %387 = vmatprep.mubr.bf16.mxu0 %v502_v34  ;;  %v659_v40 = vld [vmem:[%s823_s1 + $0x108] sm:$0xff]  }
   0xd   :  { %573 = vmatpush3.bf16.msra.mxu1 %v632_v11  ;;  %552 = vmatprep.subr.bf16.mxu0 %v633_v12  ;;  %v660_v41 = vld [vmem:[%s823_s1 + $0x110] sm:$0xff]   ;;  %v661_v42 = vld [vmem:[%s823_s1 + $0x118] sm:$0xff]   ;;  %v662_v43 = vld [vmem:[%s823_s1 + $0x120] sm:$0xff]  }
   0xe   :  { %574 = vmatprep.subr.bf16.mxu1 %v634_v13  ;;  %427 = vmatprep.mubr.bf16.mxu1 %v504_v38  ;;  %v663_v44 = vld [vmem:[%s823_s1 + $0x128] sm:$0xff]   ;;  %v664_v45 = vld [vmem:[%s823_s1 + $0x130] sm:$0xff]   ;;  %v665_v46 = vld [vmem:[%s823_s1 + $0x138] sm:$0xff]  }
   0xf   :  { %v655_v47 = vld [vmem:[%s824_s0 + $0x10] ss:$0 sps:$4 sm:$0xff]  }
  0x10   :  { %553 = vmatpush3.bf16.msra.mxu0 %v635_v14 }
  0x11   :  { %575 = vmatpush3.bf16.msra.mxu1 %v636_v15  ;;  %554 = vmatprep.subr.bf16.mxu0 %v637_v16 }
  0x12   :  { %576 = vmatprep.subr.bf16.mxu1 %v638_v17 }
  0x14   :  { %555 = vmatpush3.bf16.msra.mxu0 %v639_v18 }
  0x15   :  { %577 = vmatpush3.bf16.msra.mxu1 %v640_v19  ;;  %556 = vmatprep.subr.bf16.mxu0 %v641_v20 }
  0x16   :  { %578 = vmatprep.subr.bf16.mxu1 %v642_v21 }
  0x18   :  { %557 = vmatpush3.bf16.msra.mxu0 %v643_v22 }
  0x19   :  { %579 = vmatpush3.bf16.msra.mxu1 %v644_v23  ;;  %558 = vmatprep.subr.bf16.mxu0 %v645_v24 }
  0x1a   :  { %580 = vmatprep.subr.bf16.mxu1 %v646_v25 }
  0x1c   :  { %559 = vmatpush3.bf16.msra.mxu0 %v647_v26 }
  0x1d   :  { %581 = vmatpush3.bf16.msra.mxu1 %v648_v27  ;;  %560 = vmatprep.subr.bf16.mxu0 %v649_v28 }
  0x1e   :  { %582 = vmatprep.subr.bf16.mxu1 %v650_v29 }
  0x20   :  { %561 = vmatpush3.bf16.msra.mxu0 %v651_v30 }
  0x21   :  { %583 = vmatpush3.bf16.msra.mxu1 %v652_v31  ;;  %599 = vmatprep.subr.bf16.mxu0 %v666_v36 }
  0x23   :  { %388 = vmatmul.mubr.bf16.vlgmr.msra.gmra.mrb[0].mxu0 %v501_v33 }
  0x24   :  { %428 = vmatmul.mubr.bf16.vlgmr.msra.gmra.mrb[0].mxu1 %v503_v37  ;;  %600 = vmatpush3.bf16.msra.mxu0 %v658_v39 }
  0x25   :  { %601 = vmatprep.subr.bf16.mxu0 %v666_v36  ;;  %615 = vmatprep.mubr.msk.bf16.mxu0 %vm667_vm0, %v666_v36 }
  0x28   :  { %602 = vmatpush3.bf16.msra.mxu0 %v659_v40 }
  0x29   :  { %603 = vmatprep.subr.bf16.mxu0 %v666_v36 }
  0x2c   :  { %604 = vmatpush3.bf16.msra.mxu0 %v660_v41 }
  0x2d   :  { %605 = vmatprep.subr.bf16.mxu0 %v666_v36 }
  0x30   :  { %606 = vmatpush3.bf16.msra.mxu0 %v661_v42 }
  0x31   :  { %607 = vmatprep.subr.bf16.mxu0 %v666_v36 }
  0x34   :  { %608 = vmatpush3.bf16.msra.mxu0 %v662_v43 }
  0x35   :  { %609 = vmatprep.subr.bf16.mxu0 %v666_v36 }
  0x38   :  { %610 = vmatpush3.bf16.msra.mxu0 %v663_v44 }
  0x39   :  { %611 = vmatprep.subr.bf16.mxu0 %v666_v36 }
  0x3c   :  { %612 = vmatpush3.bf16.msra.mxu0 %v664_v45 }
  0x3d   :  { %613 = vmatprep.subr.bf16.mxu0 %v666_v36 }
  0x40   :  { %614 = vmatpush3.bf16.msra.mxu0 %v665_v46 }
  0x43   :  { %616 = vmatmul.mubr.bf16.vlgmr.msra.gmra.mrb[4].mxu0 %v655_v47 }
  0xf6   :  { %v562_v48 = vpop.f32.mrb[0].mxu0 }
  0xf7   :  { %v584_v49 = vpop.f32.mrb[0].mxu1  ;;  %v563_v50 = vpop.f32.mrb[1].mxu0 }
  0xf8   :  { %v564_v51 = vadd.f32 %v563_v50, %v562_v48  ;;  %v585_v52 = vpop.f32.mrb[1].mxu1  ;;  %v565_v53 = vpop.f32.mrb[2].mxu0 }
  0xf9   :  { %v586_v54 = vadd.f32 %v585_v52, %v584_v49  ;;  %v566_v55 = vpop.f32.mrb[3].mxu0  ;;  %v587_v56 = vpop.f32.mrb[2].mxu1 }
  0xfa   :  { %v588_v57 = vpop.f32.mrb[3].mxu1 }
  0xfb   :  { %v430_v58 = vadd.f32 %v586_v54, %v564_v51 }
 0x116   :  { %v469_v59 = vpop.f32.mrb[4].mxu0 }
 0x117   :  { %v470_v60 = vadd.f32 %v469_v59, %v430_v58  ;;  %v617_v61 = vpop.f32.mrb[5].mxu0 }
 0x118   :  { %v472_v62 = vpop.f32.mrb[6].mxu0 }
 0x119   :  { %v475_v63 = vrot.slane %v470_v60, 4  ;;  %v481_v0 = vmul.f32 %v470_v60, %v470_v60  ;;  %v491_v1 = vpack.c.bf16 %v470_v60, %v470_v60  ;;  %v618_v2 = vpop.f32.mrb[7].mxu0 }
 0x11b   :  { %v476_v3 = vadd.f32 %v475_v63, %v470_v60  ;;  %v482_v4 = vrot.slane %v481_v0, 4  ;;  %492 = vst [vmem:[%s825_s2] sm:$0xf] %v491_v1 }
 0x11d   :  { %v477_v5 = vrot.slane %v476_v3, 2  ;;  %v483_v6 = vadd.f32 %v482_v4, %v481_v0 }
 0x11f   :  { %v478_v7 = vadd.f32 %v477_v5, %v476_v3  ;;  %v484_v8 = vrot.slane %v483_v6, 2 }
 0x121   :  { %v479_v9 = vrot.slane %v478_v7, 1  ;;  %v485_v10 = vadd.f32 %v484_v8, %v483_v6 }
 0x123   :  { %v486_v11 = vrot.slane %v485_v10, 1  ;;  %v480_v12 = vadd.f32 %v479_v9, %v478_v7 }
 0x125   :  { %v487_v13 = vadd.f32 %v486_v11, %v485_v10 }
 0x127   :  { %v489_v14 = vsel %vm488_vm1, %v480_v12, %v487_v13 }
 0x128   :  { %490 = vst [vmem:[%s826_s3] sm:$0x3] %v489_v14 }

// kernel: tile.80
= control target key start
LH: loop header
LB: loop body
LE: loop exit
PB: predicated region body
PF: predicated region fallthrough
CT: control target
= control target key end

     0   :  { %s22_s0 = inlined_call_operand.vmem [shape: f32[32], index: 0, kind: input, shape index: {}]   ;;  %s23_s1 = inlined_call_operand.vmem [shape: f32[4,32], index: 1, kind: output, shape index: {}]  }
   0x1   :  { %v4_v0 = vld [vmem:[%s22_s0] ss:$0 sm:$0xff] }
   0x2   :  { %5 = vst [vmem:[%s23_s1] sm:$0xf] %v4_v0 }

// kernel: tile.85
= control target key start
LH: loop header
LB: loop body
LE: loop exit
PB: predicated region body
PF: predicated region fallthrough
CT: control target
= control target key end

     0   :  { %vm7_vm0 = vcmask 261120   ;;  %s37_s8 = smov 32   ;;  %s38_s9 = smov 64   ;;  %vm13_vm1 = vcmask 1048320   ;;  %vm19_vm2 = vcmask 785920   ;;  %vm25_vm3 = vcmask 523520   ;;  %s55_s0 = inlined_call_operand.vmem [shape: f32[4,32], index: 0, kind: input, shape index: {}]   ;;  %s56_s1 = inlined_call_operand.vmem [shape: f32[1,128], index: 1, kind: output, shape index: {}]  }
   0x1   :  { %v4_v0 = vld [vmem:[%s55_s0] sm:$0xf]  ;;  %s36_s0 = smov 96  }
   0x2   :  { %5 = vst [vmem:[#allocation1] sm:$0xf] %v4_v0 }
   0x9   :  { %v10_v1 = vld [vmem:[#allocation1 + $0x3] sm:$0x1]   ;;  %v22_v2 = vld [vmem:[#allocation1 + $0x1] sm:$0x1]   ;;  %v6_v3 = vld [vmem:[#allocation1] sm:$0x1]  }
   0xa   :  { %11 = vrot.lane.b32.xlu0 %v10_v1, %s36_s0  ;;  %23 = vrot.lane.b32.xlu1 %v22_v2, %s37_s8  ;;  %v16_v4 = vld [vmem:[#allocation1 + $0x2] sm:$0x1]   ;;  %8 = vst.msk [vmem:[#allocation0] sm:$0x1] %vm7_vm0, %v6_v3  }
   0xe   :  { %17 = vrot.lane.b32.xlu0 %v16_v4, %s38_s9 }
  0x7c   :  { %v12_v5 = vpop.permute.xlu0 %11   ;;  %v24_v6 = vpop.permute.xlu1 %23  }
  0x7d   :  { %14 = vst.msk [vmem:[#allocation0] sm:$0x1] %vm13_vm1, %v12_v5  }
  0x80   :  { %v18_v7 = vpop.permute.xlu0 %17  }
  0x81   :  { %20 = vst.msk [vmem:[#allocation0] sm:$0x1] %vm19_vm2, %v18_v7  }
  0x82   :  { %26 = vst.msk [vmem:[#allocation0] sm:$0x1] %vm25_vm3, %v24_v6  }
  0x89   :  { %v30_v8 = vld [vmem:[#allocation0] sm:$0x1] }
  0x8a   :  { %32 = vst [vmem:[%s56_s1] sm:$0x1] %v30_v8 }

// kernel: tile.90
= control target key start
LH: loop header
LB: loop body
LE: loop exit
PB: predicated region body
PF: predicated region fallthrough
CT: control target
= control target key end

     0   :  { %s22_s0 = inlined_call_operand.vmem [shape: f32[16], index: 0, kind: input, shape index: {}]   ;;  %s23_s1 = inlined_call_operand.vmem [shape: f32[4,16], index: 1, kind: output, shape index: {}]  }
   0x1   :  { %v4_v0 = vld [vmem:[%s22_s0] ss:$0 sm:$0xff] }
   0x2   :  { %5 = vst [vmem:[%s23_s1] sm:$0xf] %v4_v0 }

// kernel: tile.95
= control target key start
LH: loop header
LB: loop body
LE: loop exit
PB: predicated region body
PF: predicated region fallthrough
CT: control target
= control target key end

     0   :  { %vm7_vm0 = vcmask 130048   ;;  %s37_s8 = smov 16   ;;  %s38_s9 = smov 32   ;;  %vm13_vm1 = vcmask 523648   ;;  %vm19_vm2 = vcmask 392448   ;;  %vm25_vm3 = vcmask 261248   ;;  %s55_s0 = inlined_call_operand.vmem [shape: f32[4,16], index: 0, kind: input, shape index: {}]   ;;  %s56_s1 = inlined_call_operand.vmem [shape: f32[1,64], index: 1, kind: output, shape index: {}]  }
   0x1   :  { %v4_v0 = vld [vmem:[%s55_s0] sm:$0xf]  ;;  %s36_s0 = smov 48  }
   0x2   :  { %5 = vst [vmem:[#allocation1] sm:$0xf] %v4_v0 }
   0x9   :  { %v10_v1 = vld [vmem:[#allocation1 + $0x3] sm:$0x1]   ;;  %v22_v2 = vld [vmem:[#allocation1 + $0x1] sm:$0x1]   ;;  %v6_v3 = vld [vmem:[#allocation1] sm:$0x1]  }
   0xa   :  { %11 = vrot.lane.b32.xlu0 %v10_v1, %s36_s0  ;;  %23 = vrot.lane.b32.xlu1 %v22_v2, %s37_s8  ;;  %v16_v4 = vld [vmem:[#allocation1 + $0x2] sm:$0x1]   ;;  %8 = vst.msk [vmem:[#allocation0] sm:$0x1] %vm7_vm0, %v6_v3  }
   0xe   :  { %17 = vrot.lane.b32.xlu0 %v16_v4, %s38_s9 }
  0x7c   :  { %v12_v5 = vpop.permute.xlu0 %11   ;;  %v24_v6 = vpop.permute.xlu1 %23  }
  0x7d   :  { %14 = vst.msk [vmem:[#allocation0] sm:$0x1] %vm13_vm1, %v12_v5  }
  0x80   :  { %v18_v7 = vpop.permute.xlu0 %17  }
  0x81   :  { %20 = vst.msk [vmem:[#allocation0] sm:$0x1] %vm19_vm2, %v18_v7  }
  0x82   :  { %26 = vst.msk [vmem:[#allocation0] sm:$0x1] %vm25_vm3, %v24_v6  }
  0x89   :  { %v30_v8 = vld [vmem:[#allocation0] sm:$0x1] }
  0x8a   :  { %32 = vst [vmem:[%s56_s1] sm:$0x1] %v30_v8 }

// kernel: autoencoder_forward.27
= control target key start
LH: loop header
LB: loop body
LE: loop exit
PB: predicated region body
PF: predicated region fallthrough
CT: control target
= control target key end

     0   :  { %s769_s12 = smov 0   ;;  %s870_s0 = inlined_call_operand.vmem [shape: bf16[32,384], index: 0, kind: input, shape index: {}]   ;;  %s871_s1 = inlined_call_operand.vmem [shape: bf16[384,64], index: 1, kind: input, shape index: {}]   ;;  %s872_s2 = inlined_call_operand.vmem [shape: bf16[32,64], index: 2, kind: output, shape index: {0}]   ;;  %s873_s3 = inlined_call_operand.vmem [shape: f32[2,2,64], index: 3, kind: output, shape index: {1}]  }
   0x1 LB: > { %s775_s13 = sadd.s32 4294967295, %s745_s12   ;;  %p610_p0 = scmp.ge.s32.totalorder %s745_s12, 1  ;;  %s745_s12 = sphi %s769_s12, %s14_s12  }
   0x2   : > { %p142_p1 = scmp.lt.s32.totalorder %s745_s12, 3 }
   0x4   : > { %p143_p2 = pnand %p610_p0, %p142_p1 }
   0x5   : > { %v711_v0 = vld [vmem:[%s871_s1 + $0x40] sm:$0xff] (!%p143_p2)   ;;  %v747_v1 = vmov (!%p143_p2), 0.0   ;;  %v714_v4 = vld [vmem:[%s871_s1 + $0x48] sm:$0xff] (!%p143_p2)   ;;  %vm748_vm0 = vmmov (!%p143_p2), 0   ;;  %v717_v7 = vld [vmem:[%s871_s1 + $0x50] sm:$0xff] (!%p143_p2)   ;;  %s611_s30 = sshll.u32 (!%p143_p2), %s775_s13, 1 }
   0x6   : > { %146 = sbr.rel (%p143_p2) target bundleno = 276 (0x114), region = 28  ;;  %680 = vmatprep.subr.bf16.mxu1 (!%p143_p2), %v747_v1  ;;  %v712_v2 = vld [vmem:[%s871_s1] sm:$0xff] (!%p143_p2)   ;;  %649 = vmatprep.subr.bf16.mxu0 (!%p143_p2), %v711_v0  ;;  %v715_v5 = vld [vmem:[%s871_s1 + $0x8] sm:$0xff] (!%p143_p2)   ;;  %v718_v8 = vld [vmem:[%s871_s1 + $0x10] sm:$0xff] (!%p143_p2)   ;;  %p172_p3 = scmp.lt.s32.totalorder (!%p143_p2), %s611_s30, 3  ;;  %vm483_vm1 = vcmask (!%p143_p2), 523264  }
   0x7   : > { %v713_v3 = vld [vmem:[%s871_s1 + $0x80] sm:$0xff] (!%p143_p2)   ;;  %650 = vmatpush3.bf16.msra.mxu0 (!%p143_p2), %v712_v2  ;;  %696 = vmatprep.mubr.msk.bf16.mxu1 (!%p143_p2), %vm748_vm0, %v747_v1  ;;  %v716_v6 = vld [vmem:[%s871_s1 + $0x88] sm:$0xff] (!%p143_p2)   ;;  %v719_v9 = vld [vmem:[%s871_s1 + $0x90] sm:$0xff] (!%p143_p2)   ;;  %vm516_vm2 = vcmask (!%p143_p2), 519168   ;;  %p184_p4 = scmp.lt.s32.totalorder (!%p143_p2), %s775_s13, 1  ;;  %vm504_vm3 = vcmask (!%p143_p2), 1040384  }
   0x8   : > { %681 = vmatpush3.bf16.msra.mxu1 (!%p143_p2), %v713_v3  ;;  %651 = vmatprep.subr.bf16.mxu0 (!%p143_p2), %v714_v4  ;;  %v720_v10 = vld [vmem:[%s871_s1 + $0x58] sm:$0xff] (!%p143_p2)   ;;  %v723_v13 = vld [vmem:[%s871_s1 + $0x60] sm:$0xff] (!%p143_p2)   ;;  %v726_v16 = vld [vmem:[%s871_s1 + $0x68] sm:$0xff] (!%p143_p2)   ;;  %vm506_vm4 = vcmask (!%p143_p2), 517120  }
   0x9   : > { %682 = vmatprep.subr.bf16.mxu1 (!%p143_p2), %v747_v1  ;;  %v721_v11 = vld [vmem:[%s871_s1 + $0x18] sm:$0xff] (!%p143_p2)   ;;  %v724_v14 = vld [vmem:[%s871_s1 + $0x20] sm:$0xff] (!%p143_p2)   ;;  %v727_v17 = vld [vmem:[%s871_s1 + $0x28] sm:$0xff] (!%p143_p2)  }
   0xa   : > { %v722_v12 = vld [vmem:[%s871_s1 + $0x98] sm:$0xff] (!%p143_p2)   ;;  %v725_v15 = vld [vmem:[%s871_s1 + $0xa0] sm:$0xff] (!%p143_p2)   ;;  %v728_v18 = vld [vmem:[%s871_s1 + $0xa8] sm:$0xff] (!%p143_p2)  }
   0xb   : > { %652 = vmatpush3.bf16.msra.mxu0 (!%p143_p2), %v715_v5  ;;  %v729_v19 = vld [vmem:[%s871_s1 + $0x70] sm:$0xff] (!%p143_p2)   ;;  %v732_v22 = vld [vmem:[%s871_s1 + $0x78] sm:$0xff] (!%p143_p2)  }
   0xc   : > { %683 = vmatpush3.bf16.msra.mxu1 (!%p143_p2), %v716_v6  ;;  %653 = vmatprep.subr.bf16.mxu0 (!%p143_p2), %v717_v7  ;;  %v730_v20 = vld [vmem:[%s871_s1 + $0x30] sm:$0xff] (!%p143_p2)   ;;  %v733_v24 = vld [vmem:[%s871_s1 + $0x38] sm:$0xff] (!%p143_p2)  }
   0xd   : > { %684 = vmatprep.subr.bf16.mxu1 %v747_v1  ;;  %s875_s30 = smov (!%p172_p3, %s611_s30), 3  ;;  %v731_v21 = vld [vmem:[%s871_s1 + $0xb0] sm:$0xff]   ;;  %v734_v25 = vld [vmem:[%s871_s1 + $0xb8] sm:$0xff]   ;;  %s877_s13 = smov (!%p184_p4, %s775_s13), 1 }
   0xe   : > { %s700_s24 = smul.u32 12, %s875_s30  ;;  %s614_s18 = sshll.u32 %s875_s30, 2 }
   0xf   : > { %654 = vmatpush3.bf16.msra.mxu0 %v718_v8  ;;  %s182_s21 = scalar_lea.vmem %s872_s2, %s614_s18  ;;  %s615_s30 = sshll.u32 %s877_s13, 1 }
  0x10   : > { %685 = vmatpush3.bf16.msra.mxu1 %v719_v9  ;;  %655 = vmatprep.subr.bf16.mxu0 %v720_v10  ;;  %s176_s7 = scalar_lea.vmem %s870_s0, %s700_s24  ;;  %s187_s24 = scalar_lea.vmem %s873_s3, %s615_s30 }
  0x11   : > { %686 = vmatprep.subr.bf16.mxu1 %v747_v1  ;;  %v737_v23 = vld [vmem:[%s176_s7 + $0x4] ss:$12 sps:$4 sm:$0xff]   ;;  %v735_v26 = vld [vmem:[%s176_s7] ss:$12 sps:$4 sm:$0xff]   ;;  %v738_v27 = vld [vmem:[%s176_s7 + $0x8] ss:$12 sps:$4 sm:$0xff]  }
  0x12   : > { %433 = vmatprep.mubr.bf16.mxu0 %v737_v23 }
  0x13   : > { %656 = vmatpush3.bf16.msra.mxu0 %v721_v11 }
  0x14   : > { %687 = vmatpush3.bf16.msra.mxu1 %v722_v12  ;;  %657 = vmatprep.subr.bf16.mxu0 %v723_v13 }
  0x15   : > { %688 = vmatprep.subr.bf16.mxu1 %v747_v1 }
  0x17   : > { %658 = vmatpush3.bf16.msra.mxu0 %v724_v14 }
  0x18   : > { %689 = vmatpush3.bf16.msra.mxu1 %v725_v15  ;;  %659 = vmatprep.subr.bf16.mxu0 %v726_v16 }
  0x19   : > { %690 = vmatprep.subr.bf16.mxu1 %v747_v1 }
  0x1b   : > { %660 = vmatpush3.bf16.msra.mxu0 %v727_v17 }
  0x1c   : > { %691 = vmatpush3.bf16.msra.mxu1 %v728_v18  ;;  %661 = vmatprep.subr.bf16.mxu0 %v729_v19 }
  0x1d   : > { %692 = vmatprep.subr.bf16.mxu1 %v747_v1 }
  0x1f   : > { %662 = vmatpush3.bf16.msra.mxu0 %v730_v20 }
  0x20   : > { %693 = vmatpush3.bf16.msra.mxu1 %v731_v21  ;;  %663 = vmatprep.subr.bf16.mxu0 %v732_v22 }
  0x21   : > { %694 = vmatprep.subr.bf16.mxu1 %v747_v1 }
  0x23   : > { %664 = vmatpush3.bf16.msra.mxu0 %v733_v24 }
  0x24   : > { %695 = vmatpush3.bf16.msra.mxu1 %v734_v25 }
  0x26   : > { %434 = vmatmul.mubr.bf16.vlgmr.msra.gmra.mrb[0].mxu0 %v735_v26 }
  0x27   : > { %697 = vmatmul.mubr.bf16.vlgmr.msra.gmra.mrb[0].mxu1 %v738_v27 }
  0xf9   : > { %v665_v28 = vpop.f32.mrb[0].mxu0 }
  0xfa   : > { %v476_v29 = vpop.f32.mrb[0].mxu1  ;;  %v666_v30 = vpop.f32.mrb[1].mxu0 }
  0xfb   : > { %v667_v31 = vadd.f32 %v666_v30, %v665_v28  ;;  %v698_v32 = vpop.f32.mrb[1].mxu1  ;;  %v668_v33 = vpop.f32.mrb[2].mxu0 }
  0xfc   : > { %v479_v34 = vpop.f32.mrb[2].mxu1  ;;  %v669_v35 = vpop.f32.mrb[3].mxu0 }
  0xfd   : > { %v477_v36 = vadd.f32 %v667_v31, %v476_v29  ;;  %v670_v37 = vadd.f32 %v669_v35, %v668_v33  ;;  %v699_v38 = vpop.f32.mrb[3].mxu1 }
  0xff   : > { %v493_v39 = vmul.f32 %v477_v36, %v477_v36  ;;  %v647_v40 = vpack.c.bf16 %v477_v36, %v477_v36  ;;  %v480_v41 = vadd.f32 %v670_v37, %v479_v34  ;;  %v484_v42 = vsel %vm483_vm1, %v477_v36, 0.0 }
 0x101   : > { %517 = vst.msk [vmem:[%s182_s21] sm:$0xf] %vm516_vm2, %v647_v40  ;;  %v485_v43 = vsel %vm483_vm1, %v480_v41, 0.0  ;;  %v494_v44 = vmul.f32 %v480_v41, %v480_v41  ;;  %v648_v45 = vpack.c.bf16 %v480_v41, %v480_v41  ;;  %v495_v47 = vsel %vm483_vm1, %v493_v39, 0.0 }
 0x102   : > { %v486_v46 = vadd.f32 %v485_v43, %v484_v42 }
 0x103   : > { %v496_v48 = vsel %vm483_vm1, %v494_v44, 0.0  ;;  %518 = vst.msk [vmem:[%s182_s21 + $0x4] sm:$0xf] %vm516_vm2, %v648_v45 }
 0x104   : > { %v487_v49 = vrot.slane %v486_v46, 4  ;;  %v497_v50 = vadd.f32 %v496_v48, %v495_v47 }
 0x106   : > { %v488_v51 = vadd.f32 %v487_v49, %v486_v46  ;;  %v498_v52 = vrot.slane %v497_v50, 4 }
 0x108   : > { %v489_v53 = vrot.slane %v488_v51, 2  ;;  %v499_v54 = vadd.f32 %v498_v52, %v497_v50 }
 0x10a   : > { %v490_v55 = vadd.f32 %v489_v53, %v488_v51  ;;  %v500_v56 = vrot.slane %v499_v54, 2 }
 0x10c   : > { %v491_v57 = vrot.slane %v490_v55, 1  ;;  %v501_v58 = vadd.f32 %v500_v56, %v499_v54 }
 0x10e   : > { %v502_v59 = vrot.slane %v501_v58, 1  ;;  %v492_v60 = vadd.f32 %v491_v57, %v490_v55 }
 0x110   : > { %v503_v61 = vadd.f32 %v502_v59, %v501_v58 }
 0x112   : > { %v505_v62 = vsel %vm504_vm3, %v492_v60, %v503_v61 }
 0x113   : > { %507 = vst.msk [vmem:[%s187_s24] sm:$0x3] %vm506_vm4, %v505_v62 }
 0x114 PF: > { %s14_s12 = sadd.s32 1, %s745_s12  }
 0x115   : > { %p11_p5 = scmp.ge.s32.totalorder %s14_s12, 4  }
 0x117   :  { %13 = sbr.rel (!%p11_p5) target bundleno = 1 (0x1), region = 70 }

// kernel: autoencoder_forward.28
= control target key start
LH: loop header
LB: loop body
LE: loop exit
PB: predicated region body
PF: predicated region fallthrough
CT: control target
= control target key end

     0   :  { %s322_s12 = smov 0   ;;  %s345_s0 = inlined_call_operand.vmem [shape: bf16[32,64], index: 0, kind: input, shape index: {}, may-alias: {0,3}]   ;;  %s346_s1 = inlined_call_operand.vmem [shape: f32[1,64], index: 1, kind: input, shape index: {}]   ;;  %s347_s2 = inlined_call_operand.vmem [shape: f32[1,64], index: 2, kind: input, shape index: {}]   ;;  %s348_s3 = inlined_call_operand.vmem [shape: bf16[32,64], index: 3, kind: output, shape index: {}, may-alias: {0,3}]  }
   0x1 LB: > { %s265_s13 = sadd.s32 4294967295, %s300_s12   ;;  %p269_p0 = scmp.ge.s32.totalorder %s300_s12, 1  ;;  %s300_s12 = sphi %s322_s12, %s13_s12  }
   0x2   : > { %p138_p1 = scmp.lt.s32.totalorder %s300_s12, 3 }
   0x4   : > { %p139_p2 = pnand %p269_p0, %p138_p1 }
   0x5   : > { %s270_s14 = sshll.u32 (!%p139_p2), %s265_s13, 1  ;;  %v274_v1 = vld [vmem:[%s346_s1] ss:$0 sm:$0xff] (!%p139_p2)  ;;  %vm206_vm0 = vcmask (!%p139_p2), 519168  }
   0x6   : > { %142 = sbr.rel (%p139_p2) target bundleno = 28 (0x1c), region = 32  ;;  %p163_p3 = scmp.lt.s32.totalorder (!%p139_p2), %s270_s14, 3  ;;  %v275_v4 = vld [vmem:[%s347_s2] ss:$0 sm:$0xff] (!%p139_p2) }
   0xd   : > { %s350_s14 = smov (!%p163_p3, %s270_s14), 3 }
   0xe   : > { %s271_s15 = sshll.u32 %s350_s14, 2 }
   0xf   : > { %s166_s18 = scalar_lea.vmem %s345_s0, %s271_s15  ;;  %s172_s25 = scalar_lea.vmem %s348_s3, %s271_s15 }
  0x10   : > { %v283_v0 = vld [vmem:[%s166_s18] sm:$0xff]  }
  0x11   : > { %v284_v2 = vunpack.c.l.bf16 %v283_v0  ;;  %v285_v3 = vunpack.c.h.bf16 %v283_v0 }
  0x13   : > { %v185_v5 = vmul.f32 %v284_v2, %v274_v1  ;;  %v186_v6 = vmul.f32 %v285_v3, %v274_v1 }
  0x15   : > { %v194_v7 = vadd.f32 %v275_v4, %v185_v5  ;;  %v195_v8 = vadd.f32 %v275_v4, %v186_v6 }
  0x17   : > { %v196_v9 = vmax.f32 %v194_v7, 0.0  ;;  %v197_v10 = vmax.f32 %v195_v8, 0.0 }
  0x19   : > { %v280_v11 = vpack.c.bf16 %v196_v9, %v196_v9  ;;  %v281_v12 = vpack.c.bf16 %v197_v10, %v197_v10 }
  0x1b   : > { %207 = vst.msk [vmem:[%s172_s25] sm:$0xf] %vm206_vm0, %v280_v11  ;;  %208 = vst.msk [vmem:[%s172_s25 + $0x4] sm:$0xf] %vm206_vm0, %v281_v12 }
  0x1c PF: > { %s13_s12 = sadd.s32 1, %s300_s12  }
  0x1d   : > { %p10_p4 = scmp.ge.s32.totalorder %s13_s12, 4  }
  0x1f   :  { %12 = sbr.rel (!%p10_p4) target bundleno = 1 (0x1), region = 62 }

// kernel: tile.100
= control target key start
LH: loop header
LB: loop body
LE: loop exit
PB: predicated region body
PF: predicated region fallthrough
CT: control target
= control target key end

     0   :  { %s22_s0 = inlined_call_operand.vmem [shape: f32[3], index: 0, kind: input, shape index: {}]   ;;  %s23_s1 = inlined_call_operand.vmem [shape: f32[4,3], index: 1, kind: output, shape index: {}]  }
   0x1   :  { %v4_v0 = vld [vmem:[%s22_s0] ss:$0 sm:$0xff] }
   0x2   :  { %5 = vst [vmem:[%s23_s1] sm:$0xf] %v4_v0 }

// kernel: tile.101
= control target key start
LH: loop header
LB: loop body
LE: loop exit
PB: predicated region body
PF: predicated region fallthrough
CT: control target
= control target key end

     0   :  { %vm7_vm0 = vcmask 23552   ;;  %s37_s8 = smov 3   ;;  %s38_s9 = smov 6   ;;  %vm13_vm1 = vcmask 97352   ;;  %vm19_vm2 = vcmask 72752   ;;  %vm25_vm3 = vcmask 48152   ;;  %s55_s0 = inlined_call_operand.vmem [shape: f32[4,3], index: 0, kind: input, shape index: {}]   ;;  %s56_s1 = inlined_call_operand.vmem [shape: f32[1,12], index: 1, kind: output, shape index: {}]  }
   0x1   :  { %v4_v0 = vld [vmem:[%s55_s0] sm:$0xf]  ;;  %s36_s0 = smov 9  }
   0x2   :  { %5 = vst [vmem:[#allocation1] sm:$0xf] %v4_v0 }
   0x9   :  { %v10_v1 = vld [vmem:[#allocation1 + $0x3] sm:$0x1]   ;;  %v22_v2 = vld [vmem:[#allocation1 + $0x1] sm:$0x1]   ;;  %v6_v3 = vld [vmem:[#allocation1] sm:$0x1]  }
   0xa   :  { %11 = vrot.lane.b32.xlu0 %v10_v1, %s36_s0  ;;  %23 = vrot.lane.b32.xlu1 %v22_v2, %s37_s8  ;;  %v16_v4 = vld [vmem:[#allocation1 + $0x2] sm:$0x1]   ;;  %8 = vst.msk [vmem:[#allocation0] sm:$0x1] %vm7_vm0, %v6_v3  }
   0xe   :  { %17 = vrot.lane.b32.xlu0 %v16_v4, %s38_s9 }
  0x7c   :  { %v12_v5 = vpop.permute.xlu0 %11   ;;  %v24_v6 = vpop.permute.xlu1 %23  }
  0x7d   :  { %14 = vst.msk [vmem:[#allocation0] sm:$0x1] %vm13_vm1, %v12_v5  }
  0x80   :  { %v18_v7 = vpop.permute.xlu0 %17  }
  0x81   :  { %20 = vst.msk [vmem:[#allocation0] sm:$0x1] %vm19_vm2, %v18_v7  }
  0x82   :  { %26 = vst.msk [vmem:[#allocation0] sm:$0x1] %vm25_vm3, %v24_v6  }
  0x89   :  { %v30_v8 = vld [vmem:[#allocation0] sm:$0x1] }
  0x8a   :  { %32 = vst [vmem:[%s56_s1] sm:$0x1] %v30_v8 }

// kernel: autoencoder_forward.29
= control target key start
LH: loop header
LB: loop body
LE: loop exit
PB: predicated region body
PF: predicated region fallthrough
CT: control target
= control target key end

     0   :  { %s628_s12 = smov 0   ;;  %s701_s0 = inlined_call_operand.vmem [shape: bf16[128,144], index: 0, kind: input, shape index: {}]   ;;  %s702_s1 = inlined_call_operand.vmem [shape: bf16[144,12], index: 1, kind: input, shape index: {}]   ;;  %s703_s2 = inlined_call_operand.vmem [shape: f32[1,12], index: 2, kind: input, shape index: {}]   ;;  %s704_s3 = inlined_call_operand.vmem [shape: bf16[128,12], index: 3, kind: output, shape index: {}]  }
   0x1 LB: > { %s484_s13 = sadd.s32 4294967295, %s605_s12   ;;  %p488_p0 = scmp.ge.s32.totalorder %s605_s12, 1  ;;  %s605_s12 = sphi %s628_s12, %s13_s12  }
   0x2   : > { %p139_p1 = scmp.lt.s32.totalorder %s605_s12, 3 }
   0x4   : > { %p140_p2 = pnand %p488_p0, %p139_p1 }
   0x5   : > { %v562_v0 = vld [vmem:[%s702_s1] sm:$0xff] (!%p140_p2)   ;;  %v607_v1 = vmov (!%p140_p2), 0   ;;  %s489_s16 = sshll.u32 (!%p140_p2), %s484_s13, 3  ;;  %v563_v2 = vld [vmem:[%s702_s1 + $0x8] sm:$0xff] (!%p140_p2)   ;;  %v564_v3 = vld [vmem:[%s702_s1 + $0x10] sm:$0xff] (!%p140_p2)   ;;  %vm301_vm0 = vcmask (!%p140_p2), 130048  }
   0x6   : > { %143 = sbr.rel (%p140_p2) target bundleno = 281 (0x119), region = 32  ;;  %314 = vmatprep.subr.bf16.mxu0 (!%p140_p2), %v607_v1  ;;  %535 = vmatprep.subr.bf16.mxu1 (!%p140_p2), %v607_v1  ;;  %p165_p3 = scmp.lt.s32.totalorder (!%p140_p2), %s489_s16, 15  ;;  %v565_v4 = vld [vmem:[%s702_s1 + $0x18] sm:$0xff] (!%p140_p2)   ;;  %v566_v7 = vld [vmem:[%s702_s1 + $0x20] sm:$0xff] (!%p140_p2)   ;;  %v567_v8 = vld [vmem:[%s702_s1 + $0x28] sm:$0xff] (!%p140_p2)   ;;  %vm419_vm1 = vcmask (!%p140_p2), 93184  }
   0x7   : > { %315 = vmatpush1.bf16.msra.mxu0 (!%p140_p2), %v562_v0  ;;  %544 = vmatpush1.bf16.msra.mxu1 (!%p140_p2), %v562_v0  ;;  %v568_v9 = vld [vmem:[%s702_s1 + $0x30] sm:$0xff] (!%p140_p2)   ;;  %v569_v10 = vld [vmem:[%s702_s1 + $0x38] sm:$0xff] (!%p140_p2)   ;;  %v570_v11 = vld [vmem:[%s702_s1 + $0x40] sm:$0xff] (!%p140_p2)  }
   0x8   : > { %316 = vmatprep.subr.bf16.mxu0 (!%p140_p2), %v607_v1  ;;  %536 = vmatprep.subr.bf16.mxu1 (!%p140_p2), %v607_v1  ;;  %v494_v18 = vld [vmem:[%s703_s2] ss:$0 sm:$0xff] (!%p140_p2) }
   0xb   : > { %317 = vmatpush1.bf16.msra.mxu0 (!%p140_p2), %v563_v2  ;;  %545 = vmatpush1.bf16.msra.mxu1 (!%p140_p2), %v563_v2 }
   0xc   : > { %318 = vmatprep.subr.bf16.mxu0 (!%p140_p2), %v607_v1  ;;  %537 = vmatprep.subr.bf16.mxu1 (!%p140_p2), %v607_v1 }
   0xd   : > { %s706_s16 = smov (!%p165_p3, %s489_s16), 15 }
   0xe   : > { %s526_s21 = sshll.u32 %s706_s16, 3  ;;  %s493_s13 = sshll.u32 %s706_s16, 2 }
   0xf   : > { %s651_s24 = scalar_lea.vmem %s701_s0, %s526_s21  ;;  %319 = vmatpush1.bf16.msra.mxu0 %v564_v3  ;;  %546 = vmatpush1.bf16.msra.mxu1 %v564_v3  ;;  %s175_s17 = scalar_lea.vmem %s704_s3, %s493_s13 }
  0x10   : > { %v573_v5 = vld [vmem:[%s651_s24 + $0x4] ss:$8 sps:$4 sm:$0xff]   ;;  %320 = vmatprep.subr.bf16.mxu0 %v607_v1  ;;  %538 = vmatprep.subr.bf16.mxu1 %v607_v1  ;;  %v571_v12 = vld [vmem:[%s651_s24] ss:$8 sps:$4 sm:$0xff]   ;;  %v577_v14 = vld [vmem:[%s651_s24 + $0x14] ss:$8 sps:$4 sm:$0xff]  }
  0x11   : > { %v576_v6 = vld [vmem:[%s651_s24 + $0x24] ss:$8 sps:$4 sm:$0xff]   ;;  %512 = vmatprep.mubr.msk.bf16.mxu0 %vm301_vm0, %v573_v5  ;;  %v574_v13 = vld [vmem:[%s651_s24 + $0x20] ss:$8 sps:$4 sm:$0xff]   ;;  %v579_v15 = vld [vmem:[%s651_s24 + $0x34] ss:$8 sps:$4 sm:$0xff]  }
  0x12   : > { %514 = vmatprep.mubr.msk.bf16.mxu1 %vm301_vm0, %v576_v6  ;;  %v581_v16 = vld [vmem:[%s651_s24 + $0x10] ss:$8 sps:$4 sm:$0xff]  }
  0x13   : > { %321 = vmatpush1.bf16.msra.mxu0 %v565_v4  ;;  %547 = vmatpush1.bf16.msra.mxu1 %v565_v4  ;;  %v582_v17 = vld [vmem:[%s651_s24 + $0x30] ss:$8 sps:$4 sm:$0xff]  }
  0x14   : > { %322 = vmatprep.subr.bf16.mxu0 %v607_v1  ;;  %539 = vmatprep.subr.bf16.mxu1 %v607_v1 }
  0x17   : > { %323 = vmatpush1.bf16.msra.mxu0 %v566_v7  ;;  %548 = vmatpush1.bf16.msra.mxu1 %v566_v7 }
  0x18   : > { %324 = vmatprep.subr.bf16.mxu0 %v607_v1  ;;  %540 = vmatprep.subr.bf16.mxu1 %v607_v1 }
  0x1b   : > { %325 = vmatpush1.bf16.msra.mxu0 %v567_v8  ;;  %549 = vmatpush1.bf16.msra.mxu1 %v567_v8 }
  0x1c   : > { %326 = vmatprep.subr.bf16.mxu0 %v607_v1  ;;  %541 = vmatprep.subr.bf16.mxu1 %v607_v1 }
  0x1f   : > { %327 = vmatpush1.bf16.msra.mxu0 %v568_v9  ;;  %550 = vmatpush1.bf16.msra.mxu1 %v568_v9 }
  0x20   : > { %328 = vmatprep.subr.bf16.mxu0 %v607_v1  ;;  %542 = vmatprep.subr.bf16.mxu1 %v607_v1 }
  0x23   : > { %329 = vmatpush1.bf16.msra.mxu0 %v569_v10  ;;  %551 = vmatpush1.bf16.msra.mxu1 %v569_v10 }
  0x24   : > { %330 = vmatprep.subr.bf16.mxu0 %v607_v1  ;;  %543 = vmatprep.subr.bf16.mxu1 %v607_v1 }
  0x27   : > { %331 = vmatpush1.bf16.msra.mxu0 %v570_v11  ;;  %552 = vmatpush1.bf16.msra.mxu1 %v570_v11 }
  0x2a   : > { %347 = vmatmul.mubr.bf16.vlgmr.msra.gmra.mrb[0].mxu0 %v571_v12  ;;  %363 = vmatmul.mubr.bf16.vlgmr.msra.gmra.mrb[0].mxu1 %v574_v13 }
  0x2b   : > { %513 = vmatprep.mubr.msk.bf16.mxu0 %vm301_vm0, %v577_v14  ;;  %515 = vmatprep.mubr.msk.bf16.mxu1 %vm301_vm0, %v579_v15 }
  0x32   : > { %355 = vmatmul.mubr.bf16.gmra.mrb[4].mxu0 %v581_v16  ;;  %371 = vmatmul.mubr.bf16.gmra.mrb[4].mxu1 %v582_v17 }
  0xfd   : > { %v348_v19 = vpop.f32.mrb[0].mxu0  ;;  %v364_v20 = vpop.f32.mrb[0].mxu1 }
  0xfe   : > { %v349_v21 = vadd.f32 %v494_v18, %v348_v19  ;;  %v365_v22 = vadd.f32 %v494_v18, %v364_v20  ;;  %v350_v23 = vpop.f32.mrb[1].mxu0  ;;  %v366_v24 = vpop.f32.mrb[1].mxu1 }
  0xff   : > { %v351_v25 = vpop.f32.mrb[2].mxu0  ;;  %v367_v26 = vpop.f32.mrb[2].mxu1 }
 0x100   : > { %583 = vtanh.f32 %v349_v21  ;;  %v352_v27 = vadd.f32 %v494_v18, %v351_v25  ;;  %v368_v28 = vadd.f32 %v494_v18, %v367_v26  ;;  %v353_v29 = vpop.f32.mrb[3].mxu0  ;;  %v369_v30 = vpop.f32.mrb[3].mxu1 }
 0x101   : > { %585 = vtanh.f32 %v365_v22 }
 0x102   : > { %587 = vtanh.f32 %v352_v27 }
 0x103   : > { %589 = vtanh.f32 %v368_v28 }
 0x105   : > { %v356_v31 = vpop.f32.mrb[4].mxu0  ;;  %v372_v32 = vpop.f32.mrb[4].mxu1 }
 0x106   : > { %v357_v33 = vadd.f32 %v494_v18, %v356_v31  ;;  %v373_v34 = vadd.f32 %v494_v18, %v372_v32  ;;  %v358_v35 = vpop.f32.mrb[5].mxu0  ;;  %v374_v36 = vpop.f32.mrb[5].mxu1 }
 0x107   : > { %v359_v37 = vpop.f32.mrb[6].mxu0  ;;  %v375_v38 = vpop.f32.mrb[6].mxu1 }
 0x108   : > { %591 = vtanh.f32 %v357_v33  ;;  %v360_v39 = vadd.f32 %v494_v18, %v359_v37  ;;  %v376_v40 = vadd.f32 %v494_v18, %v375_v38  ;;  %v361_v41 = vpop.f32.mrb[7].mxu0  ;;  %v377_v42 = vpop.f32.mrb[7].mxu1 }
 0x109   : > { %593 = vtanh.f32 %v373_v34 }
 0x10a   : > { %v584_v43 = vpop.eup %583  ;;  %595 = vtanh.f32 %v360_v39 }
 0x10b   : > { %v586_v44 = vpop.eup %585  ;;  %v527_v45 = vpack.c.bf16 %v584_v43, %v584_v43  ;;  %597 = vtanh.f32 %v376_v40 }
 0x10c   : > { %v588_v46 = vpop.eup %587  ;;  %v531_v47 = vpack.c.bf16 %v586_v44, %v586_v44 }
 0x10d   : > { %v590_v48 = vpop.eup %589  ;;  %420 = vst.msk [vmem:[%s175_s17] sm:$0xf] %vm419_vm1, %v527_v45  ;;  %v528_v49 = vpack.c.bf16 %v588_v46, %v588_v46 }
 0x10e   : > { %424 = vst.msk [vmem:[%s175_s17 + $0x10] sm:$0xf] %vm419_vm1, %v531_v47  ;;  %v532_v50 = vpack.c.bf16 %v590_v48, %v590_v48 }
 0x10f   : > { %421 = vst.msk [vmem:[%s175_s17 + $0x4] sm:$0xf] %vm419_vm1, %v528_v49 }
 0x110   : > { %425 = vst.msk [vmem:[%s175_s17 + $0x14] sm:$0xf] %vm419_vm1, %v532_v50 }
 0x112   : > { %v592_v51 = vpop.eup %591 }
 0x113   : > { %v594_v52 = vpop.eup %593  ;;  %v529_v53 = vpack.c.bf16 %v592_v51, %v592_v51 }
 0x114   : > { %v596_v54 = vpop.eup %595  ;;  %v533_v55 = vpack.c.bf16 %v594_v52, %v594_v52 }
 0x115   : > { %v598_v56 = vpop.eup %597  ;;  %422 = vst.msk [vmem:[%s175_s17 + $0x8] sm:$0xf] %vm419_vm1, %v529_v53  ;;  %v530_v57 = vpack.c.bf16 %v596_v54, %v596_v54 }
 0x116   : > { %426 = vst.msk [vmem:[%s175_s17 + $0x18] sm:$0xf] %vm419_vm1, %v533_v55  ;;  %v534_v58 = vpack.c.bf16 %v598_v56, %v598_v56 }
 0x117   : > { %423 = vst.msk [vmem:[%s175_s17 + $0xc] sm:$0xf] %vm419_vm1, %v530_v57 }
 0x118   : > { %427 = vst.msk [vmem:[%s175_s17 + $0x1c] sm:$0xf] %vm419_vm1, %v534_v58 }
 0x119 PF: > { %s13_s12 = sadd.s32 1, %s605_s12  }
 0x11a   : > { %p10_p4 = scmp.ge.s32.totalorder %s13_s12, 4  }
 0x11c   :  { %12 = sbr.rel (!%p10_p4) target bundleno = 1 (0x1), region = 62 }

</bundles_post_ra>
